<compile_context>
chip_gen: v6e
topology: v6e:2x2x1
jax: 0.10.0
libtpu: 0.0.40
codegen_flags: <defaults>
</compile_context>

<pallas_src>
import functools

import jax
import jax.numpy as jnp
from jax import lax
from jax.experimental import pallas as pl
from jax.experimental.pallas import tpu as pltpu


# ---------------------------------------------------------------------------
# Kernel
# ---------------------------------------------------------------------------
def _user_embedding_kernel(
    x_ref,        # (Tc, TB, Ip) bf16 — current time chunk of the batch tile
    w_ih_ref,     # (Ip, 3Hp)    bf16 — gate-padded; bias folded into row I
    w_hh_ref,     # (Hp, 3Hp)    bf16 — gate-padded
    b_hhn_ref,    # (1, Hp)      f32  — b_hh_n (must stay inside r * (...))
    attn_w_ref,   # (1, Hp)      f32  — attention Linear weight (bias cancels)
    out_w_ref,    # (Hp, Op)     f32  — output Linear weight (pre-transposed)
    out_b_ref,    # (1, Op)      f32
    o_ref,        # (TB, Op)     f32
    gi_scratch,   # VMEM (Tc, TB, 3Hp) f32 — this chunk's input-gate pre-acts
    h_sc,         # VMEM (TB, Hp) f32 — GRU hidden state carry
    m_sc,         # VMEM (TB, 1)  f32 — online-softmax running max
    l_sc,         # VMEM (TB, 1)  f32 — online-softmax running denominator
    ctx_sc,       # VMEM (TB, Hp) f32 — running weighted context
    *,
    seq_len,      # static: true (unpadded) sequence length
    needs_mask,   # static: last chunk contains padded time steps
):
    c = pl.program_id(1)
    Tc, TB, Ip = x_ref.shape
    Hp = w_hh_ref.shape[0]

    # ---- per-batch-tile carry init (time chunk 0) ---------------------------
    @pl.when(c == 0)
    def _():
        h_sc[...] = jnp.zeros_like(h_sc)
        m_sc[...] = jnp.full_like(m_sc, -jnp.inf)
        l_sc[...] = jnp.zeros_like(l_sc)
        ctx_sc[...] = jnp.zeros_like(ctx_sc)

    # ---- hoisted input projection for this chunk (one MXU matmul) -----------
    # bias rides for free: x[..., I] == 1.0 and w_ih row I holds the folded bias
    x2d = x_ref[...].reshape(Tc * TB, Ip)                     # leading-dim merge
    gi = jnp.dot(x2d, w_ih_ref[...], preferred_element_type=jnp.float32)
    gi_scratch[...] = gi.reshape(Tc, TB, 3 * Hp)
    # TODO(synk): interleave the NEXT chunk's input projection inside the
    # recurrence loop (it only depends on x) to fill MXU bubbles.

    b_hhn = b_hhn_ref[...]                                    # (1, Hp)
    attn_w = attn_w_ref[...]                                  # (1, Hp)
    chunk_start = c * Tc

    # ---- serial GRU recurrence + online softmax-attention pooling -----------
    def step(t, carry):
        h, m, l, ctx = carry
        gi_t = gi_scratch[t]                                  # (TB, 3Hp)
        gh = jnp.dot(h.astype(jnp.bfloat16), w_hh_ref[...],
                     preferred_element_type=jnp.float32)      # (TB, 3Hp)

        r = jax.nn.sigmoid(gi_t[:, 0:Hp] + gh[:, 0:Hp])
        z = jax.nn.sigmoid(gi_t[:, Hp:2 * Hp] + gh[:, Hp:2 * Hp])
        n = jnp.tanh(gi_t[:, 2 * Hp:3 * Hp]
                     + r * (gh[:, 2 * Hp:3 * Hp] + b_hhn))
        h_new = (1.0 - z) * n + z * h

        # online softmax pooling over the time axis
        s = jnp.sum(h_new * attn_w, axis=-1, keepdims=True)   # (TB, 1)
        if needs_mask:
            # padded trailing time steps contribute nothing to the pooling
            s = jnp.where(chunk_start + t < seq_len, s, -jnp.inf)
        m_new = jnp.maximum(m, s)
        alpha = jnp.exp(m - m_new)
        p = jnp.exp(s - m_new)
        l_new = alpha * l + p
        ctx_new = alpha * ctx + p * h_new
        return h_new, m_new, l_new, ctx_new

    carry0 = (h_sc[...], m_sc[...], l_sc[...], ctx_sc[...])
    h, m, l, ctx = lax.fori_loop(0, Tc, step, carry0, unroll=min(Tc, 8))
    h_sc[...] = h
    m_sc[...] = m
    l_sc[...] = l
    ctx_sc[...] = ctx

    # ---- last chunk: normalize pooled context, apply output Linear ----------
    @pl.when(c == pl.num_programs(1) - 1)
    def _():
        context = ctx * (1.0 / l)                             # (TB, Hp), exact
        out = jnp.dot(context, out_w_ref[...],
                      preferred_element_type=jnp.float32) + out_b_ref[...]
        o_ref[...] = out.astype(o_ref.dtype)


# ---------------------------------------------------------------------------
# Wrapper: padding, weight prep, tiling selection, pallas_call
# ---------------------------------------------------------------------------
def _round_up(n, m):
    return (n + m - 1) // m * m


def _cdiv(a, b):
    return (a + b - 1) // b


def _pad_gates(w, rows_to, h, h_pad):
    """w: (rows, 3h), gate-concatenated (r|z|n) along axis 1.  Zero-pad each
    gate's columns to h_pad and the rows to rows_to."""
    rows = w.shape[0]
    parts = []
    for g in range(3):
        blk = w[:, g * h:(g + 1) * h]
        parts.append(jnp.pad(blk, ((0, rows_to - rows), (0, h_pad - h))))
    return jnp.concatenate(parts, axis=1)


def _vmem_bytes(Tc, tb, Ip, Hp, Op):
    """Conservative per-core VMEM footprint (assumes double-buffered weights)."""
    bf2, f4 = 2, 4
    return (
        2 * Tc * tb * Ip * bf2                        # x block (bf16, 2 buffers)
        + Tc * tb * 3 * Hp * f4                       # gi scratch
        + 2 * (Ip + Hp) * 3 * Hp * bf2                # w_ih + w_hh (worst case)
        + 2 * (Hp * Op + 4 * 128) * f4                # out_w + small vectors
        + 2 * tb * Op * f4                            # output block
        + (2 * Hp + 2 * 128) * tb * f4                # h / ctx / m / l carries
        + 8 * tb * 3 * Hp * f4                        # loop temporaries headroom
    )


def user_embedding_forward(path, params, *, batch_tile=None, time_chunk=None):
    """path: (batch, seq, input) float32 -> (batch, output) float32."""
    B, T, I = path.shape
    H = params["w_hh"].shape[1]
    O = params["out_w"].shape[0]
    if B == 0 or T == 0:
        raise ValueError("user_embedding_forward requires batch >= 1 and seq >= 1")

    LANE, SUB = 128, 8
    Ip = _round_up(I + 1, LANE)          # +1: constant bias column at index I
    Hp = _round_up(H, LANE)
    Op = _round_up(O, LANE)

    # ---- batch tile: prefer >= 2 tiles so both v7x TensorCores get work -----
    Bp8 = _round_up(B, SUB)
    if batch_tile is not None:
        tb = _round_up(batch_tile, SUB)
    else:
        tb_cap = 256 if Bp8 >= 512 else 128     # 256-wide MXUs like bigger tiles
        tb = min(tb_cap, Bp8)
        if Bp8 >= 2 * SUB:
            tb = min(tb, _round_up(_cdiv(Bp8, 2), SUB))

    # ---- time chunk + generation-aware VMEM budget --------------------------
    try:
        vmem_cap = int(pltpu.get_tpu_info().vmem_capacity_bytes)
    except Exception:
        vmem_cap = 64 * 2 ** 20                 # conservative (v7x per-core VMEM)
    budget = int(0.70 * vmem_cap)

    Tc = min(T, 64) if time_chunk is None else max(1, min(time_chunk, T))
    while _vmem_bytes(Tc, tb, Ip, Hp, Op) > budget and Tc > 8:
        Tc = max(8, Tc // 2)
    while _vmem_bytes(Tc, tb, Ip, Hp, Op) > budget and tb > SUB:
        tb = max(SUB, _round_up(tb // 2, SUB))

    Bp = _round_up(B, tb)
    nb = Bp // tb
    Tp = _round_up(T, Tc)
    n_chunks = Tp // Tc
    needs_mask = (Tp != T)

    est = _vmem_bytes(Tc, tb, Ip, Hp, Op)
    vmem_limit = int(min(int(0.9 * vmem_cap), max(2 * est, 32 * 2 ** 20)))

    # ---- input: bias column, pad, single transpose to time-major, bf16 ------
    x = jnp.pad(path.astype(jnp.float32), ((0, 0), (0, 0), (0, Ip - I)))
    x = x.at[:, :, I].set(1.0)                              # bias column
    x = jnp.pad(x, ((0, Bp - B), (0, Tp - T), (0, 0)))      # (Bp, Tp, Ip)
    x = jnp.transpose(x, (1, 0, 2)).astype(jnp.bfloat16)    # (Tp, Bp, Ip)

    # ---- weights: pre-transpose, gate-pad, fold biases, bf16 matmul inputs --
    b_ih, b_hh = params["b_ih"], params["b_hh"]
    gi_bias = b_ih + jnp.concatenate([b_hh[:2 * H], jnp.zeros((H,), jnp.float32)])
    w_ih_aug = jnp.concatenate([params["w_ih"].T, gi_bias[None, :]], axis=0)  # (I+1,3H)
    w_ih = _pad_gates(w_ih_aug, Ip, H, Hp).astype(jnp.bfloat16)               # (Ip,3Hp)
    w_hh = _pad_gates(params["w_hh"].T, Hp, H, Hp).astype(jnp.bfloat16)       # (Hp,3Hp)
    b_hhn = jnp.pad(b_hh[2 * H:].reshape(1, H), ((0, 0), (0, Hp - H)))
    attn_w = jnp.pad(params["attn_w"].reshape(1, H), ((0, 0), (0, Hp - H)))
    out_w = jnp.pad(params["out_w"].T, ((0, Hp - H), (0, Op - O)))            # (Hp,Op)
    out_b = jnp.pad(params["out_b"].reshape(1, O), ((0, 0), (0, Op - O)))

    kernel = functools.partial(_user_embedding_kernel,
                               seq_len=T, needs_mask=needs_mask)

    def _call(single_buffer_weights):
        def wspec(shape):
            imap = lambda i, c: (0,) * len(shape)
            if single_buffer_weights:
                return pl.BlockSpec(shape, imap, pipeline_mode=pl.Buffered(1))
            return pl.BlockSpec(shape, imap)

        return pl.pallas_call(
            kernel,
            out_shape=jax.ShapeDtypeStruct((Bp, Op), jnp.float32),
            grid_spec=pltpu.PrefetchScalarGridSpec(
                num_scalar_prefetch=0,
                grid=(nb, n_chunks),
                in_specs=[
                    pl.BlockSpec((Tc, tb, Ip), lambda i, c: (c, i, 0)),   # x
                    wspec((Ip, 3 * Hp)),                                  # w_ih
                    wspec((Hp, 3 * Hp)),                                  # w_hh
                    wspec((1, Hp)),                                       # b_hh_n
                    wspec((1, Hp)),                                       # attn_w
                    wspec((Hp, Op)),                                      # out_w
                    wspec((1, Op)),                                       # out_b
                ],
                out_specs=pl.BlockSpec((tb, Op), lambda i, c: (i, 0)),
                scratch_shapes=[
                    pltpu.VMEM((Tc, tb, 3 * Hp), jnp.float32),            # gi
                    pltpu.VMEM((tb, Hp), jnp.float32),                    # h
                    pltpu.VMEM((tb, 1), jnp.float32),                     # m
                    pltpu.VMEM((tb, 1), jnp.float32),                     # l
                    pltpu.VMEM((tb, Hp), jnp.float32),                    # ctx
                ],
            ),
            compiler_params=pltpu.CompilerParams(
                dimension_semantics=("parallel", "arbitrary"),
                vmem_limit_bytes=vmem_limit,
            ),
        )(x, w_ih, w_hh, b_hhn, attn_w, out_w, out_b)

    try:
        out = _call(True)
    except Exception:
        # pl.Buffered(1) rejected by this jax/libtpu combo: same math, default
        # double-buffered weight blocks.
        out = _call(False)

    return out[:B, :O]


# ---------------------------------------------------------------------------
# Deterministic parameter construction (mirrors UserEmbedding.__init__)
# ---------------------------------------------------------------------------
def _xavier_uniform(key, shape):
    fan_out, fan_in = shape
    bound = (6.0 / (fan_in + fan_out)) ** 0.5
    return jax.random.uniform(key, shape, jnp.float32, -bound, bound)


def init_params(key, input_size, hidden_size, output_size):
    k = jax.random.split(key, 6)
    return {
        # nn.GRU(input_size, hidden_size): weight_ih_l0 (3H, I), weight_hh_l0 (3H, H)
        "w_ih": _xavier_uniform(k[0], (3 * hidden_size, input_size)),
        "w_hh": _xavier_uniform(k[1], (3 * hidden_size, hidden_size)),
        "b_ih": jnp.zeros((3 * hidden_size,), jnp.float32),
        "b_hh": jnp.zeros((3 * hidden_size,), jnp.float32),
        # nn.Linear(hidden_size, 1) — bias cancels inside softmax
        "attn_w": _xavier_uniform(k[2], (1, hidden_size)),
        "attn_b": jax.random.uniform(k[3], (1,), jnp.float32, -0.05, 0.05),
        # nn.Linear(hidden_size, output_size)
        "out_w": _xavier_uniform(k[4], (output_size, hidden_size)),
        "out_b": jax.random.uniform(k[5], (output_size,), jnp.float32, -0.05, 0.05),
    }


# ---------------------------------------------------------------------------
# Pure-JAX reference (correctness check)
# ---------------------------------------------------------------------------
def reference_forward(path, params):
    B, T, I = path.shape
    H = params["w_hh"].shape[1]

    def step(h, x_t):
        gi = x_t @ params["w_ih"].T + params["b_ih"]
        gh = h @ params["w_hh"].T + params["b_hh"]
        r = jax.nn.sigmoid(gi[:, :H] + gh[:, :H])
        z = jax.nn.sigmoid(gi[:, H:2 * H] + gh[:, H:2 * H])
        n = jnp.tanh(gi[:, 2 * H:] + r * gh[:, 2 * H:])
        h_new = (1.0 - z) * n + z * h
        return h_new, h_new

    h0 = jnp.zeros((B, H), jnp.float32)
    _, hs = lax.scan(step, h0, jnp.transpose(path, (1, 0, 2)))
    gru_out = jnp.transpose(hs, (1, 0, 2))                      # (B, T, H)
    scores = gru_out @ params["attn_w"].T + params["attn_b"]    # (B, T, 1)
    attn = jax.nn.softmax(scores, axis=1)
    context = jnp.sum(attn * gru_out, axis=1)                   # (B, H)
    return context @ params["out_w"].T + params["out_b"]        # (B, O)


if __name__ == "__main__":
    batch, seq, input_size, hidden_size, output_size = 2, 8, 16, 32, 8

    key = jax.random.PRNGKey(0)
    k_x, k_p, k_b1, k_b2, k_x2 = jax.random.split(key, 5)
    path = jax.random.normal(k_x, (batch, seq, input_size), jnp.float32)
    params = init_params(k_p, input_size, hidden_size, output_size)
    # The module zero-inits GRU biases; use small nonzero ones here purely so
    # the bias-folding path is exercised by the correctness check.
    params["b_ih"] = 0.05 * jax.random.normal(k_b1, (3 * hidden_size,), jnp.float32)
    params["b_hh"] = 0.05 * jax.random.normal(k_b2, (3 * hidden_size,), jnp.float32)

    # single-chunk path (T fits in one time chunk)
    out = jax.block_until_ready(user_embedding_forward(path, params))
    ref = reference_forward(path, params)
    assert out.shape == (batch, output_size)
    assert jnp.allclose(out, ref, atol=5e-2, rtol=5e-2), (out, ref)

    # multi-chunk path: 20 steps in chunks of 8 (last chunk time-masked)
    path2 = jax.random.normal(k_x2, (4, 20, input_size), jnp.float32)
    out2 = jax.block_until_ready(
        user_embedding_forward(path2, params, time_chunk=8))
    ref2 = reference_forward(path2, params)
    assert out2.shape == (4, output_size)
    assert jnp.allclose(out2, ref2, atol=5e-2, rtol=5e-2), (out2, ref2)

    print("KERNEL_OK")
</pallas_src>

<mosaic_0001>
module attributes {stable_mosaic.version = 11 : i64} {
  func.func @_user_embedding_kernel(%arg0: i32, %arg1: i32, %arg2: memref<8x8x128xbf16, #tpu.memory_space<vmem>>, %arg3: memref<128x384xbf16, #tpu.memory_space<vmem>>, %arg4: memref<128x384xbf16, #tpu.memory_space<vmem>>, %arg5: memref<1x128xf32, #tpu.memory_space<vmem>>, %arg6: memref<1x128xf32, #tpu.memory_space<vmem>>, %arg7: memref<128x128xf32, #tpu.memory_space<vmem>>, %arg8: memref<1x128xf32, #tpu.memory_space<vmem>>, %arg9: memref<8x128xf32, #tpu.memory_space<vmem>>, %arg10: memref<8x8x384xf32, #tpu.memory_space<vmem>>, %arg11: memref<8x128xf32, #tpu.memory_space<vmem>>, %arg12: memref<8x1xf32, #tpu.memory_space<vmem>>, %arg13: memref<8x1xf32, #tpu.memory_space<vmem>>, %arg14: memref<8x128xf32, #tpu.memory_space<vmem>>) attributes {dimension_semantics = [#tpu.dimension_semantics<parallel>, #tpu.dimension_semantics<arbitrary>], iteration_bounds = array<i64: 1, 1>, scalar_prefetch = 0 : i64, scratch_operands = 5 : i64, tpu.core_type = #tpu.core_type<tc>, window_params = [{transform_indices = @transform_0, window_bounds = array<i64: 8, 8, 128>}, {pipeline_mode = #tpu.pipeline_mode<synchronous>, transform_indices = @transform_1, window_bounds = array<i64: 128, 384>}, {pipeline_mode = #tpu.pipeline_mode<synchronous>, transform_indices = @transform_2, window_bounds = array<i64: 128, 384>}, {pipeline_mode = #tpu.pipeline_mode<synchronous>, transform_indices = @transform_3, window_bounds = array<i64: 1, 128>}, {pipeline_mode = #tpu.pipeline_mode<synchronous>, transform_indices = @transform_4, window_bounds = array<i64: 1, 128>}, {pipeline_mode = #tpu.pipeline_mode<synchronous>, transform_indices = @transform_5, window_bounds = array<i64: 128, 128>}, {pipeline_mode = #tpu.pipeline_mode<synchronous>, transform_indices = @transform_6, window_bounds = array<i64: 1, 128>}, {transform_indices = @transform_7, window_bounds = array<i64: 8, 128>}]} {
    %c0_i32 = arith.constant 0 : i32
    %0 = arith.cmpi eq, %arg1, %c0_i32 : i32
    %1 = arith.extui %0 : i1 to i32
    %c0_i32_0 = arith.constant 0 : i32
    %2 = arith.cmpi ne, %1, %c0_i32_0 : i32
    scf.if %2 {
      %cst_103 = arith.constant 0.000000e+00 : f32
      %422 = vector.broadcast %cst_103 : f32 to vector<8x128xf32>
      %c0_104 = arith.constant 0 : index
      %c0_105 = arith.constant 0 : index
      %423 = vector.load %arg11[%c0_104, %c0_105] : memref<8x128xf32, #tpu.memory_space<vmem>>, vector<8x128xf32>
      tpu.vector_store %arg11[%c0_104, %c0_105], %422 {strides = array<i32>} : memref<8x128xf32, #tpu.memory_space<vmem>>, vector<8x128xf32>,
      %cst_106 = arith.constant 0xFF800000 : f32
      %424 = vector.broadcast %cst_106 : f32 to vector<8x1xf32>
      %c0_107 = arith.constant 0 : index
      %c0_108 = arith.constant 0 : index
      %425 = vector.load %arg12[%c0_107, %c0_108] : memref<8x1xf32, #tpu.memory_space<vmem>>, vector<8x1xf32>
      tpu.vector_store %arg12[%c0_107, %c0_108], %424 {strides = array<i32>} : memref<8x1xf32, #tpu.memory_space<vmem>>, vector<8x1xf32>,
      %cst_109 = arith.constant 0.000000e+00 : f32
      %426 = vector.broadcast %cst_109 : f32 to vector<8x1xf32>
      %c0_110 = arith.constant 0 : index
      %c0_111 = arith.constant 0 : index
      %427 = vector.load %arg13[%c0_110, %c0_111] : memref<8x1xf32, #tpu.memory_space<vmem>>, vector<8x1xf32>
      tpu.vector_store %arg13[%c0_110, %c0_111], %426 {strides = array<i32>} : memref<8x1xf32, #tpu.memory_space<vmem>>, vector<8x1xf32>,
      %cst_112 = arith.constant 0.000000e+00 : f32
      %428 = vector.broadcast %cst_112 : f32 to vector<8x128xf32>
      %c0_113 = arith.constant 0 : index
      %c0_114 = arith.constant 0 : index
      %429 = vector.load %arg14[%c0_113, %c0_114] : memref<8x128xf32, #tpu.memory_space<vmem>>, vector<8x128xf32>
      tpu.vector_store %arg14[%c0_113, %c0_114], %428 {strides = array<i32>} : memref<8x128xf32, #tpu.memory_space<vmem>>, vector<8x128xf32>,
    } else {
    }
    %c0 = arith.constant 0 : index
    %c0_1 = arith.constant 0 : index
    %c0_2 = arith.constant 0 : index
    %3 = vector.load %arg2[%c0, %c0_1, %c0_2] : memref<8x8x128xbf16, #tpu.memory_space<vmem>>, vector<8x8x128xbf16>
    %4 = vector.shape_cast %3 : vector<8x8x128xbf16> to vector<64x128xbf16>
    %c0_3 = arith.constant 0 : index
    %c0_4 = arith.constant 0 : index
    %5 = vector.load %arg3[%c0_3, %c0_4] : memref<128x384xbf16, #tpu.memory_space<vmem>>, vector<128x384xbf16>
    %cst = arith.constant dense<0.000000e+00> : vector<64x384xf32>
    %6 = tpu.matmul %4, %5, %cst {dimension_numbers = #tpu.dot_dimension_numbers<[1], [0], [0], [1], [0, 0, 1, 1], [], []>} : vector<64x128xbf16>, vector<128x384xbf16>, vector<64x384xf32> -> vector<64x384xf32>
    %7 = vector.shape_cast %6 : vector<64x384xf32> to vector<8x8x384xf32>
    %c0_5 = arith.constant 0 : index
    %c0_6 = arith.constant 0 : index
    %c0_7 = arith.constant 0 : index
    %8 = vector.load %arg10[%c0_5, %c0_6, %c0_7] : memref<8x8x384xf32, #tpu.memory_space<vmem>>, vector<8x8x384xf32>
    tpu.vector_store %arg10[%c0_5, %c0_6, %c0_7], %7 {strides = array<i32>} : memref<8x8x384xf32, #tpu.memory_space<vmem>>, vector<8x8x384xf32>,
    %c0_8 = arith.constant 0 : index
    %c0_9 = arith.constant 0 : index
    %9 = vector.load %arg5[%c0_8, %c0_9] : memref<1x128xf32, #tpu.memory_space<vmem>>, vector<1x128xf32>
    %c0_10 = arith.constant 0 : index
    %c0_11 = arith.constant 0 : index
    %10 = vector.load %arg6[%c0_10, %c0_11] : memref<1x128xf32, #tpu.memory_space<vmem>>, vector<1x128xf32>
    %c0_12 = arith.constant 0 : index
    %c0_13 = arith.constant 0 : index
    %11 = vector.load %arg11[%c0_12, %c0_13] : memref<8x128xf32, #tpu.memory_space<vmem>>, vector<8x128xf32>
    %c0_14 = arith.constant 0 : index
    %c0_15 = arith.constant 0 : index
    %12 = vector.load %arg12[%c0_14, %c0_15] : memref<8x1xf32, #tpu.memory_space<vmem>>, vector<8x1xf32>
    %c0_16 = arith.constant 0 : index
    %c0_17 = arith.constant 0 : index
    %13 = vector.load %arg13[%c0_16, %c0_17] : memref<8x1xf32, #tpu.memory_space<vmem>>, vector<8x1xf32>
    %c0_18 = arith.constant 0 : index
    %c0_19 = arith.constant 0 : index
    %14 = vector.load %arg14[%c0_18, %c0_19] : memref<8x128xf32, #tpu.memory_space<vmem>>, vector<8x128xf32>
    %c0_i32_20 = arith.constant 0 : i32
    %15 = arith.index_cast %c0_i32_20 : i32 to index
    %c0_21 = arith.constant 0 : index
    %c0_22 = arith.constant 0 : index
    %16 = vector.load %arg10[%15, %c0_21, %c0_22] : memref<8x8x384xf32, #tpu.memory_space<vmem>>, vector<1x8x384xf32>
    %17 = vector.shape_cast %16 : vector<1x8x384xf32> to vector<8x384xf32>
    %18 = arith.truncf %11 : vector<8x128xf32> to vector<8x128xbf16>
    %c0_23 = arith.constant 0 : index
    %c0_24 = arith.constant 0 : index
    %19 = vector.load %arg4[%c0_23, %c0_24] : memref<128x384xbf16, #tpu.memory_space<vmem>>, vector<128x384xbf16>
    %cst_25 = arith.constant dense<0.000000e+00> : vector<8x384xf32>
    %20 = tpu.matmul %18, %19, %cst_25 {dimension_numbers = #tpu.dot_dimension_numbers<[1], [0], [0], [1], [0, 0, 1, 1], [], []>} : vector<8x128xbf16>, vector<128x384xbf16>, vector<8x384xf32> -> vector<8x384xf32>
    %21 = vector.extract_strided_slice %17 {offsets = [0, 0], sizes = [8, 128], strides = [1, 1]} : vector<8x384xf32> to vector<8x128xf32>
    %22 = vector.extract_strided_slice %20 {offsets = [0, 0], sizes = [8, 128], strides = [1, 1]} : vector<8x384xf32> to vector<8x128xf32>
    %23 = arith.addf %21, %22 : vector<8x128xf32>
    %24 = arith.negf %23 : vector<8x128xf32>
    %25 = math.exp %24 : vector<8x128xf32>
    %cst_26 = arith.constant 1.000000e+00 : f32
    %26 = vector.broadcast %cst_26 : f32 to vector<8x128xf32>
    %27 = arith.addf %26, %25 : vector<8x128xf32>
    %28 = arith.divf %26, %27 : vector<8x128xf32>
    %29 = vector.extract_strided_slice %17 {offsets = [0, 128], sizes = [8, 128], strides = [1, 1]} : vector<8x384xf32> to vector<8x128xf32>
    %30 = vector.extract_strided_slice %20 {offsets = [0, 128], sizes = [8, 128], strides = [1, 1]} : vector<8x384xf32> to vector<8x128xf32>
    %31 = arith.addf %29, %30 : vector<8x128xf32>
    %32 = arith.negf %31 : vector<8x128xf32>
    %33 = math.exp %32 : vector<8x128xf32>
    %cst_27 = arith.constant 1.000000e+00 : f32
    %34 = vector.broadcast %cst_27 : f32 to vector<8x128xf32>
    %35 = arith.addf %34, %33 : vector<8x128xf32>
    %36 = arith.divf %34, %35 : vector<8x128xf32>
    %37 = vector.extract_strided_slice %17 {offsets = [0, 256], sizes = [8, 128], strides = [1, 1]} : vector<8x384xf32> to vector<8x128xf32>
    %38 = vector.extract_strided_slice %20 {offsets = [0, 256], sizes = [8, 128], strides = [1, 1]} : vector<8x384xf32> to vector<8x128xf32>
    %39 = vector.broadcast %9 : vector<1x128xf32> to vector<8x128xf32>
    %40 = arith.addf %38, %39 : vector<8x128xf32>
    %41 = arith.mulf %28, %40 : vector<8x128xf32>
    %42 = arith.addf %37, %41 : vector<8x128xf32>
    %43 = math.tanh %42 : vector<8x128xf32>
    %cst_28 = arith.constant 1.000000e+00 : f32
    %44 = vector.broadcast %cst_28 : f32 to vector<8x128xf32>
    %45 = arith.subf %44, %36 : vector<8x128xf32>
    %46 = arith.mulf %45, %43 : vector<8x128xf32>
    %47 = arith.mulf %36, %11 : vector<8x128xf32>
    %48 = arith.addf %46, %47 : vector<8x128xf32>
    %49 = vector.broadcast %10 : vector<1x128xf32> to vector<8x128xf32>
    %50 = arith.mulf %48, %49 : vector<8x128xf32>
    %cst_29 = arith.constant dense<0.000000e+00> : vector<8xf32>
    %51 = vector.multi_reduction <add>, %50, %cst_29 [1] : vector<8x128xf32> to vector<8xf32>
    %52 = vector.shape_cast %51 : vector<8xf32> to vector<8x1xf32>
    %53 = arith.maximumf %12, %52 : vector<8x1xf32>
    %54 = arith.subf %12, %53 : vector<8x1xf32>
    %55 = math.exp %54 : vector<8x1xf32>
    %56 = arith.subf %52, %53 : vector<8x1xf32>
    %57 = math.exp %56 : vector<8x1xf32>
    %58 = arith.mulf %55, %13 : vector<8x1xf32>
    %59 = arith.addf %58, %57 : vector<8x1xf32>
    %60 = vector.broadcast %55 : vector<8x1xf32> to vector<8x128xf32>
    %61 = arith.mulf %60, %14 : vector<8x128xf32>
    %62 = vector.broadcast %57 : vector<8x1xf32> to vector<8x128xf32>
    %63 = arith.mulf %62, %48 : vector<8x128xf32>
    %64 = arith.addf %61, %63 : vector<8x128xf32>
    %c1_i32 = arith.constant 1 : i32
    %65 = arith.index_cast %c1_i32 : i32 to index
    %c0_30 = arith.constant 0 : index
    %c0_31 = arith.constant 0 : index
    %66 = vector.load %arg10[%65, %c0_30, %c0_31] : memref<8x8x384xf32, #tpu.memory_space<vmem>>, vector<1x8x384xf32>
    %67 = vector.shape_cast %66 : vector<1x8x384xf32> to vector<8x384xf32>
    %68 = arith.truncf %48 : vector<8x128xf32> to vector<8x128xbf16>
    %c0_32 = arith.constant 0 : index
    %c0_33 = arith.constant 0 : index
    %69 = vector.load %arg4[%c0_32, %c0_33] : memref<128x384xbf16, #tpu.memory_space<vmem>>, vector<128x384xbf16>
    %cst_34 = arith.constant dense<0.000000e+00> : vector<8x384xf32>
    %70 = tpu.matmul %68, %69, %cst_34 {dimension_numbers = #tpu.dot_dimension_numbers<[1], [0], [0], [1], [0, 0, 1, 1], [], []>} : vector<8x128xbf16>, vector<128x384xbf16>, vector<8x384xf32> -> vector<8x384xf32>
    %71 = vector.extract_strided_slice %67 {offsets = [0, 0], sizes = [8, 128], strides = [1, 1]} : vector<8x384xf32> to vector<8x128xf32>
    %72 = vector.extract_strided_slice %70 {offsets = [0, 0], sizes = [8, 128], strides = [1, 1]} : vector<8x384xf32> to vector<8x128xf32>
    %73 = arith.addf %71, %72 : vector<8x128xf32>
    %74 = arith.negf %73 : vector<8x128xf32>
    %75 = math.exp %74 : vector<8x128xf32>
    %cst_35 = arith.constant 1.000000e+00 : f32
    %76 = vector.broadcast %cst_35 : f32 to vector<8x128xf32>
    %77 = arith.addf %76, %75 : vector<8x128xf32>
    %78 = arith.divf %76, %77 : vector<8x128xf32>
    %79 = vector.extract_strided_slice %67 {offsets = [0, 128], sizes = [8, 128], strides = [1, 1]} : vector<8x384xf32> to vector<8x128xf32>
    %80 = vector.extract_strided_slice %70 {offsets = [0, 128], sizes = [8, 128], strides = [1, 1]} : vector<8x384xf32> to vector<8x128xf32>
    %81 = arith.addf %79, %80 : vector<8x128xf32>
    %82 = arith.negf %81 : vector<8x128xf32>
    %83 = math.exp %82 : vector<8x128xf32>
    %cst_36 = arith.constant 1.000000e+00 : f32
    %84 = vector.broadcast %cst_36 : f32 to vector<8x128xf32>
    %85 = arith.addf %84, %83 : vector<8x128xf32>
    %86 = arith.divf %84, %85 : vector<8x128xf32>
    %87 = vector.extract_strided_slice %67 {offsets = [0, 256], sizes = [8, 128], strides = [1, 1]} : vector<8x384xf32> to vector<8x128xf32>
    %88 = vector.extract_strided_slice %70 {offsets = [0, 256], sizes = [8, 128], strides = [1, 1]} : vector<8x384xf32> to vector<8x128xf32>
    %89 = vector.broadcast %9 : vector<1x128xf32> to vector<8x128xf32>
    %90 = arith.addf %88, %89 : vector<8x128xf32>
    %91 = arith.mulf %78, %90 : vector<8x128xf32>
    %92 = arith.addf %87, %91 : vector<8x128xf32>
    %93 = math.tanh %92 : vector<8x128xf32>
    %cst_37 = arith.constant 1.000000e+00 : f32
    %94 = vector.broadcast %cst_37 : f32 to vector<8x128xf32>
    %95 = arith.subf %94, %86 : vector<8x128xf32>
    %96 = arith.mulf %95, %93 : vector<8x128xf32>
    %97 = arith.mulf %86, %48 : vector<8x128xf32>
    %98 = arith.addf %96, %97 : vector<8x128xf32>
    %99 = vector.broadcast %10 : vector<1x128xf32> to vector<8x128xf32>
    %100 = arith.mulf %98, %99 : vector<8x128xf32>
    %cst_38 = arith.constant dense<0.000000e+00> : vector<8xf32>
    %101 = vector.multi_reduction <add>, %100, %cst_38 [1] : vector<8x128xf32> to vector<8xf32>
    %102 = vector.shape_cast %101 : vector<8xf32> to vector<8x1xf32>
    %103 = arith.maximumf %53, %102 : vector<8x1xf32>
    %104 = arith.subf %53, %103 : vector<8x1xf32>
    %105 = math.exp %104 : vector<8x1xf32>
    %106 = arith.subf %102, %103 : vector<8x1xf32>
    %107 = math.exp %106 : vector<8x1xf32>
    %108 = arith.mulf %105, %59 : vector<8x1xf32>
    %109 = arith.addf %108, %107 : vector<8x1xf32>
    %110 = vector.broadcast %105 : vector<8x1xf32> to vector<8x128xf32>
    %111 = arith.mulf %110, %64 : vector<8x128xf32>
    %112 = vector.broadcast %107 : vector<8x1xf32> to vector<8x128xf32>
    %113 = arith.mulf %112, %98 : vector<8x128xf32>
    %114 = arith.addf %111, %113 : vector<8x128xf32>
    %c2_i32 = arith.constant 2 : i32
    %115 = arith.index_cast %c2_i32 : i32 to index
    %c0_39 = arith.constant 0 : index
    %c0_40 = arith.constant 0 : index
    %116 = vector.load %arg10[%115, %c0_39, %c0_40] : memref<8x8x384xf32, #tpu.memory_space<vmem>>, vector<1x8x384xf32>
    %117 = vector.shape_cast %116 : vector<1x8x384xf32> to vector<8x384xf32>
    %118 = arith.truncf %98 : vector<8x128xf32> to vector<8x128xbf16>
    %c0_41 = arith.constant 0 : index
    %c0_42 = arith.constant 0 : index
    %119 = vector.load %arg4[%c0_41, %c0_42] : memref<128x384xbf16, #tpu.memory_space<vmem>>, vector<128x384xbf16>
    %cst_43 = arith.constant dense<0.000000e+00> : vector<8x384xf32>
    %120 = tpu.matmul %118, %119, %cst_43 {dimension_numbers = #tpu.dot_dimension_numbers<[1], [0], [0], [1], [0, 0, 1, 1], [], []>} : vector<8x128xbf16>, vector<128x384xbf16>, vector<8x384xf32> -> vector<8x384xf32>
    %121 = vector.extract_strided_slice %117 {offsets = [0, 0], sizes = [8, 128], strides = [1, 1]} : vector<8x384xf32> to vector<8x128xf32>
    %122 = vector.extract_strided_slice %120 {offsets = [0, 0], sizes = [8, 128], strides = [1, 1]} : vector<8x384xf32> to vector<8x128xf32>
    %123 = arith.addf %121, %122 : vector<8x128xf32>
    %124 = arith.negf %123 : vector<8x128xf32>
    %125 = math.exp %124 : vector<8x128xf32>
    %cst_44 = arith.constant 1.000000e+00 : f32
    %126 = vector.broadcast %cst_44 : f32 to vector<8x128xf32>
    %127 = arith.addf %126, %125 : vector<8x128xf32>
    %128 = arith.divf %126, %127 : vector<8x128xf32>
    %129 = vector.extract_strided_slice %117 {offsets = [0, 128], sizes = [8, 128], strides = [1, 1]} : vector<8x384xf32> to vector<8x128xf32>
    %130 = vector.extract_strided_slice %120 {offsets = [0, 128], sizes = [8, 128], strides = [1, 1]} : vector<8x384xf32> to vector<8x128xf32>
    %131 = arith.addf %129, %130 : vector<8x128xf32>
    %132 = arith.negf %131 : vector<8x128xf32>
    %133 = math.exp %132 : vector<8x128xf32>
    %cst_45 = arith.constant 1.000000e+00 : f32
    %134 = vector.broadcast %cst_45 : f32 to vector<8x128xf32>
    %135 = arith.addf %134, %133 : vector<8x128xf32>
    %136 = arith.divf %134, %135 : vector<8x128xf32>
    %137 = vector.extract_strided_slice %117 {offsets = [0, 256], sizes = [8, 128], strides = [1, 1]} : vector<8x384xf32> to vector<8x128xf32>
    %138 = vector.extract_strided_slice %120 {offsets = [0, 256], sizes = [8, 128], strides = [1, 1]} : vector<8x384xf32> to vector<8x128xf32>
    %139 = vector.broadcast %9 : vector<1x128xf32> to vector<8x128xf32>
    %140 = arith.addf %138, %139 : vector<8x128xf32>
    %141 = arith.mulf %128, %140 : vector<8x128xf32>
    %142 = arith.addf %137, %141 : vector<8x128xf32>
    %143 = math.tanh %142 : vector<8x128xf32>
    %cst_46 = arith.constant 1.000000e+00 : f32
    %144 = vector.broadcast %cst_46 : f32 to vector<8x128xf32>
    %145 = arith.subf %144, %136 : vector<8x128xf32>
    %146 = arith.mulf %145, %143 : vector<8x128xf32>
    %147 = arith.mulf %136, %98 : vector<8x128xf32>
    %148 = arith.addf %146, %147 : vector<8x128xf32>
    %149 = vector.broadcast %10 : vector<1x128xf32> to vector<8x128xf32>
    %150 = arith.mulf %148, %149 : vector<8x128xf32>
    %cst_47 = arith.constant dense<0.000000e+00> : vector<8xf32>
    %151 = vector.multi_reduction <add>, %150, %cst_47 [1] : vector<8x128xf32> to vector<8xf32>
    %152 = vector.shape_cast %151 : vector<8xf32> to vector<8x1xf32>
    %153 = arith.maximumf %103, %152 : vector<8x1xf32>
    %154 = arith.subf %103, %153 : vector<8x1xf32>
    %155 = math.exp %154 : vector<8x1xf32>
    %156 = arith.subf %152, %153 : vector<8x1xf32>
    %157 = math.exp %156 : vector<8x1xf32>
    %158 = arith.mulf %155, %109 : vector<8x1xf32>
    %159 = arith.addf %158, %157 : vector<8x1xf32>
    %160 = vector.broadcast %155 : vector<8x1xf32> to vector<8x128xf32>
    %161 = arith.mulf %160, %114 : vector<8x128xf32>
    %162 = vector.broadcast %157 : vector<8x1xf32> to vector<8x128xf32>
    %163 = arith.mulf %162, %148 : vector<8x128xf32>
    %164 = arith.addf %161, %163 : vector<8x128xf32>
    %c3_i32 = arith.constant 3 : i32
    %165 = arith.index_cast %c3_i32 : i32 to index
    %c0_48 = arith.constant 0 : index
    %c0_49 = arith.constant 0 : index
    %166 = vector.load %arg10[%165, %c0_48, %c0_49] : memref<8x8x384xf32, #tpu.memory_space<vmem>>, vector<1x8x384xf32>
    %167 = vector.shape_cast %166 : vector<1x8x384xf32> to vector<8x384xf32>
    %168 = arith.truncf %148 : vector<8x128xf32> to vector<8x128xbf16>
    %c0_50 = arith.constant 0 : index
    %c0_51 = arith.constant 0 : index
    %169 = vector.load %arg4[%c0_50, %c0_51] : memref<128x384xbf16, #tpu.memory_space<vmem>>, vector<128x384xbf16>
    %cst_52 = arith.constant dense<0.000000e+00> : vector<8x384xf32>
    %170 = tpu.matmul %168, %169, %cst_52 {dimension_numbers = #tpu.dot_dimension_numbers<[1], [0], [0], [1], [0, 0, 1, 1], [], []>} : vector<8x128xbf16>, vector<128x384xbf16>, vector<8x384xf32> -> vector<8x384xf32>
    %171 = vector.extract_strided_slice %167 {offsets = [0, 0], sizes = [8, 128], strides = [1, 1]} : vector<8x384xf32> to vector<8x128xf32>
    %172 = vector.extract_strided_slice %170 {offsets = [0, 0], sizes = [8, 128], strides = [1, 1]} : vector<8x384xf32> to vector<8x128xf32>
    %173 = arith.addf %171, %172 : vector<8x128xf32>
    %174 = arith.negf %173 : vector<8x128xf32>
    %175 = math.exp %174 : vector<8x128xf32>
    %cst_53 = arith.constant 1.000000e+00 : f32
    %176 = vector.broadcast %cst_53 : f32 to vector<8x128xf32>
    %177 = arith.addf %176, %175 : vector<8x128xf32>
    %178 = arith.divf %176, %177 : vector<8x128xf32>
    %179 = vector.extract_strided_slice %167 {offsets = [0, 128], sizes = [8, 128], strides = [1, 1]} : vector<8x384xf32> to vector<8x128xf32>
    %180 = vector.extract_strided_slice %170 {offsets = [0, 128], sizes = [8, 128], strides = [1, 1]} : vector<8x384xf32> to vector<8x128xf32>
    %181 = arith.addf %179, %180 : vector<8x128xf32>
    %182 = arith.negf %181 : vector<8x128xf32>
    %183 = math.exp %182 : vector<8x128xf32>
    %cst_54 = arith.constant 1.000000e+00 : f32
    %184 = vector.broadcast %cst_54 : f32 to vector<8x128xf32>
    %185 = arith.addf %184, %183 : vector<8x128xf32>
    %186 = arith.divf %184, %185 : vector<8x128xf32>
    %187 = vector.extract_strided_slice %167 {offsets = [0, 256], sizes = [8, 128], strides = [1, 1]} : vector<8x384xf32> to vector<8x128xf32>
    %188 = vector.extract_strided_slice %170 {offsets = [0, 256], sizes = [8, 128], strides = [1, 1]} : vector<8x384xf32> to vector<8x128xf32>
    %189 = vector.broadcast %9 : vector<1x128xf32> to vector<8x128xf32>
    %190 = arith.addf %188, %189 : vector<8x128xf32>
    %191 = arith.mulf %178, %190 : vector<8x128xf32>
    %192 = arith.addf %187, %191 : vector<8x128xf32>
    %193 = math.tanh %192 : vector<8x128xf32>
    %cst_55 = arith.constant 1.000000e+00 : f32
    %194 = vector.broadcast %cst_55 : f32 to vector<8x128xf32>
    %195 = arith.subf %194, %186 : vector<8x128xf32>
    %196 = arith.mulf %195, %193 : vector<8x128xf32>
    %197 = arith.mulf %186, %148 : vector<8x128xf32>
    %198 = arith.addf %196, %197 : vector<8x128xf32>
    %199 = vector.broadcast %10 : vector<1x128xf32> to vector<8x128xf32>
    %200 = arith.mulf %198, %199 : vector<8x128xf32>
    %cst_56 = arith.constant dense<0.000000e+00> : vector<8xf32>
    %201 = vector.multi_reduction <add>, %200, %cst_56 [1] : vector<8x128xf32> to vector<8xf32>
    %202 = vector.shape_cast %201 : vector<8xf32> to vector<8x1xf32>
    %203 = arith.maximumf %153, %202 : vector<8x1xf32>
    %204 = arith.subf %153, %203 : vector<8x1xf32>
    %205 = math.exp %204 : vector<8x1xf32>
    %206 = arith.subf %202, %203 : vector<8x1xf32>
    %207 = math.exp %206 : vector<8x1xf32>
    %208 = arith.mulf %205, %159 : vector<8x1xf32>
    %209 = arith.addf %208, %207 : vector<8x1xf32>
    %210 = vector.broadcast %205 : vector<8x1xf32> to vector<8x128xf32>
    %211 = arith.mulf %210, %164 : vector<8x128xf32>
    %212 = vector.broadcast %207 : vector<8x1xf32> to vector<8x128xf32>
    %213 = arith.mulf %212, %198 : vector<8x128xf32>
    %214 = arith.addf %211, %213 : vector<8x128xf32>
    %c4_i32 = arith.constant 4 : i32
    %215 = arith.index_cast %c4_i32 : i32 to index
    %c0_57 = arith.constant 0 : index
    %c0_58 = arith.constant 0 : index
    %216 = vector.load %arg10[%215, %c0_57, %c0_58] : memref<8x8x384xf32, #tpu.memory_space<vmem>>, vector<1x8x384xf32>
    %217 = vector.shape_cast %216 : vector<1x8x384xf32> to vector<8x384xf32>
    %218 = arith.truncf %198 : vector<8x128xf32> to vector<8x128xbf16>
    %c0_59 = arith.constant 0 : index
    %c0_60 = arith.constant 0 : index
    %219 = vector.load %arg4[%c0_59, %c0_60] : memref<128x384xbf16, #tpu.memory_space<vmem>>, vector<128x384xbf16>
    %cst_61 = arith.constant dense<0.000000e+00> : vector<8x384xf32>
    %220 = tpu.matmul %218, %219, %cst_61 {dimension_numbers = #tpu.dot_dimension_numbers<[1], [0], [0], [1], [0, 0, 1, 1], [], []>} : vector<8x128xbf16>, vector<128x384xbf16>, vector<8x384xf32> -> vector<8x384xf32>
    %221 = vector.extract_strided_slice %217 {offsets = [0, 0], sizes = [8, 128], strides = [1, 1]} : vector<8x384xf32> to vector<8x128xf32>
    %222 = vector.extract_strided_slice %220 {offsets = [0, 0], sizes = [8, 128], strides = [1, 1]} : vector<8x384xf32> to vector<8x128xf32>
    %223 = arith.addf %221, %222 : vector<8x128xf32>
    %224 = arith.negf %223 : vector<8x128xf32>
    %225 = math.exp %224 : vector<8x128xf32>
    %cst_62 = arith.constant 1.000000e+00 : f32
    %226 = vector.broadcast %cst_62 : f32 to vector<8x128xf32>
    %227 = arith.addf %226, %225 : vector<8x128xf32>
    %228 = arith.divf %226, %227 : vector<8x128xf32>
    %229 = vector.extract_strided_slice %217 {offsets = [0, 128], sizes = [8, 128], strides = [1, 1]} : vector<8x384xf32> to vector<8x128xf32>
    %230 = vector.extract_strided_slice %220 {offsets = [0, 128], sizes = [8, 128], strides = [1, 1]} : vector<8x384xf32> to vector<8x128xf32>
    %231 = arith.addf %229, %230 : vector<8x128xf32>
    %232 = arith.negf %231 : vector<8x128xf32>
    %233 = math.exp %232 : vector<8x128xf32>
    %cst_63 = arith.constant 1.000000e+00 : f32
    %234 = vector.broadcast %cst_63 : f32 to vector<8x128xf32>
    %235 = arith.addf %234, %233 : vector<8x128xf32>
    %236 = arith.divf %234, %235 : vector<8x128xf32>
    %237 = vector.extract_strided_slice %217 {offsets = [0, 256], sizes = [8, 128], strides = [1, 1]} : vector<8x384xf32> to vector<8x128xf32>
    %238 = vector.extract_strided_slice %220 {offsets = [0, 256], sizes = [8, 128], strides = [1, 1]} : vector<8x384xf32> to vector<8x128xf32>
    %239 = vector.broadcast %9 : vector<1x128xf32> to vector<8x128xf32>
    %240 = arith.addf %238, %239 : vector<8x128xf32>
    %241 = arith.mulf %228, %240 : vector<8x128xf32>
    %242 = arith.addf %237, %241 : vector<8x128xf32>
    %243 = math.tanh %242 : vector<8x128xf32>
    %cst_64 = arith.constant 1.000000e+00 : f32
    %244 = vector.broadcast %cst_64 : f32 to vector<8x128xf32>
    %245 = arith.subf %244, %236 : vector<8x128xf32>
    %246 = arith.mulf %245, %243 : vector<8x128xf32>
    %247 = arith.mulf %236, %198 : vector<8x128xf32>
    %248 = arith.addf %246, %247 : vector<8x128xf32>
    %249 = vector.broadcast %10 : vector<1x128xf32> to vector<8x128xf32>
    %250 = arith.mulf %248, %249 : vector<8x128xf32>
    %cst_65 = arith.constant dense<0.000000e+00> : vector<8xf32>
    %251 = vector.multi_reduction <add>, %250, %cst_65 [1] : vector<8x128xf32> to vector<8xf32>
    %252 = vector.shape_cast %251 : vector<8xf32> to vector<8x1xf32>
    %253 = arith.maximumf %203, %252 : vector<8x1xf32>
    %254 = arith.subf %203, %253 : vector<8x1xf32>
    %255 = math.exp %254 : vector<8x1xf32>
    %256 = arith.subf %252, %253 : vector<8x1xf32>
    %257 = math.exp %256 : vector<8x1xf32>
    %258 = arith.mulf %255, %209 : vector<8x1xf32>
    %259 = arith.addf %258, %257 : vector<8x1xf32>
    %260 = vector.broadcast %255 : vector<8x1xf32> to vector<8x128xf32>
    %261 = arith.mulf %260, %214 : vector<8x128xf32>
    %262 = vector.broadcast %257 : vector<8x1xf32> to vector<8x128xf32>
    %263 = arith.mulf %262, %248 : vector<8x128xf32>
    %264 = arith.addf %261, %263 : vector<8x128xf32>
    %c5_i32 = arith.constant 5 : i32
    %265 = arith.index_cast %c5_i32 : i32 to index
    %c0_66 = arith.constant 0 : index
    %c0_67 = arith.constant 0 : index
    %266 = vector.load %arg10[%265, %c0_66, %c0_67] : memref<8x8x384xf32, #tpu.memory_space<vmem>>, vector<1x8x384xf32>
    %267 = vector.shape_cast %266 : vector<1x8x384xf32> to vector<8x384xf32>
    %268 = arith.truncf %248 : vector<8x128xf32> to vector<8x128xbf16>
    %c0_68 = arith.constant 0 : index
    %c0_69 = arith.constant 0 : index
    %269 = vector.load %arg4[%c0_68, %c0_69] : memref<128x384xbf16, #tpu.memory_space<vmem>>, vector<128x384xbf16>
    %cst_70 = arith.constant dense<0.000000e+00> : vector<8x384xf32>
    %270 = tpu.matmul %268, %269, %cst_70 {dimension_numbers = #tpu.dot_dimension_numbers<[1], [0], [0], [1], [0, 0, 1, 1], [], []>} : vector<8x128xbf16>, vector<128x384xbf16>, vector<8x384xf32> -> vector<8x384xf32>
    %271 = vector.extract_strided_slice %267 {offsets = [0, 0], sizes = [8, 128], strides = [1, 1]} : vector<8x384xf32> to vector<8x128xf32>
    %272 = vector.extract_strided_slice %270 {offsets = [0, 0], sizes = [8, 128], strides = [1, 1]} : vector<8x384xf32> to vector<8x128xf32>
    %273 = arith.addf %271, %272 : vector<8x128xf32>
    %274 = arith.negf %273 : vector<8x128xf32>
    %275 = math.exp %274 : vector<8x128xf32>
    %cst_71 = arith.constant 1.000000e+00 : f32
    %276 = vector.broadcast %cst_71 : f32 to vector<8x128xf32>
    %277 = arith.addf %276, %275 : vector<8x128xf32>
    %278 = arith.divf %276, %277 : vector<8x128xf32>
    %279 = vector.extract_strided_slice %267 {offsets = [0, 128], sizes = [8, 128], strides = [1, 1]} : vector<8x384xf32> to vector<8x128xf32>
    %280 = vector.extract_strided_slice %270 {offsets = [0, 128], sizes = [8, 128], strides = [1, 1]} : vector<8x384xf32> to vector<8x128xf32>
    %281 = arith.addf %279, %280 : vector<8x128xf32>
    %282 = arith.negf %281 : vector<8x128xf32>
    %283 = math.exp %282 : vector<8x128xf32>
    %cst_72 = arith.constant 1.000000e+00 : f32
    %284 = vector.broadcast %cst_72 : f32 to vector<8x128xf32>
    %285 = arith.addf %284, %283 : vector<8x128xf32>
    %286 = arith.divf %284, %285 : vector<8x128xf32>
    %287 = vector.extract_strided_slice %267 {offsets = [0, 256], sizes = [8, 128], strides = [1, 1]} : vector<8x384xf32> to vector<8x128xf32>
    %288 = vector.extract_strided_slice %270 {offsets = [0, 256], sizes = [8, 128], strides = [1, 1]} : vector<8x384xf32> to vector<8x128xf32>
    %289 = vector.broadcast %9 : vector<1x128xf32> to vector<8x128xf32>
    %290 = arith.addf %288, %289 : vector<8x128xf32>
    %291 = arith.mulf %278, %290 : vector<8x128xf32>
    %292 = arith.addf %287, %291 : vector<8x128xf32>
    %293 = math.tanh %292 : vector<8x128xf32>
    %cst_73 = arith.constant 1.000000e+00 : f32
    %294 = vector.broadcast %cst_73 : f32 to vector<8x128xf32>
    %295 = arith.subf %294, %286 : vector<8x128xf32>
    %296 = arith.mulf %295, %293 : vector<8x128xf32>
    %297 = arith.mulf %286, %248 : vector<8x128xf32>
    %298 = arith.addf %296, %297 : vector<8x128xf32>
    %299 = vector.broadcast %10 : vector<1x128xf32> to vector<8x128xf32>
    %300 = arith.mulf %298, %299 : vector<8x128xf32>
    %cst_74 = arith.constant dense<0.000000e+00> : vector<8xf32>
    %301 = vector.multi_reduction <add>, %300, %cst_74 [1] : vector<8x128xf32> to vector<8xf32>
    %302 = vector.shape_cast %301 : vector<8xf32> to vector<8x1xf32>
    %303 = arith.maximumf %253, %302 : vector<8x1xf32>
    %304 = arith.subf %253, %303 : vector<8x1xf32>
    %305 = math.exp %304 : vector<8x1xf32>
    %306 = arith.subf %302, %303 : vector<8x1xf32>
    %307 = math.exp %306 : vector<8x1xf32>
    %308 = arith.mulf %305, %259 : vector<8x1xf32>
    %309 = arith.addf %308, %307 : vector<8x1xf32>
    %310 = vector.broadcast %305 : vector<8x1xf32> to vector<8x128xf32>
    %311 = arith.mulf %310, %264 : vector<8x128xf32>
    %312 = vector.broadcast %307 : vector<8x1xf32> to vector<8x128xf32>
    %313 = arith.mulf %312, %298 : vector<8x128xf32>
    %314 = arith.addf %311, %313 : vector<8x128xf32>
    %c6_i32 = arith.constant 6 : i32
    %315 = arith.index_cast %c6_i32 : i32 to index
    %c0_75 = arith.constant 0 : index
    %c0_76 = arith.constant 0 : index
    %316 = vector.load %arg10[%315, %c0_75, %c0_76] : memref<8x8x384xf32, #tpu.memory_space<vmem>>, vector<1x8x384xf32>
    %317 = vector.shape_cast %316 : vector<1x8x384xf32> to vector<8x384xf32>
    %318 = arith.truncf %298 : vector<8x128xf32> to vector<8x128xbf16>
    %c0_77 = arith.constant 0 : index
    %c0_78 = arith.constant 0 : index
    %319 = vector.load %arg4[%c0_77, %c0_78] : memref<128x384xbf16, #tpu.memory_space<vmem>>, vector<128x384xbf16>
    %cst_79 = arith.constant dense<0.000000e+00> : vector<8x384xf32>
    %320 = tpu.matmul %318, %319, %cst_79 {dimension_numbers = #tpu.dot_dimension_numbers<[1], [0], [0], [1], [0, 0, 1, 1], [], []>} : vector<8x128xbf16>, vector<128x384xbf16>, vector<8x384xf32> -> vector<8x384xf32>
    %321 = vector.extract_strided_slice %317 {offsets = [0, 0], sizes = [8, 128], strides = [1, 1]} : vector<8x384xf32> to vector<8x128xf32>
    %322 = vector.extract_strided_slice %320 {offsets = [0, 0], sizes = [8, 128], strides = [1, 1]} : vector<8x384xf32> to vector<8x128xf32>
    %323 = arith.addf %321, %322 : vector<8x128xf32>
    %324 = arith.negf %323 : vector<8x128xf32>
    %325 = math.exp %324 : vector<8x128xf32>
    %cst_80 = arith.constant 1.000000e+00 : f32
    %326 = vector.broadcast %cst_80 : f32 to vector<8x128xf32>
    %327 = arith.addf %326, %325 : vector<8x128xf32>
    %328 = arith.divf %326, %327 : vector<8x128xf32>
    %329 = vector.extract_strided_slice %317 {offsets = [0, 128], sizes = [8, 128], strides = [1, 1]} : vector<8x384xf32> to vector<8x128xf32>
    %330 = vector.extract_strided_slice %320 {offsets = [0, 128], sizes = [8, 128], strides = [1, 1]} : vector<8x384xf32> to vector<8x128xf32>
    %331 = arith.addf %329, %330 : vector<8x128xf32>
    %332 = arith.negf %331 : vector<8x128xf32>
    %333 = math.exp %332 : vector<8x128xf32>
    %cst_81 = arith.constant 1.000000e+00 : f32
    %334 = vector.broadcast %cst_81 : f32 to vector<8x128xf32>
    %335 = arith.addf %334, %333 : vector<8x128xf32>
    %336 = arith.divf %334, %335 : vector<8x128xf32>
    %337 = vector.extract_strided_slice %317 {offsets = [0, 256], sizes = [8, 128], strides = [1, 1]} : vector<8x384xf32> to vector<8x128xf32>
    %338 = vector.extract_strided_slice %320 {offsets = [0, 256], sizes = [8, 128], strides = [1, 1]} : vector<8x384xf32> to vector<8x128xf32>
    %339 = vector.broadcast %9 : vector<1x128xf32> to vector<8x128xf32>
    %340 = arith.addf %338, %339 : vector<8x128xf32>
    %341 = arith.mulf %328, %340 : vector<8x128xf32>
    %342 = arith.addf %337, %341 : vector<8x128xf32>
    %343 = math.tanh %342 : vector<8x128xf32>
    %cst_82 = arith.constant 1.000000e+00 : f32
    %344 = vector.broadcast %cst_82 : f32 to vector<8x128xf32>
    %345 = arith.subf %344, %336 : vector<8x128xf32>
    %346 = arith.mulf %345, %343 : vector<8x128xf32>
    %347 = arith.mulf %336, %298 : vector<8x128xf32>
    %348 = arith.addf %346, %347 : vector<8x128xf32>
    %349 = vector.broadcast %10 : vector<1x128xf32> to vector<8x128xf32>
    %350 = arith.mulf %348, %349 : vector<8x128xf32>
    %cst_83 = arith.constant dense<0.000000e+00> : vector<8xf32>
    %351 = vector.multi_reduction <add>, %350, %cst_83 [1] : vector<8x128xf32> to vector<8xf32>
    %352 = vector.shape_cast %351 : vector<8xf32> to vector<8x1xf32>
    %353 = arith.maximumf %303, %352 : vector<8x1xf32>
    %354 = arith.subf %303, %353 : vector<8x1xf32>
    %355 = math.exp %354 : vector<8x1xf32>
    %356 = arith.subf %352, %353 : vector<8x1xf32>
    %357 = math.exp %356 : vector<8x1xf32>
    %358 = arith.mulf %355, %309 : vector<8x1xf32>
    %359 = arith.addf %358, %357 : vector<8x1xf32>
    %360 = vector.broadcast %355 : vector<8x1xf32> to vector<8x128xf32>
    %361 = arith.mulf %360, %314 : vector<8x128xf32>
    %362 = vector.broadcast %357 : vector<8x1xf32> to vector<8x128xf32>
    %363 = arith.mulf %362, %348 : vector<8x128xf32>
    %364 = arith.addf %361, %363 : vector<8x128xf32>
    %c7_i32 = arith.constant 7 : i32
    %365 = arith.index_cast %c7_i32 : i32 to index
    %c0_84 = arith.constant 0 : index
    %c0_85 = arith.constant 0 : index
    %366 = vector.load %arg10[%365, %c0_84, %c0_85] : memref<8x8x384xf32, #tpu.memory_space<vmem>>, vector<1x8x384xf32>
    %367 = vector.shape_cast %366 : vector<1x8x384xf32> to vector<8x384xf32>
    %368 = arith.truncf %348 : vector<8x128xf32> to vector<8x128xbf16>
    %c0_86 = arith.constant 0 : index
    %c0_87 = arith.constant 0 : index
    %369 = vector.load %arg4[%c0_86, %c0_87] : memref<128x384xbf16, #tpu.memory_space<vmem>>, vector<128x384xbf16>
    %cst_88 = arith.constant dense<0.000000e+00> : vector<8x384xf32>
    %370 = tpu.matmul %368, %369, %cst_88 {dimension_numbers = #tpu.dot_dimension_numbers<[1], [0], [0], [1], [0, 0, 1, 1], [], []>} : vector<8x128xbf16>, vector<128x384xbf16>, vector<8x384xf32> -> vector<8x384xf32>
    %371 = vector.extract_strided_slice %367 {offsets = [0, 0], sizes = [8, 128], strides = [1, 1]} : vector<8x384xf32> to vector<8x128xf32>
    %372 = vector.extract_strided_slice %370 {offsets = [0, 0], sizes = [8, 128], strides = [1, 1]} : vector<8x384xf32> to vector<8x128xf32>
    %373 = arith.addf %371, %372 : vector<8x128xf32>
    %374 = arith.negf %373 : vector<8x128xf32>
    %375 = math.exp %374 : vector<8x128xf32>
    %cst_89 = arith.constant 1.000000e+00 : f32
    %376 = vector.broadcast %cst_89 : f32 to vector<8x128xf32>
    %377 = arith.addf %376, %375 : vector<8x128xf32>
    %378 = arith.divf %376, %377 : vector<8x128xf32>
    %379 = vector.extract_strided_slice %367 {offsets = [0, 128], sizes = [8, 128], strides = [1, 1]} : vector<8x384xf32> to vector<8x128xf32>
    %380 = vector.extract_strided_slice %370 {offsets = [0, 128], sizes = [8, 128], strides = [1, 1]} : vector<8x384xf32> to vector<8x128xf32>
    %381 = arith.addf %379, %380 : vector<8x128xf32>
    %382 = arith.negf %381 : vector<8x128xf32>
    %383 = math.exp %382 : vector<8x128xf32>
    %cst_90 = arith.constant 1.000000e+00 : f32
    %384 = vector.broadcast %cst_90 : f32 to vector<8x128xf32>
    %385 = arith.addf %384, %383 : vector<8x128xf32>
    %386 = arith.divf %384, %385 : vector<8x128xf32>
    %387 = vector.extract_strided_slice %367 {offsets = [0, 256], sizes = [8, 128], strides = [1, 1]} : vector<8x384xf32> to vector<8x128xf32>
    %388 = vector.extract_strided_slice %370 {offsets = [0, 256], sizes = [8, 128], strides = [1, 1]} : vector<8x384xf32> to vector<8x128xf32>
    %389 = vector.broadcast %9 : vector<1x128xf32> to vector<8x128xf32>
    %390 = arith.addf %388, %389 : vector<8x128xf32>
    %391 = arith.mulf %378, %390 : vector<8x128xf32>
    %392 = arith.addf %387, %391 : vector<8x128xf32>
    %393 = math.tanh %392 : vector<8x128xf32>
    %cst_91 = arith.constant 1.000000e+00 : f32
    %394 = vector.broadcast %cst_91 : f32 to vector<8x128xf32>
    %395 = arith.subf %394, %386 : vector<8x128xf32>
    %396 = arith.mulf %395, %393 : vector<8x128xf32>
    %397 = arith.mulf %386, %348 : vector<8x128xf32>
    %398 = arith.addf %396, %397 : vector<8x128xf32>
    %399 = vector.broadcast %10 : vector<1x128xf32> to vector<8x128xf32>
    %400 = arith.mulf %398, %399 : vector<8x128xf32>
    %cst_92 = arith.constant dense<0.000000e+00> : vector<8xf32>
    %401 = vector.multi_reduction <add>, %400, %cst_92 [1] : vector<8x128xf32> to vector<8xf32>
    %402 = vector.shape_cast %401 : vector<8xf32> to vector<8x1xf32>
    %403 = arith.maximumf %353, %402 : vector<8x1xf32>
    %404 = arith.subf %353, %403 : vector<8x1xf32>
    %405 = math.exp %404 : vector<8x1xf32>
    %406 = arith.subf %402, %403 : vector<8x1xf32>
    %407 = math.exp %406 : vector<8x1xf32>
    %408 = arith.mulf %405, %359 : vector<8x1xf32>
    %409 = arith.addf %408, %407 : vector<8x1xf32>
    %410 = vector.broadcast %405 : vector<8x1xf32> to vector<8x128xf32>
    %411 = arith.mulf %410, %364 : vector<8x128xf32>
    %412 = vector.broadcast %407 : vector<8x1xf32> to vector<8x128xf32>
    %413 = arith.mulf %412, %398 : vector<8x128xf32>
    %414 = arith.addf %411, %413 : vector<8x128xf32>
    %c8_i32 = arith.constant 8 : i32
    %c0_93 = arith.constant 0 : index
    %c0_94 = arith.constant 0 : index
    %415 = vector.load %arg11[%c0_93, %c0_94] : memref<8x128xf32, #tpu.memory_space<vmem>>, vector<8x128xf32>
    tpu.vector_store %arg11[%c0_93, %c0_94], %398 {strides = array<i32>} : memref<8x128xf32, #tpu.memory_space<vmem>>, vector<8x128xf32>,
    %c0_95 = arith.constant 0 : index
    %c0_96 = arith.constant 0 : index
    %416 = vector.load %arg12[%c0_95, %c0_96] : memref<8x1xf32, #tpu.memory_space<vmem>>, vector<8x1xf32>
    tpu.vector_store %arg12[%c0_95, %c0_96], %403 {strides = array<i32>} : memref<8x1xf32, #tpu.memory_space<vmem>>, vector<8x1xf32>,
    %c0_97 = arith.constant 0 : index
    %c0_98 = arith.constant 0 : index
    %417 = vector.load %arg13[%c0_97, %c0_98] : memref<8x1xf32, #tpu.memory_space<vmem>>, vector<8x1xf32>
    tpu.vector_store %arg13[%c0_97, %c0_98], %409 {strides = array<i32>} : memref<8x1xf32, #tpu.memory_space<vmem>>, vector<8x1xf32>,
    %c0_99 = arith.constant 0 : index
    %c0_100 = arith.constant 0 : index
    %418 = vector.load %arg14[%c0_99, %c0_100] : memref<8x128xf32, #tpu.memory_space<vmem>>, vector<8x128xf32>
    tpu.vector_store %arg14[%c0_99, %c0_100], %414 {strides = array<i32>} : memref<8x128xf32, #tpu.memory_space<vmem>>, vector<8x128xf32>,
    %c0_i32_101 = arith.constant 0 : i32
    %419 = arith.cmpi eq, %arg1, %c0_i32_101 : i32
    %420 = arith.extui %419 : i1 to i32
    %c0_i32_102 = arith.constant 0 : i32
    %421 = arith.cmpi ne, %420, %c0_i32_102 : i32
    scf.if %421 {
      %cst_103 = arith.constant 1.000000e+00 : f32
      %422 = vector.broadcast %cst_103 : f32 to vector<8x1xf32>
      %423 = arith.divf %422, %409 : vector<8x1xf32>
      %424 = vector.broadcast %423 : vector<8x1xf32> to vector<8x128xf32>
      %425 = arith.mulf %414, %424 : vector<8x128xf32>
      %c0_104 = arith.constant 0 : index
      %c0_105 = arith.constant 0 : index
      %426 = vector.load %arg7[%c0_104, %c0_105] : memref<128x128xf32, #tpu.memory_space<vmem>>, vector<128x128xf32>
      %cst_106 = arith.constant dense<0.000000e+00> : vector<8x128xf32>
      %427 = tpu.matmul %425, %426, %cst_106 {dimension_numbers = #tpu.dot_dimension_numbers<[1], [0], [0], [1], [0, 0, 1, 1], [], []>} : vector<8x128xf32>, vector<128x128xf32>, vector<8x128xf32> -> vector<8x128xf32>
      %c0_107 = arith.constant 0 : index
      %c0_108 = arith.constant 0 : index
      %428 = vector.load %arg8[%c0_107, %c0_108] : memref<1x128xf32, #tpu.memory_space<vmem>>, vector<1x128xf32>
      %429 = vector.broadcast %428 : vector<1x128xf32> to vector<8x128xf32>
      %430 = arith.addf %427, %429 : vector<8x128xf32>
      %c0_109 = arith.constant 0 : index
      %c0_110 = arith.constant 0 : index
      %431 = vector.load %arg9[%c0_109, %c0_110] : memref<8x128xf32, #tpu.memory_space<vmem>>, vector<8x128xf32>
      tpu.vector_store %arg9[%c0_109, %c0_110], %430 {strides = array<i32>} : memref<8x128xf32, #tpu.memory_space<vmem>>, vector<8x128xf32>,
    } else {
    }
    return
  }
  func.func @transform_0(%arg0: i32, %arg1: i32) -> (i32, i32, i32) {
    %c0_i32 = arith.constant 0 : i32
    %c0_i32_0 = arith.constant 0 : i32
    return %arg1, %arg0, %c0_i32 : i32, i32, i32
  }
  func.func @transform_1(%arg0: i32, %arg1: i32) -> (i32, i32) {
    %c0_i32 = arith.constant 0 : i32
    %c0_i32_0 = arith.constant 0 : i32
    %c0_i32_1 = arith.constant 0 : i32
    return %c0_i32, %c0_i32_0 : i32, i32
  }
  func.func @transform_2(%arg0: i32, %arg1: i32) -> (i32, i32) {
    %c0_i32 = arith.constant 0 : i32
    %c0_i32_0 = arith.constant 0 : i32
    %c0_i32_1 = arith.constant 0 : i32
    return %c0_i32, %c0_i32_0 : i32, i32
  }
  func.func @transform_3(%arg0: i32, %arg1: i32) -> (i32, i32) {
    %c0_i32 = arith.constant 0 : i32
    %c0_i32_0 = arith.constant 0 : i32
    %c0_i32_1 = arith.constant 0 : i32
    return %c0_i32, %c0_i32_0 : i32, i32
  }
  func.func @transform_4(%arg0: i32, %arg1: i32) -> (i32, i32) {
    %c0_i32 = arith.constant 0 : i32
    %c0_i32_0 = arith.constant 0 : i32
    %c0_i32_1 = arith.constant 0 : i32
    return %c0_i32, %c0_i32_0 : i32, i32
  }
  func.func @transform_5(%arg0: i32, %arg1: i32) -> (i32, i32) {
    %c0_i32 = arith.constant 0 : i32
    %c0_i32_0 = arith.constant 0 : i32
    %c0_i32_1 = arith.constant 0 : i32
    return %c0_i32, %c0_i32_0 : i32, i32
  }
  func.func @transform_6(%arg0: i32, %arg1: i32) -> (i32, i32) {
    %c0_i32 = arith.constant 0 : i32
    %c0_i32_0 = arith.constant 0 : i32
    %c0_i32_1 = arith.constant 0 : i32
    return %c0_i32, %c0_i32_0 : i32, i32
  }
  func.func @transform_7(%arg0: i32, %arg1: i32) -> (i32, i32) {
    %c0_i32 = arith.constant 0 : i32
    %c0_i32_0 = arith.constant 0 : i32
    return %arg0, %c0_i32 : i32, i32
  }
}

module attributes {stable_mosaic.version = 11 : i64} {
  func.func @_user_embedding_kernel(%arg0: i32, %arg1: i32, %arg2: memref<8x8x128xbf16, #tpu.memory_space<vmem>>, %arg3: memref<128x384xbf16, #tpu.memory_space<vmem>>, %arg4: memref<128x384xbf16, #tpu.memory_space<vmem>>, %arg5: memref<1x128xf32, #tpu.memory_space<vmem>>, %arg6: memref<1x128xf32, #tpu.memory_space<vmem>>, %arg7: memref<128x128xf32, #tpu.memory_space<vmem>>, %arg8: memref<1x128xf32, #tpu.memory_space<vmem>>, %arg9: memref<8x128xf32, #tpu.memory_space<vmem>>, %arg10: memref<8x8x384xf32, #tpu.memory_space<vmem>>, %arg11: memref<8x128xf32, #tpu.memory_space<vmem>>, %arg12: memref<8x1xf32, #tpu.memory_space<vmem>>, %arg13: memref<8x1xf32, #tpu.memory_space<vmem>>, %arg14: memref<8x128xf32, #tpu.memory_space<vmem>>) attributes {dimension_semantics = [#tpu.dimension_semantics<parallel>, #tpu.dimension_semantics<arbitrary>], iteration_bounds = array<i64: 1, 1>, scalar_prefetch = 0 : i64, scratch_operands = 5 : i64, tpu.core_type = #tpu.core_type<tc>, window_params = [{transform_indices = @transform_0, window_bounds = array<i64: 8, 8, 128>}, {pipeline_mode = #tpu.pipeline_mode<synchronous>, transform_indices = @transform_1, window_bounds = array<i64: 128, 384>}, {pipeline_mode = #tpu.pipeline_mode<synchronous>, transform_indices = @transform_2, window_bounds = array<i64: 128, 384>}, {pipeline_mode = #tpu.pipeline_mode<synchronous>, transform_indices = @transform_3, window_bounds = array<i64: 1, 128>}, {pipeline_mode = #tpu.pipeline_mode<synchronous>, transform_indices = @transform_4, window_bounds = array<i64: 1, 128>}, {pipeline_mode = #tpu.pipeline_mode<synchronous>, transform_indices = @transform_5, window_bounds = array<i64: 128, 128>}, {pipeline_mode = #tpu.pipeline_mode<synchronous>, transform_indices = @transform_6, window_bounds = array<i64: 1, 128>}, {transform_indices = @transform_7, window_bounds = array<i64: 8, 128>}]} {
    %c0_i32 = arith.constant 0 : i32
    %0 = arith.cmpi eq, %arg1, %c0_i32 : i32
    %1 = arith.extui %0 : i1 to i32
    %c0_i32_0 = arith.constant 0 : i32
    %2 = arith.cmpi ne, %1, %c0_i32_0 : i32
    scf.if %2 {
      %cst_103 = arith.constant 0.000000e+00 : f32
      %422 = vector.broadcast %cst_103 : f32 to vector<8x128xf32>
      %c0_104 = arith.constant 0 : index
      %c0_105 = arith.constant 0 : index
      %423 = vector.load %arg11[%c0_104, %c0_105] : memref<8x128xf32, #tpu.memory_space<vmem>>, vector<8x128xf32>
      tpu.vector_store %arg11[%c0_104, %c0_105], %422 {strides = array<i32>} : memref<8x128xf32, #tpu.memory_space<vmem>>, vector<8x128xf32>,
      %cst_106 = arith.constant 0xFF800000 : f32
      %424 = vector.broadcast %cst_106 : f32 to vector<8x1xf32>
      %c0_107 = arith.constant 0 : index
      %c0_108 = arith.constant 0 : index
      %425 = vector.load %arg12[%c0_107, %c0_108] : memref<8x1xf32, #tpu.memory_space<vmem>>, vector<8x1xf32>
      tpu.vector_store %arg12[%c0_107, %c0_108], %424 {strides = array<i32>} : memref<8x1xf32, #tpu.memory_space<vmem>>, vector<8x1xf32>,
      %cst_109 = arith.constant 0.000000e+00 : f32
      %426 = vector.broadcast %cst_109 : f32 to vector<8x1xf32>
      %c0_110 = arith.constant 0 : index
      %c0_111 = arith.constant 0 : index
      %427 = vector.load %arg13[%c0_110, %c0_111] : memref<8x1xf32, #tpu.memory_space<vmem>>, vector<8x1xf32>
      tpu.vector_store %arg13[%c0_110, %c0_111], %426 {strides = array<i32>} : memref<8x1xf32, #tpu.memory_space<vmem>>, vector<8x1xf32>,
      %cst_112 = arith.constant 0.000000e+00 : f32
      %428 = vector.broadcast %cst_112 : f32 to vector<8x128xf32>
      %c0_113 = arith.constant 0 : index
      %c0_114 = arith.constant 0 : index
      %429 = vector.load %arg14[%c0_113, %c0_114] : memref<8x128xf32, #tpu.memory_space<vmem>>, vector<8x128xf32>
      tpu.vector_store %arg14[%c0_113, %c0_114], %428 {strides = array<i32>} : memref<8x128xf32, #tpu.memory_space<vmem>>, vector<8x128xf32>,
    } else {
    }
    %c0 = arith.constant 0 : index
    %c0_1 = arith.constant 0 : index
    %c0_2 = arith.constant 0 : index
    %3 = vector.load %arg2[%c0, %c0_1, %c0_2] : memref<8x8x128xbf16, #tpu.memory_space<vmem>>, vector<8x8x128xbf16>
    %4 = vector.shape_cast %3 : vector<8x8x128xbf16> to vector<64x128xbf16>
    %c0_3 = arith.constant 0 : index
    %c0_4 = arith.constant 0 : index
    %5 = vector.load %arg3[%c0_3, %c0_4] : memref<128x384xbf16, #tpu.memory_space<vmem>>, vector<128x384xbf16>
    %cst = arith.constant dense<0.000000e+00> : vector<64x384xf32>
    %6 = tpu.matmul %4, %5, %cst {dimension_numbers = #tpu.dot_dimension_numbers<[1], [0], [0], [1], [0, 0, 1, 1], [], []>} : vector<64x128xbf16>, vector<128x384xbf16>, vector<64x384xf32> -> vector<64x384xf32>
    %7 = vector.shape_cast %6 : vector<64x384xf32> to vector<8x8x384xf32>
    %c0_5 = arith.constant 0 : index
    %c0_6 = arith.constant 0 : index
    %c0_7 = arith.constant 0 : index
    %8 = vector.load %arg10[%c0_5, %c0_6, %c0_7] : memref<8x8x384xf32, #tpu.memory_space<vmem>>, vector<8x8x384xf32>
    tpu.vector_store %arg10[%c0_5, %c0_6, %c0_7], %7 {strides = array<i32>} : memref<8x8x384xf32, #tpu.memory_space<vmem>>, vector<8x8x384xf32>,
    %c0_8 = arith.constant 0 : index
    %c0_9 = arith.constant 0 : index
    %9 = vector.load %arg5[%c0_8, %c0_9] : memref<1x128xf32, #tpu.memory_space<vmem>>, vector<1x128xf32>
    %c0_10 = arith.constant 0 : index
    %c0_11 = arith.constant 0 : index
    %10 = vector.load %arg6[%c0_10, %c0_11] : memref<1x128xf32, #tpu.memory_space<vmem>>, vector<1x128xf32>
    %c0_12 = arith.constant 0 : index
    %c0_13 = arith.constant 0 : index
    %11 = vector.load %arg11[%c0_12, %c0_13] : memref<8x128xf32, #tpu.memory_space<vmem>>, vector<8x128xf32>
    %c0_14 = arith.constant 0 : index
    %c0_15 = arith.constant 0 : index
    %12 = vector.load %arg12[%c0_14, %c0_15] : memref<8x1xf32, #tpu.memory_space<vmem>>, vector<8x1xf32>
    %c0_16 = arith.constant 0 : index
    %c0_17 = arith.constant 0 : index
    %13 = vector.load %arg13[%c0_16, %c0_17] : memref<8x1xf32, #tpu.memory_space<vmem>>, vector<8x1xf32>
    %c0_18 = arith.constant 0 : index
    %c0_19 = arith.constant 0 : index
    %14 = vector.load %arg14[%c0_18, %c0_19] : memref<8x128xf32, #tpu.memory_space<vmem>>, vector<8x128xf32>
    %c0_i32_20 = arith.constant 0 : i32
    %15 = arith.index_cast %c0_i32_20 : i32 to index
    %c0_21 = arith.constant 0 : index
    %c0_22 = arith.constant 0 : index
    %16 = vector.load %arg10[%15, %c0_21, %c0_22] : memref<8x8x384xf32, #tpu.memory_space<vmem>>, vector<1x8x384xf32>
    %17 = vector.shape_cast %16 : vector<1x8x384xf32> to vector<8x384xf32>
    %18 = arith.truncf %11 : vector<8x128xf32> to vector<8x128xbf16>
    %c0_23 = arith.constant 0 : index
    %c0_24 = arith.constant 0 : index
    %19 = vector.load %arg4[%c0_23, %c0_24] : memref<128x384xbf16, #tpu.memory_space<vmem>>, vector<128x384xbf16>
    %cst_25 = arith.constant dense<0.000000e+00> : vector<8x384xf32>
    %20 = tpu.matmul %18, %19, %cst_25 {dimension_numbers = #tpu.dot_dimension_numbers<[1], [0], [0], [1], [0, 0, 1, 1], [], []>} : vector<8x128xbf16>, vector<128x384xbf16>, vector<8x384xf32> -> vector<8x384xf32>
    %21 = vector.extract_strided_slice %17 {offsets = [0, 0], sizes = [8, 128], strides = [1, 1]} : vector<8x384xf32> to vector<8x128xf32>
    %22 = vector.extract_strided_slice %20 {offsets = [0, 0], sizes = [8, 128], strides = [1, 1]} : vector<8x384xf32> to vector<8x128xf32>
    %23 = arith.addf %21, %22 : vector<8x128xf32>
    %24 = arith.negf %23 : vector<8x128xf32>
    %25 = math.exp %24 : vector<8x128xf32>
    %cst_26 = arith.constant 1.000000e+00 : f32
    %26 = vector.broadcast %cst_26 : f32 to vector<8x128xf32>
    %27 = arith.addf %26, %25 : vector<8x128xf32>
    %28 = arith.divf %26, %27 : vector<8x128xf32>
    %29 = vector.extract_strided_slice %17 {offsets = [0, 128], sizes = [8, 128], strides = [1, 1]} : vector<8x384xf32> to vector<8x128xf32>
    %30 = vector.extract_strided_slice %20 {offsets = [0, 128], sizes = [8, 128], strides = [1, 1]} : vector<8x384xf32> to vector<8x128xf32>
    %31 = arith.addf %29, %30 : vector<8x128xf32>
    %32 = arith.negf %31 : vector<8x128xf32>
    %33 = math.exp %32 : vector<8x128xf32>
    %cst_27 = arith.constant 1.000000e+00 : f32
    %34 = vector.broadcast %cst_27 : f32 to vector<8x128xf32>
    %35 = arith.addf %34, %33 : vector<8x128xf32>
    %36 = arith.divf %34, %35 : vector<8x128xf32>
    %37 = vector.extract_strided_slice %17 {offsets = [0, 256], sizes = [8, 128], strides = [1, 1]} : vector<8x384xf32> to vector<8x128xf32>
    %38 = vector.extract_strided_slice %20 {offsets = [0, 256], sizes = [8, 128], strides = [1, 1]} : vector<8x384xf32> to vector<8x128xf32>
    %39 = vector.broadcast %9 : vector<1x128xf32> to vector<8x128xf32>
    %40 = arith.addf %38, %39 : vector<8x128xf32>
    %41 = arith.mulf %28, %40 : vector<8x128xf32>
    %42 = arith.addf %37, %41 : vector<8x128xf32>
    %43 = math.tanh %42 : vector<8x128xf32>
    %cst_28 = arith.constant 1.000000e+00 : f32
    %44 = vector.broadcast %cst_28 : f32 to vector<8x128xf32>
    %45 = arith.subf %44, %36 : vector<8x128xf32>
    %46 = arith.mulf %45, %43 : vector<8x128xf32>
    %47 = arith.mulf %36, %11 : vector<8x128xf32>
    %48 = arith.addf %46, %47 : vector<8x128xf32>
    %49 = vector.broadcast %10 : vector<1x128xf32> to vector<8x128xf32>
    %50 = arith.mulf %48, %49 : vector<8x128xf32>
    %cst_29 = arith.constant dense<0.000000e+00> : vector<8xf32>
    %51 = vector.multi_reduction <add>, %50, %cst_29 [1] : vector<8x128xf32> to vector<8xf32>
    %52 = vector.shape_cast %51 : vector<8xf32> to vector<8x1xf32>
    %53 = arith.maximumf %12, %52 : vector<8x1xf32>
    %54 = arith.subf %12, %53 : vector<8x1xf32>
    %55 = math.exp %54 : vector<8x1xf32>
    %56 = arith.subf %52, %53 : vector<8x1xf32>
    %57 = math.exp %56 : vector<8x1xf32>
    %58 = arith.mulf %55, %13 : vector<8x1xf32>
    %59 = arith.addf %58, %57 : vector<8x1xf32>
    %60 = vector.broadcast %55 : vector<8x1xf32> to vector<8x128xf32>
    %61 = arith.mulf %60, %14 : vector<8x128xf32>
    %62 = vector.broadcast %57 : vector<8x1xf32> to vector<8x128xf32>
    %63 = arith.mulf %62, %48 : vector<8x128xf32>
    %64 = arith.addf %61, %63 : vector<8x128xf32>
    %c1_i32 = arith.constant 1 : i32
    %65 = arith.index_cast %c1_i32 : i32 to index
    %c0_30 = arith.constant 0 : index
    %c0_31 = arith.constant 0 : index
    %66 = vector.load %arg10[%65, %c0_30, %c0_31] : memref<8x8x384xf32, #tpu.memory_space<vmem>>, vector<1x8x384xf32>
    %67 = vector.shape_cast %66 : vector<1x8x384xf32> to vector<8x384xf32>
    %68 = arith.truncf %48 : vector<8x128xf32> to vector<8x128xbf16>
    %c0_32 = arith.constant 0 : index
    %c0_33 = arith.constant 0 : index
    %69 = vector.load %arg4[%c0_32, %c0_33] : memref<128x384xbf16, #tpu.memory_space<vmem>>, vector<128x384xbf16>
    %cst_34 = arith.constant dense<0.000000e+00> : vector<8x384xf32>
    %70 = tpu.matmul %68, %69, %cst_34 {dimension_numbers = #tpu.dot_dimension_numbers<[1], [0], [0], [1], [0, 0, 1, 1], [], []>} : vector<8x128xbf16>, vector<128x384xbf16>, vector<8x384xf32> -> vector<8x384xf32>
    %71 = vector.extract_strided_slice %67 {offsets = [0, 0], sizes = [8, 128], strides = [1, 1]} : vector<8x384xf32> to vector<8x128xf32>
    %72 = vector.extract_strided_slice %70 {offsets = [0, 0], sizes = [8, 128], strides = [1, 1]} : vector<8x384xf32> to vector<8x128xf32>
    %73 = arith.addf %71, %72 : vector<8x128xf32>
    %74 = arith.negf %73 : vector<8x128xf32>
    %75 = math.exp %74 : vector<8x128xf32>
    %cst_35 = arith.constant 1.000000e+00 : f32
    %76 = vector.broadcast %cst_35 : f32 to vector<8x128xf32>
    %77 = arith.addf %76, %75 : vector<8x128xf32>
    %78 = arith.divf %76, %77 : vector<8x128xf32>
    %79 = vector.extract_strided_slice %67 {offsets = [0, 128], sizes = [8, 128], strides = [1, 1]} : vector<8x384xf32> to vector<8x128xf32>
    %80 = vector.extract_strided_slice %70 {offsets = [0, 128], sizes = [8, 128], strides = [1, 1]} : vector<8x384xf32> to vector<8x128xf32>
    %81 = arith.addf %79, %80 : vector<8x128xf32>
    %82 = arith.negf %81 : vector<8x128xf32>
    %83 = math.exp %82 : vector<8x128xf32>
    %cst_36 = arith.constant 1.000000e+00 : f32
    %84 = vector.broadcast %cst_36 : f32 to vector<8x128xf32>
    %85 = arith.addf %84, %83 : vector<8x128xf32>
    %86 = arith.divf %84, %85 : vector<8x128xf32>
    %87 = vector.extract_strided_slice %67 {offsets = [0, 256], sizes = [8, 128], strides = [1, 1]} : vector<8x384xf32> to vector<8x128xf32>
    %88 = vector.extract_strided_slice %70 {offsets = [0, 256], sizes = [8, 128], strides = [1, 1]} : vector<8x384xf32> to vector<8x128xf32>
    %89 = vector.broadcast %9 : vector<1x128xf32> to vector<8x128xf32>
    %90 = arith.addf %88, %89 : vector<8x128xf32>
    %91 = arith.mulf %78, %90 : vector<8x128xf32>
    %92 = arith.addf %87, %91 : vector<8x128xf32>
    %93 = math.tanh %92 : vector<8x128xf32>
    %cst_37 = arith.constant 1.000000e+00 : f32
    %94 = vector.broadcast %cst_37 : f32 to vector<8x128xf32>
    %95 = arith.subf %94, %86 : vector<8x128xf32>
    %96 = arith.mulf %95, %93 : vector<8x128xf32>
    %97 = arith.mulf %86, %48 : vector<8x128xf32>
    %98 = arith.addf %96, %97 : vector<8x128xf32>
    %99 = vector.broadcast %10 : vector<1x128xf32> to vector<8x128xf32>
    %100 = arith.mulf %98, %99 : vector<8x128xf32>
    %cst_38 = arith.constant dense<0.000000e+00> : vector<8xf32>
    %101 = vector.multi_reduction <add>, %100, %cst_38 [1] : vector<8x128xf32> to vector<8xf32>
    %102 = vector.shape_cast %101 : vector<8xf32> to vector<8x1xf32>
    %103 = arith.maximumf %53, %102 : vector<8x1xf32>
    %104 = arith.subf %53, %103 : vector<8x1xf32>
    %105 = math.exp %104 : vector<8x1xf32>
    %106 = arith.subf %102, %103 : vector<8x1xf32>
    %107 = math.exp %106 : vector<8x1xf32>
    %108 = arith.mulf %105, %59 : vector<8x1xf32>
    %109 = arith.addf %108, %107 : vector<8x1xf32>
    %110 = vector.broadcast %105 : vector<8x1xf32> to vector<8x128xf32>
    %111 = arith.mulf %110, %64 : vector<8x128xf32>
    %112 = vector.broadcast %107 : vector<8x1xf32> to vector<8x128xf32>
    %113 = arith.mulf %112, %98 : vector<8x128xf32>
    %114 = arith.addf %111, %113 : vector<8x128xf32>
    %c2_i32 = arith.constant 2 : i32
    %115 = arith.index_cast %c2_i32 : i32 to index
    %c0_39 = arith.constant 0 : index
    %c0_40 = arith.constant 0 : index
    %116 = vector.load %arg10[%115, %c0_39, %c0_40] : memref<8x8x384xf32, #tpu.memory_space<vmem>>, vector<1x8x384xf32>
    %117 = vector.shape_cast %116 : vector<1x8x384xf32> to vector<8x384xf32>
    %118 = arith.truncf %98 : vector<8x128xf32> to vector<8x128xbf16>
    %c0_41 = arith.constant 0 : index
    %c0_42 = arith.constant 0 : index
    %119 = vector.load %arg4[%c0_41, %c0_42] : memref<128x384xbf16, #tpu.memory_space<vmem>>, vector<128x384xbf16>
    %cst_43 = arith.constant dense<0.000000e+00> : vector<8x384xf32>
    %120 = tpu.matmul %118, %119, %cst_43 {dimension_numbers = #tpu.dot_dimension_numbers<[1], [0], [0], [1], [0, 0, 1, 1], [], []>} : vector<8x128xbf16>, vector<128x384xbf16>, vector<8x384xf32> -> vector<8x384xf32>
    %121 = vector.extract_strided_slice %117 {offsets = [0, 0], sizes = [8, 128], strides = [1, 1]} : vector<8x384xf32> to vector<8x128xf32>
    %122 = vector.extract_strided_slice %120 {offsets = [0, 0], sizes = [8, 128], strides = [1, 1]} : vector<8x384xf32> to vector<8x128xf32>
    %123 = arith.addf %121, %122 : vector<8x128xf32>
    %124 = arith.negf %123 : vector<8x128xf32>
    %125 = math.exp %124 : vector<8x128xf32>
    %cst_44 = arith.constant 1.000000e+00 : f32
    %126 = vector.broadcast %cst_44 : f32 to vector<8x128xf32>
    %127 = arith.addf %126, %125 : vector<8x128xf32>
    %128 = arith.divf %126, %127 : vector<8x128xf32>
    %129 = vector.extract_strided_slice %117 {offsets = [0, 128], sizes = [8, 128], strides = [1, 1]} : vector<8x384xf32> to vector<8x128xf32>
    %130 = vector.extract_strided_slice %120 {offsets = [0, 128], sizes = [8, 128], strides = [1, 1]} : vector<8x384xf32> to vector<8x128xf32>
    %131 = arith.addf %129, %130 : vector<8x128xf32>
    %132 = arith.negf %131 : vector<8x128xf32>
    %133 = math.exp %132 : vector<8x128xf32>
    %cst_45 = arith.constant 1.000000e+00 : f32
    %134 = vector.broadcast %cst_45 : f32 to vector<8x128xf32>
    %135 = arith.addf %134, %133 : vector<8x128xf32>
    %136 = arith.divf %134, %135 : vector<8x128xf32>
    %137 = vector.extract_strided_slice %117 {offsets = [0, 256], sizes = [8, 128], strides = [1, 1]} : vector<8x384xf32> to vector<8x128xf32>
    %138 = vector.extract_strided_slice %120 {offsets = [0, 256], sizes = [8, 128], strides = [1, 1]} : vector<8x384xf32> to vector<8x128xf32>
    %139 = vector.broadcast %9 : vector<1x128xf32> to vector<8x128xf32>
    %140 = arith.addf %138, %139 : vector<8x128xf32>
    %141 = arith.mulf %128, %140 : vector<8x128xf32>
    %142 = arith.addf %137, %141 : vector<8x128xf32>
    %143 = math.tanh %142 : vector<8x128xf32>
    %cst_46 = arith.constant 1.000000e+00 : f32
    %144 = vector.broadcast %cst_46 : f32 to vector<8x128xf32>
    %145 = arith.subf %144, %136 : vector<8x128xf32>
    %146 = arith.mulf %145, %143 : vector<8x128xf32>
    %147 = arith.mulf %136, %98 : vector<8x128xf32>
    %148 = arith.addf %146, %147 : vector<8x128xf32>
    %149 = vector.broadcast %10 : vector<1x128xf32> to vector<8x128xf32>
    %150 = arith.mulf %148, %149 : vector<8x128xf32>
    %cst_47 = arith.constant dense<0.000000e+00> : vector<8xf32>
    %151 = vector.multi_reduction <add>, %150, %cst_47 [1] : vector<8x128xf32> to vector<8xf32>
    %152 = vector.shape_cast %151 : vector<8xf32> to vector<8x1xf32>
    %153 = arith.maximumf %103, %152 : vector<8x1xf32>
    %154 = arith.subf %103, %153 : vector<8x1xf32>
    %155 = math.exp %154 : vector<8x1xf32>
    %156 = arith.subf %152, %153 : vector<8x1xf32>
    %157 = math.exp %156 : vector<8x1xf32>
    %158 = arith.mulf %155, %109 : vector<8x1xf32>
    %159 = arith.addf %158, %157 : vector<8x1xf32>
    %160 = vector.broadcast %155 : vector<8x1xf32> to vector<8x128xf32>
    %161 = arith.mulf %160, %114 : vector<8x128xf32>
    %162 = vector.broadcast %157 : vector<8x1xf32> to vector<8x128xf32>
    %163 = arith.mulf %162, %148 : vector<8x128xf32>
    %164 = arith.addf %161, %163 : vector<8x128xf32>
    %c3_i32 = arith.constant 3 : i32
    %165 = arith.index_cast %c3_i32 : i32 to index
    %c0_48 = arith.constant 0 : index
    %c0_49 = arith.constant 0 : index
    %166 = vector.load %arg10[%165, %c0_48, %c0_49] : memref<8x8x384xf32, #tpu.memory_space<vmem>>, vector<1x8x384xf32>
    %167 = vector.shape_cast %166 : vector<1x8x384xf32> to vector<8x384xf32>
    %168 = arith.truncf %148 : vector<8x128xf32> to vector<8x128xbf16>
    %c0_50 = arith.constant 0 : index
    %c0_51 = arith.constant 0 : index
    %169 = vector.load %arg4[%c0_50, %c0_51] : memref<128x384xbf16, #tpu.memory_space<vmem>>, vector<128x384xbf16>
    %cst_52 = arith.constant dense<0.000000e+00> : vector<8x384xf32>
    %170 = tpu.matmul %168, %169, %cst_52 {dimension_numbers = #tpu.dot_dimension_numbers<[1], [0], [0], [1], [0, 0, 1, 1], [], []>} : vector<8x128xbf16>, vector<128x384xbf16>, vector<8x384xf32> -> vector<8x384xf32>
    %171 = vector.extract_strided_slice %167 {offsets = [0, 0], sizes = [8, 128], strides = [1, 1]} : vector<8x384xf32> to vector<8x128xf32>
    %172 = vector.extract_strided_slice %170 {offsets = [0, 0], sizes = [8, 128], strides = [1, 1]} : vector<8x384xf32> to vector<8x128xf32>
    %173 = arith.addf %171, %172 : vector<8x128xf32>
    %174 = arith.negf %173 : vector<8x128xf32>
    %175 = math.exp %174 : vector<8x128xf32>
    %cst_53 = arith.constant 1.000000e+00 : f32
    %176 = vector.broadcast %cst_53 : f32 to vector<8x128xf32>
    %177 = arith.addf %176, %175 : vector<8x128xf32>
    %178 = arith.divf %176, %177 : vector<8x128xf32>
    %179 = vector.extract_strided_slice %167 {offsets = [0, 128], sizes = [8, 128], strides = [1, 1]} : vector<8x384xf32> to vector<8x128xf32>
    %180 = vector.extract_strided_slice %170 {offsets = [0, 128], sizes = [8, 128], strides = [1, 1]} : vector<8x384xf32> to vector<8x128xf32>
    %181 = arith.addf %179, %180 : vector<8x128xf32>
    %182 = arith.negf %181 : vector<8x128xf32>
    %183 = math.exp %182 : vector<8x128xf32>
    %cst_54 = arith.constant 1.000000e+00 : f32
    %184 = vector.broadcast %cst_54 : f32 to vector<8x128xf32>
    %185 = arith.addf %184, %183 : vector<8x128xf32>
    %186 = arith.divf %184, %185 : vector<8x128xf32>
    %187 = vector.extract_strided_slice %167 {offsets = [0, 256], sizes = [8, 128], strides = [1, 1]} : vector<8x384xf32> to vector<8x128xf32>
    %188 = vector.extract_strided_slice %170 {offsets = [0, 256], sizes = [8, 128], strides = [1, 1]} : vector<8x384xf32> to vector<8x128xf32>
    %189 = vector.broadcast %9 : vector<1x128xf32> to vector<8x128xf32>
    %190 = arith.addf %188, %189 : vector<8x128xf32>
    %191 = arith.mulf %178, %190 : vector<8x128xf32>
    %192 = arith.addf %187, %191 : vector<8x128xf32>
    %193 = math.tanh %192 : vector<8x128xf32>
    %cst_55 = arith.constant 1.000000e+00 : f32
    %194 = vector.broadcast %cst_55 : f32 to vector<8x128xf32>
    %195 = arith.subf %194, %186 : vector<8x128xf32>
    %196 = arith.mulf %195, %193 : vector<8x128xf32>
    %197 = arith.mulf %186, %148 : vector<8x128xf32>
    %198 = arith.addf %196, %197 : vector<8x128xf32>
    %199 = vector.broadcast %10 : vector<1x128xf32> to vector<8x128xf32>
    %200 = arith.mulf %198, %199 : vector<8x128xf32>
    %cst_56 = arith.constant dense<0.000000e+00> : vector<8xf32>
    %201 = vector.multi_reduction <add>, %200, %cst_56 [1] : vector<8x128xf32> to vector<8xf32>
    %202 = vector.shape_cast %201 : vector<8xf32> to vector<8x1xf32>
    %203 = arith.maximumf %153, %202 : vector<8x1xf32>
    %204 = arith.subf %153, %203 : vector<8x1xf32>
    %205 = math.exp %204 : vector<8x1xf32>
    %206 = arith.subf %202, %203 : vector<8x1xf32>
    %207 = math.exp %206 : vector<8x1xf32>
    %208 = arith.mulf %205, %159 : vector<8x1xf32>
    %209 = arith.addf %208, %207 : vector<8x1xf32>
    %210 = vector.broadcast %205 : vector<8x1xf32> to vector<8x128xf32>
    %211 = arith.mulf %210, %164 : vector<8x128xf32>
    %212 = vector.broadcast %207 : vector<8x1xf32> to vector<8x128xf32>
    %213 = arith.mulf %212, %198 : vector<8x128xf32>
    %214 = arith.addf %211, %213 : vector<8x128xf32>
    %c4_i32 = arith.constant 4 : i32
    %215 = arith.index_cast %c4_i32 : i32 to index
    %c0_57 = arith.constant 0 : index
    %c0_58 = arith.constant 0 : index
    %216 = vector.load %arg10[%215, %c0_57, %c0_58] : memref<8x8x384xf32, #tpu.memory_space<vmem>>, vector<1x8x384xf32>
    %217 = vector.shape_cast %216 : vector<1x8x384xf32> to vector<8x384xf32>
    %218 = arith.truncf %198 : vector<8x128xf32> to vector<8x128xbf16>
    %c0_59 = arith.constant 0 : index
    %c0_60 = arith.constant 0 : index
    %219 = vector.load %arg4[%c0_59, %c0_60] : memref<128x384xbf16, #tpu.memory_space<vmem>>, vector<128x384xbf16>
    %cst_61 = arith.constant dense<0.000000e+00> : vector<8x384xf32>
    %220 = tpu.matmul %218, %219, %cst_61 {dimension_numbers = #tpu.dot_dimension_numbers<[1], [0], [0], [1], [0, 0, 1, 1], [], []>} : vector<8x128xbf16>, vector<128x384xbf16>, vector<8x384xf32> -> vector<8x384xf32>
    %221 = vector.extract_strided_slice %217 {offsets = [0, 0], sizes = [8, 128], strides = [1, 1]} : vector<8x384xf32> to vector<8x128xf32>
    %222 = vector.extract_strided_slice %220 {offsets = [0, 0], sizes = [8, 128], strides = [1, 1]} : vector<8x384xf32> to vector<8x128xf32>
    %223 = arith.addf %221, %222 : vector<8x128xf32>
    %224 = arith.negf %223 : vector<8x128xf32>
    %225 = math.exp %224 : vector<8x128xf32>
    %cst_62 = arith.constant 1.000000e+00 : f32
    %226 = vector.broadcast %cst_62 : f32 to vector<8x128xf32>
    %227 = arith.addf %226, %225 : vector<8x128xf32>
    %228 = arith.divf %226, %227 : vector<8x128xf32>
    %229 = vector.extract_strided_slice %217 {offsets = [0, 128], sizes = [8, 128], strides = [1, 1]} : vector<8x384xf32> to vector<8x128xf32>
    %230 = vector.extract_strided_slice %220 {offsets = [0, 128], sizes = [8, 128], strides = [1, 1]} : vector<8x384xf32> to vector<8x128xf32>
    %231 = arith.addf %229, %230 : vector<8x128xf32>
    %232 = arith.negf %231 : vector<8x128xf32>
    %233 = math.exp %232 : vector<8x128xf32>
    %cst_63 = arith.constant 1.000000e+00 : f32
    %234 = vector.broadcast %cst_63 : f32 to vector<8x128xf32>
    %235 = arith.addf %234, %233 : vector<8x128xf32>
    %236 = arith.divf %234, %235 : vector<8x128xf32>
    %237 = vector.extract_strided_slice %217 {offsets = [0, 256], sizes = [8, 128], strides = [1, 1]} : vector<8x384xf32> to vector<8x128xf32>
    %238 = vector.extract_strided_slice %220 {offsets = [0, 256], sizes = [8, 128], strides = [1, 1]} : vector<8x384xf32> to vector<8x128xf32>
    %239 = vector.broadcast %9 : vector<1x128xf32> to vector<8x128xf32>
    %240 = arith.addf %238, %239 : vector<8x128xf32>
    %241 = arith.mulf %228, %240 : vector<8x128xf32>
    %242 = arith.addf %237, %241 : vector<8x128xf32>
    %243 = math.tanh %242 : vector<8x128xf32>
    %cst_64 = arith.constant 1.000000e+00 : f32
    %244 = vector.broadcast %cst_64 : f32 to vector<8x128xf32>
    %245 = arith.subf %244, %236 : vector<8x128xf32>
    %246 = arith.mulf %245, %243 : vector<8x128xf32>
    %247 = arith.mulf %236, %198 : vector<8x128xf32>
    %248 = arith.addf %246, %247 : vector<8x128xf32>
    %249 = vector.broadcast %10 : vector<1x128xf32> to vector<8x128xf32>
    %250 = arith.mulf %248, %249 : vector<8x128xf32>
    %cst_65 = arith.constant dense<0.000000e+00> : vector<8xf32>
    %251 = vector.multi_reduction <add>, %250, %cst_65 [1] : vector<8x128xf32> to vector<8xf32>
    %252 = vector.shape_cast %251 : vector<8xf32> to vector<8x1xf32>
    %253 = arith.maximumf %203, %252 : vector<8x1xf32>
    %254 = arith.subf %203, %253 : vector<8x1xf32>
    %255 = math.exp %254 : vector<8x1xf32>
    %256 = arith.subf %252, %253 : vector<8x1xf32>
    %257 = math.exp %256 : vector<8x1xf32>
    %258 = arith.mulf %255, %209 : vector<8x1xf32>
    %259 = arith.addf %258, %257 : vector<8x1xf32>
    %260 = vector.broadcast %255 : vector<8x1xf32> to vector<8x128xf32>
    %261 = arith.mulf %260, %214 : vector<8x128xf32>
    %262 = vector.broadcast %257 : vector<8x1xf32> to vector<8x128xf32>
    %263 = arith.mulf %262, %248 : vector<8x128xf32>
    %264 = arith.addf %261, %263 : vector<8x128xf32>
    %c5_i32 = arith.constant 5 : i32
    %265 = arith.index_cast %c5_i32 : i32 to index
    %c0_66 = arith.constant 0 : index
    %c0_67 = arith.constant 0 : index
    %266 = vector.load %arg10[%265, %c0_66, %c0_67] : memref<8x8x384xf32, #tpu.memory_space<vmem>>, vector<1x8x384xf32>
    %267 = vector.shape_cast %266 : vector<1x8x384xf32> to vector<8x384xf32>
    %268 = arith.truncf %248 : vector<8x128xf32> to vector<8x128xbf16>
    %c0_68 = arith.constant 0 : index
    %c0_69 = arith.constant 0 : index
    %269 = vector.load %arg4[%c0_68, %c0_69] : memref<128x384xbf16, #tpu.memory_space<vmem>>, vector<128x384xbf16>
    %cst_70 = arith.constant dense<0.000000e+00> : vector<8x384xf32>
    %270 = tpu.matmul %268, %269, %cst_70 {dimension_numbers = #tpu.dot_dimension_numbers<[1], [0], [0], [1], [0, 0, 1, 1], [], []>} : vector<8x128xbf16>, vector<128x384xbf16>, vector<8x384xf32> -> vector<8x384xf32>
    %271 = vector.extract_strided_slice %267 {offsets = [0, 0], sizes = [8, 128], strides = [1, 1]} : vector<8x384xf32> to vector<8x128xf32>
    %272 = vector.extract_strided_slice %270 {offsets = [0, 0], sizes = [8, 128], strides = [1, 1]} : vector<8x384xf32> to vector<8x128xf32>
    %273 = arith.addf %271, %272 : vector<8x128xf32>
    %274 = arith.negf %273 : vector<8x128xf32>
    %275 = math.exp %274 : vector<8x128xf32>
    %cst_71 = arith.constant 1.000000e+00 : f32
    %276 = vector.broadcast %cst_71 : f32 to vector<8x128xf32>
    %277 = arith.addf %276, %275 : vector<8x128xf32>
    %278 = arith.divf %276, %277 : vector<8x128xf32>
    %279 = vector.extract_strided_slice %267 {offsets = [0, 128], sizes = [8, 128], strides = [1, 1]} : vector<8x384xf32> to vector<8x128xf32>
    %280 = vector.extract_strided_slice %270 {offsets = [0, 128], sizes = [8, 128], strides = [1, 1]} : vector<8x384xf32> to vector<8x128xf32>
    %281 = arith.addf %279, %280 : vector<8x128xf32>
    %282 = arith.negf %281 : vector<8x128xf32>
    %283 = math.exp %282 : vector<8x128xf32>
    %cst_72 = arith.constant 1.000000e+00 : f32
    %284 = vector.broadcast %cst_72 : f32 to vector<8x128xf32>
    %285 = arith.addf %284, %283 : vector<8x128xf32>
    %286 = arith.divf %284, %285 : vector<8x128xf32>
    %287 = vector.extract_strided_slice %267 {offsets = [0, 256], sizes = [8, 128], strides = [1, 1]} : vector<8x384xf32> to vector<8x128xf32>
    %288 = vector.extract_strided_slice %270 {offsets = [0, 256], sizes = [8, 128], strides = [1, 1]} : vector<8x384xf32> to vector<8x128xf32>
    %289 = vector.broadcast %9 : vector<1x128xf32> to vector<8x128xf32>
    %290 = arith.addf %288, %289 : vector<8x128xf32>
    %291 = arith.mulf %278, %290 : vector<8x128xf32>
    %292 = arith.addf %287, %291 : vector<8x128xf32>
    %293 = math.tanh %292 : vector<8x128xf32>
    %cst_73 = arith.constant 1.000000e+00 : f32
    %294 = vector.broadcast %cst_73 : f32 to vector<8x128xf32>
    %295 = arith.subf %294, %286 : vector<8x128xf32>
    %296 = arith.mulf %295, %293 : vector<8x128xf32>
    %297 = arith.mulf %286, %248 : vector<8x128xf32>
    %298 = arith.addf %296, %297 : vector<8x128xf32>
    %299 = vector.broadcast %10 : vector<1x128xf32> to vector<8x128xf32>
    %300 = arith.mulf %298, %299 : vector<8x128xf32>
    %cst_74 = arith.constant dense<0.000000e+00> : vector<8xf32>
    %301 = vector.multi_reduction <add>, %300, %cst_74 [1] : vector<8x128xf32> to vector<8xf32>
    %302 = vector.shape_cast %301 : vector<8xf32> to vector<8x1xf32>
    %303 = arith.maximumf %253, %302 : vector<8x1xf32>
    %304 = arith.subf %253, %303 : vector<8x1xf32>
    %305 = math.exp %304 : vector<8x1xf32>
    %306 = arith.subf %302, %303 : vector<8x1xf32>
    %307 = math.exp %306 : vector<8x1xf32>
    %308 = arith.mulf %305, %259 : vector<8x1xf32>
    %309 = arith.addf %308, %307 : vector<8x1xf32>
    %310 = vector.broadcast %305 : vector<8x1xf32> to vector<8x128xf32>
    %311 = arith.mulf %310, %264 : vector<8x128xf32>
    %312 = vector.broadcast %307 : vector<8x1xf32> to vector<8x128xf32>
    %313 = arith.mulf %312, %298 : vector<8x128xf32>
    %314 = arith.addf %311, %313 : vector<8x128xf32>
    %c6_i32 = arith.constant 6 : i32
    %315 = arith.index_cast %c6_i32 : i32 to index
    %c0_75 = arith.constant 0 : index
    %c0_76 = arith.constant 0 : index
    %316 = vector.load %arg10[%315, %c0_75, %c0_76] : memref<8x8x384xf32, #tpu.memory_space<vmem>>, vector<1x8x384xf32>
    %317 = vector.shape_cast %316 : vector<1x8x384xf32> to vector<8x384xf32>
    %318 = arith.truncf %298 : vector<8x128xf32> to vector<8x128xbf16>
    %c0_77 = arith.constant 0 : index
    %c0_78 = arith.constant 0 : index
    %319 = vector.load %arg4[%c0_77, %c0_78] : memref<128x384xbf16, #tpu.memory_space<vmem>>, vector<128x384xbf16>
    %cst_79 = arith.constant dense<0.000000e+00> : vector<8x384xf32>
    %320 = tpu.matmul %318, %319, %cst_79 {dimension_numbers = #tpu.dot_dimension_numbers<[1], [0], [0], [1], [0, 0, 1, 1], [], []>} : vector<8x128xbf16>, vector<128x384xbf16>, vector<8x384xf32> -> vector<8x384xf32>
    %321 = vector.extract_strided_slice %317 {offsets = [0, 0], sizes = [8, 128], strides = [1, 1]} : vector<8x384xf32> to vector<8x128xf32>
    %322 = vector.extract_strided_slice %320 {offsets = [0, 0], sizes = [8, 128], strides = [1, 1]} : vector<8x384xf32> to vector<8x128xf32>
    %323 = arith.addf %321, %322 : vector<8x128xf32>
    %324 = arith.negf %323 : vector<8x128xf32>
    %325 = math.exp %324 : vector<8x128xf32>
    %cst_80 = arith.constant 1.000000e+00 : f32
    %326 = vector.broadcast %cst_80 : f32 to vector<8x128xf32>
    %327 = arith.addf %326, %325 : vector<8x128xf32>
    %328 = arith.divf %326, %327 : vector<8x128xf32>
    %329 = vector.extract_strided_slice %317 {offsets = [0, 128], sizes = [8, 128], strides = [1, 1]} : vector<8x384xf32> to vector<8x128xf32>
    %330 = vector.extract_strided_slice %320 {offsets = [0, 128], sizes = [8, 128], strides = [1, 1]} : vector<8x384xf32> to vector<8x128xf32>
    %331 = arith.addf %329, %330 : vector<8x128xf32>
    %332 = arith.negf %331 : vector<8x128xf32>
    %333 = math.exp %332 : vector<8x128xf32>
    %cst_81 = arith.constant 1.000000e+00 : f32
    %334 = vector.broadcast %cst_81 : f32 to vector<8x128xf32>
    %335 = arith.addf %334, %333 : vector<8x128xf32>
    %336 = arith.divf %334, %335 : vector<8x128xf32>
    %337 = vector.extract_strided_slice %317 {offsets = [0, 256], sizes = [8, 128], strides = [1, 1]} : vector<8x384xf32> to vector<8x128xf32>
    %338 = vector.extract_strided_slice %320 {offsets = [0, 256], sizes = [8, 128], strides = [1, 1]} : vector<8x384xf32> to vector<8x128xf32>
    %339 = vector.broadcast %9 : vector<1x128xf32> to vector<8x128xf32>
    %340 = arith.addf %338, %339 : vector<8x128xf32>
    %341 = arith.mulf %328, %340 : vector<8x128xf32>
    %342 = arith.addf %337, %341 : vector<8x128xf32>
    %343 = math.tanh %342 : vector<8x128xf32>
    %cst_82 = arith.constant 1.000000e+00 : f32
    %344 = vector.broadcast %cst_82 : f32 to vector<8x128xf32>
    %345 = arith.subf %344, %336 : vector<8x128xf32>
    %346 = arith.mulf %345, %343 : vector<8x128xf32>
    %347 = arith.mulf %336, %298 : vector<8x128xf32>
    %348 = arith.addf %346, %347 : vector<8x128xf32>
    %349 = vector.broadcast %10 : vector<1x128xf32> to vector<8x128xf32>
    %350 = arith.mulf %348, %349 : vector<8x128xf32>
    %cst_83 = arith.constant dense<0.000000e+00> : vector<8xf32>
    %351 = vector.multi_reduction <add>, %350, %cst_83 [1] : vector<8x128xf32> to vector<8xf32>
    %352 = vector.shape_cast %351 : vector<8xf32> to vector<8x1xf32>
    %353 = arith.maximumf %303, %352 : vector<8x1xf32>
    %354 = arith.subf %303, %353 : vector<8x1xf32>
    %355 = math.exp %354 : vector<8x1xf32>
    %356 = arith.subf %352, %353 : vector<8x1xf32>
    %357 = math.exp %356 : vector<8x1xf32>
    %358 = arith.mulf %355, %309 : vector<8x1xf32>
    %359 = arith.addf %358, %357 : vector<8x1xf32>
    %360 = vector.broadcast %355 : vector<8x1xf32> to vector<8x128xf32>
    %361 = arith.mulf %360, %314 : vector<8x128xf32>
    %362 = vector.broadcast %357 : vector<8x1xf32> to vector<8x128xf32>
    %363 = arith.mulf %362, %348 : vector<8x128xf32>
    %364 = arith.addf %361, %363 : vector<8x128xf32>
    %c7_i32 = arith.constant 7 : i32
    %365 = arith.index_cast %c7_i32 : i32 to index
    %c0_84 = arith.constant 0 : index
    %c0_85 = arith.constant 0 : index
    %366 = vector.load %arg10[%365, %c0_84, %c0_85] : memref<8x8x384xf32, #tpu.memory_space<vmem>>, vector<1x8x384xf32>
    %367 = vector.shape_cast %366 : vector<1x8x384xf32> to vector<8x384xf32>
    %368 = arith.truncf %348 : vector<8x128xf32> to vector<8x128xbf16>
    %c0_86 = arith.constant 0 : index
    %c0_87 = arith.constant 0 : index
    %369 = vector.load %arg4[%c0_86, %c0_87] : memref<128x384xbf16, #tpu.memory_space<vmem>>, vector<128x384xbf16>
    %cst_88 = arith.constant dense<0.000000e+00> : vector<8x384xf32>
    %370 = tpu.matmul %368, %369, %cst_88 {dimension_numbers = #tpu.dot_dimension_numbers<[1], [0], [0], [1], [0, 0, 1, 1], [], []>} : vector<8x128xbf16>, vector<128x384xbf16>, vector<8x384xf32> -> vector<8x384xf32>
    %371 = vector.extract_strided_slice %367 {offsets = [0, 0], sizes = [8, 128], strides = [1, 1]} : vector<8x384xf32> to vector<8x128xf32>
    %372 = vector.extract_strided_slice %370 {offsets = [0, 0], sizes = [8, 128], strides = [1, 1]} : vector<8x384xf32> to vector<8x128xf32>
    %373 = arith.addf %371, %372 : vector<8x128xf32>
    %374 = arith.negf %373 : vector<8x128xf32>
    %375 = math.exp %374 : vector<8x128xf32>
    %cst_89 = arith.constant 1.000000e+00 : f32
    %376 = vector.broadcast %cst_89 : f32 to vector<8x128xf32>
    %377 = arith.addf %376, %375 : vector<8x128xf32>
    %378 = arith.divf %376, %377 : vector<8x128xf32>
    %379 = vector.extract_strided_slice %367 {offsets = [0, 128], sizes = [8, 128], strides = [1, 1]} : vector<8x384xf32> to vector<8x128xf32>
    %380 = vector.extract_strided_slice %370 {offsets = [0, 128], sizes = [8, 128], strides = [1, 1]} : vector<8x384xf32> to vector<8x128xf32>
    %381 = arith.addf %379, %380 : vector<8x128xf32>
    %382 = arith.negf %381 : vector<8x128xf32>
    %383 = math.exp %382 : vector<8x128xf32>
    %cst_90 = arith.constant 1.000000e+00 : f32
    %384 = vector.broadcast %cst_90 : f32 to vector<8x128xf32>
    %385 = arith.addf %384, %383 : vector<8x128xf32>
    %386 = arith.divf %384, %385 : vector<8x128xf32>
    %387 = vector.extract_strided_slice %367 {offsets = [0, 256], sizes = [8, 128], strides = [1, 1]} : vector<8x384xf32> to vector<8x128xf32>
    %388 = vector.extract_strided_slice %370 {offsets = [0, 256], sizes = [8, 128], strides = [1, 1]} : vector<8x384xf32> to vector<8x128xf32>
    %389 = vector.broadcast %9 : vector<1x128xf32> to vector<8x128xf32>
    %390 = arith.addf %388, %389 : vector<8x128xf32>
    %391 = arith.mulf %378, %390 : vector<8x128xf32>
    %392 = arith.addf %387, %391 : vector<8x128xf32>
    %393 = math.tanh %392 : vector<8x128xf32>
    %cst_91 = arith.constant 1.000000e+00 : f32
    %394 = vector.broadcast %cst_91 : f32 to vector<8x128xf32>
    %395 = arith.subf %394, %386 : vector<8x128xf32>
    %396 = arith.mulf %395, %393 : vector<8x128xf32>
    %397 = arith.mulf %386, %348 : vector<8x128xf32>
    %398 = arith.addf %396, %397 : vector<8x128xf32>
    %399 = vector.broadcast %10 : vector<1x128xf32> to vector<8x128xf32>
    %400 = arith.mulf %398, %399 : vector<8x128xf32>
    %cst_92 = arith.constant dense<0.000000e+00> : vector<8xf32>
    %401 = vector.multi_reduction <add>, %400, %cst_92 [1] : vector<8x128xf32> to vector<8xf32>
    %402 = vector.shape_cast %401 : vector<8xf32> to vector<8x1xf32>
    %403 = arith.maximumf %353, %402 : vector<8x1xf32>
    %404 = arith.subf %353, %403 : vector<8x1xf32>
    %405 = math.exp %404 : vector<8x1xf32>
    %406 = arith.subf %402, %403 : vector<8x1xf32>
    %407 = math.exp %406 : vector<8x1xf32>
    %408 = arith.mulf %405, %359 : vector<8x1xf32>
    %409 = arith.addf %408, %407 : vector<8x1xf32>
    %410 = vector.broadcast %405 : vector<8x1xf32> to vector<8x128xf32>
    %411 = arith.mulf %410, %364 : vector<8x128xf32>
    %412 = vector.broadcast %407 : vector<8x1xf32> to vector<8x128xf32>
    %413 = arith.mulf %412, %398 : vector<8x128xf32>
    %414 = arith.addf %411, %413 : vector<8x128xf32>
    %c8_i32 = arith.constant 8 : i32
    %c0_93 = arith.constant 0 : index
    %c0_94 = arith.constant 0 : index
    %415 = vector.load %arg11[%c0_93, %c0_94] : memref<8x128xf32, #tpu.memory_space<vmem>>, vector<8x128xf32>
    tpu.vector_store %arg11[%c0_93, %c0_94], %398 {strides = array<i32>} : memref<8x128xf32, #tpu.memory_space<vmem>>, vector<8x128xf32>,
    %c0_95 = arith.constant 0 : index
    %c0_96 = arith.constant 0 : index
    %416 = vector.load %arg12[%c0_95, %c0_96] : memref<8x1xf32, #tpu.memory_space<vmem>>, vector<8x1xf32>
    tpu.vector_store %arg12[%c0_95, %c0_96], %403 {strides = array<i32>} : memref<8x1xf32, #tpu.memory_space<vmem>>, vector<8x1xf32>,
    %c0_97 = arith.constant 0 : index
    %c0_98 = arith.constant 0 : index
    %417 = vector.load %arg13[%c0_97, %c0_98] : memref<8x1xf32, #tpu.memory_space<vmem>>, vector<8x1xf32>
    tpu.vector_store %arg13[%c0_97, %c0_98], %409 {strides = array<i32>} : memref<8x1xf32, #tpu.memory_space<vmem>>, vector<8x1xf32>,
    %c0_99 = arith.constant 0 : index
    %c0_100 = arith.constant 0 : index
    %418 = vector.load %arg14[%c0_99, %c0_100] : memref<8x128xf32, #tpu.memory_space<vmem>>, vector<8x128xf32>
    tpu.vector_store %arg14[%c0_99, %c0_100], %414 {strides = array<i32>} : memref<8x128xf32, #tpu.memory_space<vmem>>, vector<8x128xf32>,
    %c0_i32_101 = arith.constant 0 : i32
    %419 = arith.cmpi eq, %arg1, %c0_i32_101 : i32
    %420 = arith.extui %419 : i1 to i32
    %c0_i32_102 = arith.constant 0 : i32
    %421 = arith.cmpi ne, %420, %c0_i32_102 : i32
    scf.if %421 {
      %cst_103 = arith.constant 1.000000e+00 : f32
      %422 = vector.broadcast %cst_103 : f32 to vector<8x1xf32>
      %423 = arith.divf %422, %409 : vector<8x1xf32>
      %424 = vector.broadcast %423 : vector<8x1xf32> to vector<8x128xf32>
      %425 = arith.mulf %414, %424 : vector<8x128xf32>
      %c0_104 = arith.constant 0 : index
      %c0_105 = arith.constant 0 : index
      %426 = vector.load %arg7[%c0_104, %c0_105] : memref<128x128xf32, #tpu.memory_space<vmem>>, vector<128x128xf32>
      %cst_106 = arith.constant dense<0.000000e+00> : vector<8x128xf32>
      %427 = tpu.matmul %425, %426, %cst_106 {dimension_numbers = #tpu.dot_dimension_numbers<[1], [0], [0], [1], [0, 0, 1, 1], [], []>} : vector<8x128xf32>, vector<128x128xf32>, vector<8x128xf32> -> vector<8x128xf32>
      %c0_107 = arith.constant 0 : index
      %c0_108 = arith.constant 0 : index
      %428 = vector.load %arg8[%c0_107, %c0_108] : memref<1x128xf32, #tpu.memory_space<vmem>>, vector<1x128xf32>
      %429 = vector.broadcast %428 : vector<1x128xf32> to vector<8x128xf32>
      %430 = arith.addf %427, %429 : vector<8x128xf32>
      %c0_109 = arith.constant 0 : index
      %c0_110 = arith.constant 0 : index
      %431 = vector.load %arg9[%c0_109, %c0_110] : memref<8x128xf32, #tpu.memory_space<vmem>>, vector<8x128xf32>
      tpu.vector_store %arg9[%c0_109, %c0_110], %430 {strides = array<i32>} : memref<8x128xf32, #tpu.memory_space<vmem>>, vector<8x128xf32>,
    } else {
    }
    return
  }
  func.func @transform_0(%arg0: i32, %arg1: i32) -> (i32, i32, i32) {
    %c0_i32 = arith.constant 0 : i32
    %c0_i32_0 = arith.constant 0 : i32
    return %arg1, %arg0, %c0_i32 : i32, i32, i32
  }
  func.func @transform_1(%arg0: i32, %arg1: i32) -> (i32, i32) {
    %c0_i32 = arith.constant 0 : i32
    %c0_i32_0 = arith.constant 0 : i32
    %c0_i32_1 = arith.constant 0 : i32
    return %c0_i32, %c0_i32_0 : i32, i32
  }
  func.func @transform_2(%arg0: i32, %arg1: i32) -> (i32, i32) {
    %c0_i32 = arith.constant 0 : i32
    %c0_i32_0 = arith.constant 0 : i32
    %c0_i32_1 = arith.constant 0 : i32
    return %c0_i32, %c0_i32_0 : i32, i32
  }
  func.func @transform_3(%arg0: i32, %arg1: i32) -> (i32, i32) {
    %c0_i32 = arith.constant 0 : i32
    %c0_i32_0 = arith.constant 0 : i32
    %c0_i32_1 = arith.constant 0 : i32
    return %c0_i32, %c0_i32_0 : i32, i32
  }
  func.func @transform_4(%arg0: i32, %arg1: i32) -> (i32, i32) {
    %c0_i32 = arith.constant 0 : i32
    %c0_i32_0 = arith.constant 0 : i32
    %c0_i32_1 = arith.constant 0 : i32
    return %c0_i32, %c0_i32_0 : i32, i32
  }
  func.func @transform_5(%arg0: i32, %arg1: i32) -> (i32, i32) {
    %c0_i32 = arith.constant 0 : i32
    %c0_i32_0 = arith.constant 0 : i32
    %c0_i32_1 = arith.constant 0 : i32
    return %c0_i32, %c0_i32_0 : i32, i32
  }
  func.func @transform_6(%arg0: i32, %arg1: i32) -> (i32, i32) {
    %c0_i32 = arith.constant 0 : i32
    %c0_i32_0 = arith.constant 0 : i32
    %c0_i32_1 = arith.constant 0 : i32
    return %c0_i32, %c0_i32_0 : i32, i32
  }
  func.func @transform_7(%arg0: i32, %arg1: i32) -> (i32, i32) {
    %c0_i32 = arith.constant 0 : i32
    %c0_i32_0 = arith.constant 0 : i32
    return %arg0, %c0_i32 : i32, i32
  }
}

</mosaic_0001>

<bundles_post_ra>
// kernel: tpu_custom_call.1
= control target key start
LH: loop header
LB: loop body
LE: loop exit
PB: predicated region body
PF: predicated region fallthrough
CT: control target
= control target key end

     0   :  { %12 = vsyncpa [#allocation8], 0  ;;  %s3166_s0 = inlined_call_operand.hbm [shape: bf16[8,8,128], index: 0, kind: input, shape index: {}]   ;;  %s3167_s1 = inlined_call_operand.hbm [shape: bf16[128,384], index: 1, kind: input, shape index: {}]   ;;  %s3168_s2 = inlined_call_operand.hbm [shape: bf16[128,384], index: 2, kind: input, shape index: {}]   ;;  %s3169_s3 = inlined_call_operand.vmem [shape: f32[1,128], index: 3, kind: input, shape index: {}]   ;;  %s3170_s4 = inlined_call_operand.vmem [shape: f32[1,128], index: 4, kind: input, shape index: {}]   ;;  %s3171_s5 = inlined_call_operand.hbm [shape: f32[128,128], index: 5, kind: input, shape index: {}]   ;;  %s3172_s6 = inlined_call_operand.vmem [shape: f32[1,128], index: 6, kind: input, shape index: {}]   ;;  %s3173_s7 = inlined_call_operand.hbm [shape: f32[8,128], index: 7, kind: output, shape index: {}]  }
   0x1   :  { %13 = vsyncpa [#allocation11], 0 }
   0x2   :  { %14 = vsyncpa [#allocation14], 0 }
   0x3   :  { %15 = vsyncpa [#allocation9], 0  ;;  %s2525_s24 = smov [#allocation10]  }
   0x4   :  { %s33_s25 = sshll.u32 %s2525_s24, 4  ;;  %s34_s25 = int_to_ptr.vmem [resolvable:$true] %s33_s25 }
   0x5   :  { %s2425_s26 = scalar_lea.vmem %s34_s25, 3072  ;;  %p2430_p1 = scmp.lt.s32.totalorder %s34_s25, %s34_s25 }
   0x6   :  { %p2426_p0 = scmp.ne.s32.totalorder %s34_s25, %s2425_s26  ;;  %p2431_p2 = scmp.lt.s32.totalorder %s2425_s26, %s2425_s26 }
   0x8   :  { %p2432_p3 = por %p2431_p2, %p2430_p1 }
   0xa   :  { %p2433_p4 = pnand %p2432_p3, %p2426_p0 }
   0xc   :  { %2436 = shalt.err (!%p2433_p4)
}
   0xd   :  { %s2526_s27 = smov 192   ;;  %s2527_s28 = smov 12  }
   0xe   :  { %39 = dma.hbm_to_vmem [thread:$0]  %s3167_s1, 3072, %s34_s25, [#allocation11], %s2526_s27, %s2526_s27, %s2527_s28  }
   0xf   :  { %s2528_s8 = smov [#allocation7]  }
  0x10   :  { %s21_s9 = sshll.u32 %s2528_s8, 4  ;;  %s22_s9 = int_to_ptr.vmem [resolvable:$true] %s21_s9 }
  0x11   :  { %s2445_s10 = scalar_lea.vmem %s22_s9, 512  ;;  %p2450_p6 = scmp.lt.s32.totalorder %s22_s9, %s22_s9 }
  0x12   :  { %p2446_p5 = scmp.ne.s32.totalorder %s22_s9, %s2445_s10  ;;  %p2451_p7 = scmp.lt.s32.totalorder %s2445_s10, %s2445_s10 }
  0x14   :  { %p2452_p8 = por %p2451_p7, %p2450_p6 }
  0x16   :  { %p2453_p9 = pnand %p2452_p8, %p2446_p5 }
  0x18   :  { %2456 = shalt.err (!%p2453_p9)
}
  0x19   :  { %s2529_s11 = smov 64   ;;  %s2530_s12 = smov 4  }
  0x1a   :  { %27 = dma.hbm_to_vmem [thread:$0]  %s3166_s0, 512, %s22_s9, [#allocation8], %s2529_s11, %s2529_s11, %s2530_s12  }
  0x1b   :  { %s2531_s15 = smov [#allocation12]   ;;  %s2532_s17 = smov [#allocation13]  }
  0x1c   :  { %s45_s16 = sshll.u32 %s2531_s15, 4  ;;  %s61_s1 = sshll.u32 %s2532_s17, 4  ;;  %s46_s16 = int_to_ptr.vmem [resolvable:$true] %s45_s16  ;;  %s62_s1 = int_to_ptr.vmem [resolvable:$true] %s61_s1 }
  0x1d   :  { %s2465_s18 = scalar_lea.vmem %s46_s16, 3072  ;;  %p2470_p11 = scmp.lt.s32.totalorder %s46_s16, %s46_s16 }
  0x1e   :  { %p2466_p10 = scmp.ne.s32.totalorder %s46_s16, %s2465_s18  ;;  %p2471_p12 = scmp.lt.s32.totalorder %s2465_s18, %s2465_s18 }
  0x20   :  { %p2472_p13 = por %p2471_p12, %p2470_p11 }
  0x22   :  { %p2473_p0 = pnand %p2472_p13, %p2466_p10 }
  0x24   :  { %2476 = shalt.err (!%p2473_p0)
}
  0x25   :  { %51 = dma.hbm_to_vmem [thread:$0]  %s3168_s2, 3072, %s46_s16, [#allocation11], %s2526_s27, %s2526_s27, %s2527_s28  }
  0x26   :  { %s2485_s0 = scalar_lea.vmem %s62_s1, 2048  ;;  %p2490_p2 = scmp.lt.s32.totalorder %s62_s1, %s62_s1 }
  0x27   :  { %p2486_p1 = scmp.ne.s32.totalorder %s62_s1, %s2485_s0  ;;  %p2491_p3 = scmp.lt.s32.totalorder %s2485_s0, %s2485_s0 }
  0x29   :  { %p2492_p4 = por %p2491_p3, %p2490_p2 }
  0x2b   :  { %p2493_p5 = pnand %p2492_p4, %p2486_p1 }
  0x2d   :  { %2496 = shalt.err (!%p2493_p5)
}
  0x2e   :  { %s2533_s21 = smov 128   ;;  %s2534_s22 = smov 8  }
  0x2f   :  { %67 = dma.hbm_to_vmem [thread:$0]  %s3171_s5, 2048, %s62_s1, [#allocation14], %s2533_s21, %s2533_s21, %s2534_s22  }
  0x30   :  { %2517 = dma.done.wait [#allocation8], 512  }
  0x31   :  { %2518 = vsyncadd [#allocation8], 4294966784 }
  0x32   :  { %2519 = dma.done.wait [#allocation11], 6144  }
  0x33   :  { %2520 = vsyncadd [#allocation11], 4294961152 }
  0x34   :  { %2521 = dma.done.wait [#allocation14], 2048  }
  0x35   :  { %2522 = vsyncadd [#allocation14], 4294965248  ;;  %v3174_v0 = vmov 0   ;;  %v2223_v1 = vld [vmem:[#allocation10 + $0xac] ss:$12 sps:$4 sm:$0xff]   ;;  %v2249_v12 = vld [vmem:[#allocation7] sm:$0xff]  }
  0x36   :  { %316 = vmatprep.mubr.bf16.mxu0 %v3174_v0  ;;  %2221 = vset.pattern.permute.xlu0 %v3174_v0  ;;  %v2225_v2 = vld [vmem:[#allocation10 + $0xa8] ss:$12 sps:$4 sm:$0xff]   ;;  %v2228_v4 = vld [vmem:[#allocation10 + $0x90] ss:$12 sps:$4 sm:$0xff]   ;;  %v2231_v6 = vld [vmem:[#allocation10 + $0x78] ss:$12 sps:$4 sm:$0xff]  }
  0x37   :  { %2222 = vset.pattern.permute.xlu1 %v3174_v0  ;;  %284 = vmatprep.subr.bf16.mxu0 %v2223_v1  ;;  %v2226_v3 = vld [vmem:[#allocation10 + $0x94] ss:$12 sps:$4 sm:$0xff]   ;;  %v2229_v5 = vld [vmem:[#allocation10 + $0x7c] ss:$12 sps:$4 sm:$0xff]   ;;  %v2232_v7 = vld [vmem:[#allocation10 + $0x64] ss:$12 sps:$4 sm:$0xff]  }
  0x38   :  { %285 = vmatpush1.bf16.msra.mxu0 %v2225_v2  ;;  %v2244_v8 = vld [vmem:[#allocation10 + $0xb0] ss:$12 sps:$4 sm:$0xff]   ;;  %v2234_v9 = vld [vmem:[#allocation10 + $0x60] ss:$12 sps:$4 sm:$0xff]   ;;  %v2248_v11 = vld [vmem:[#allocation10 + $0x98] ss:$12 sps:$4 sm:$0xff]   ;;  %2002 = vmatprep.mubr.bf16.mxu1 %v2249_v12 }
  0x39   :  { %286 = vmatprep.subr.bf16.mxu0 %v2226_v3  ;;  %v2235_v10 = vld [vmem:[#allocation10 + $0x4c] ss:$12 sps:$4 sm:$0xff]   ;;  %1986 = vmatprep.subr.bf16.mxu1 %v2244_v8  ;;  %v2237_v13 = vld [vmem:[#allocation10 + $0x48] ss:$12 sps:$4 sm:$0xff]   ;;  %v2240_v17 = vld [vmem:[#allocation10 + $0x30] ss:$12 sps:$4 sm:$0xff]  }
  0x3a   :  { %1987 = vmatpush3.bf16.msra.mxu1 %v2244_v8  ;;  %v2253_v14 = vld [vmem:[#allocation10 + $0x80] ss:$12 sps:$4 sm:$0xff]   ;;  %v2257_v16 = vld [vmem:[#allocation10 + $0x68] ss:$12 sps:$4 sm:$0xff]   ;;  %v2262_v19 = vld [vmem:[#allocation10 + $0x50] ss:$12 sps:$4 sm:$0xff]  }
  0x3b   :  { %1988 = vmatprep.subr.bf16.mxu1 %v2248_v11  ;;  %v2238_v15 = vld [vmem:[#allocation10 + $0x34] ss:$12 sps:$4 sm:$0xff]   ;;  %v2241_v18 = vld [vmem:[#allocation10 + $0x1c] ss:$12 sps:$4 sm:$0xff]   ;;  %v2243_v20 = vld [vmem:[#allocation10 + $0x18] ss:$12 sps:$4 sm:$0xff]  }
  0x3c   :  { %287 = vmatpush1.bf16.msra.mxu0 %v2228_v4  ;;  %v2245_v21 = vld [vmem:[#allocation10 + $0x4] ss:$12 sps:$4 sm:$0xff]   ;;  %v2247_v23 = vld [vmem:[#allocation10] ss:$12 sps:$4 sm:$0xff]   ;;  %v2604_v26 = vld [vmem:[#allocation12 + $0xa8] ss:$12 sps:$4 sm:$0xff]  }
  0x3d   :  { %288 = vmatprep.subr.bf16.mxu0 %v2229_v5  ;;  %v2266_v22 = vld [vmem:[#allocation10 + $0x38] ss:$12 sps:$4 sm:$0xff]   ;;  %v2271_v25 = vld [vmem:[#allocation10 + $0x20] ss:$12 sps:$4 sm:$0xff]   ;;  %v2275_v28 = vld [vmem:[#allocation10 + $0x8] ss:$12 sps:$4 sm:$0xff]  }
  0x3e   :  { %1989 = vmatpush3.bf16.msra.mxu1 %v2248_v11  ;;  %v2602_v24 = vld [vmem:[#allocation12 + $0xac] ss:$12 sps:$4 sm:$0xff]   ;;  %v2607_v27 = vld [vmem:[#allocation12 + $0x94] ss:$12 sps:$4 sm:$0xff]   ;;  %v2610_v29 = vld [vmem:[#allocation12 + $0x90] ss:$12 sps:$4 sm:$0xff]  }
  0x3f   :  { %1990 = vmatprep.subr.bf16.mxu1 %v2253_v14  ;;  %v2614_v30 = vld [vmem:[#allocation12 + $0x7c] ss:$12 sps:$4 sm:$0xff]   ;;  %v2617_v32 = vld [vmem:[#allocation12 + $0x78] ss:$12 sps:$4 sm:$0xff]   ;;  %v3176_v35 = vmov 0.0   ;;  %v2267_v37 = vld [vmem:[#allocation7 + $0x10] sm:$0xff]  }
  0x40   :  { %289 = vmatpush1.bf16.msra.mxu0 %v2231_v6  ;;  %v2258_v31 = vld [vmem:[#allocation7 + $0x8] sm:$0xff]   ;;  %v2620_v33 = vld [vmem:[#allocation12 + $0x64] ss:$12 sps:$4 sm:$0xff]   ;;  %v2640_v41 = vld [vmem:[#allocation12 + $0x34] ss:$12 sps:$4 sm:$0xff]   ;;  %vm2537_vm0 = vmmov 0  }
  0x41   :  { %290 = vmatprep.subr.bf16.mxu0 %v2232_v7  ;;  %v2622_v34 = vld [vmem:[#allocation12 + $0xb0] ss:$12 sps:$4 sm:$0xff]   ;;  %v2626_v36 = vld [vmem:[#allocation12 + $0x60] ss:$12 sps:$4 sm:$0xff]   ;;  %v2633_v39 = vld [vmem:[#allocation12 + $0x98] ss:$12 sps:$4 sm:$0xff]  }
  0x42   :  { %1991 = vmatpush3.bf16.msra.mxu1 %v2253_v14  ;;  %v2630_v38 = vld [vmem:[#allocation12 + $0x4c] ss:$12 sps:$4 sm:$0xff]   ;;  %v2637_v40 = vld [vmem:[#allocation12 + $0x48] ss:$12 sps:$4 sm:$0xff]   ;;  %v2647_v44 = vld [vmem:[#allocation12 + $0x30] ss:$12 sps:$4 sm:$0xff]  }
  0x43   :  { %1992 = vmatprep.subr.bf16.mxu1 %v2257_v16  ;;  %v2643_v42 = vld [vmem:[#allocation12 + $0x80] ss:$12 sps:$4 sm:$0xff]   ;;  %v2276_v43 = vld [vmem:[#allocation7 + $0x18] sm:$0xff]   ;;  %v2654_v46 = vld [vmem:[#allocation12 + $0x68] ss:$12 sps:$4 sm:$0xff]   ;;  %v2538_v53 = vmov 0.0|0.0  }
  0x44   :  { %291 = vmatpush1.bf16.msra.mxu0 %v2234_v9  ;;  %v2651_v45 = vld [vmem:[#allocation12 + $0x1c] ss:$12 sps:$4 sm:$0xff]   ;;  %v2660_v47 = vld [vmem:[#allocation12 + $0x18] ss:$12 sps:$4 sm:$0xff]   ;;  %v2670_v50 = vld [vmem:[#allocation12] ss:$12 sps:$4 sm:$0xff]  }
  0x45   :  { %292 = vmatprep.subr.bf16.mxu0 %v2235_v10  ;;  %v2663_v48 = vld [vmem:[#allocation12 + $0x4] ss:$12 sps:$4 sm:$0xff]   ;;  %v2681_v52 = vld [vmem:[#allocation12 + $0x20] ss:$12 sps:$4 sm:$0xff]   ;;  %v2688_v54 = vld [vmem:[#allocation12 + $0x8] ss:$12 sps:$4 sm:$0xff]  }
  0x46   :  { %1993 = vmatpush3.bf16.msra.mxu1 %v2257_v16  ;;  %v2666_v49 = vld [vmem:[#allocation12 + $0x50] ss:$12 sps:$4 sm:$0xff]   ;;  %v2675_v51 = vld [vmem:[#allocation12 + $0x38] ss:$12 sps:$4 sm:$0xff]   ;;  %vm88_vm1 = vcmask 7168   ;;  %v2539_v55 = vmov -inf  }
  0x47   :  { %1994 = vmatprep.subr.bf16.mxu1 %v2262_v19  ;;  %89 = vst.msk [vmem:[#allocation4] sm:$0xff] %vm88_vm1, %v2539_v55  ;;  %90 = vst.msk [vmem:[#allocation5] sm:$0xff] %vm88_vm1, %v3176_v35  ;;  %s2540_s27 = smov [#allocation15]  }
  0x48   :  { %293 = vmatpush1.bf16.msra.mxu0 %v2237_v13  ;;  %s1803_s28 = sshll.u32 %s2540_s27, 4  ;;  %s1804_s28 = int_to_ptr.vmem [resolvable:$true] %s1803_s28 }
  0x49   :  { %294 = vmatprep.subr.bf16.mxu0 %v2238_v15  ;;  %s2497_s29 = scalar_lea.vmem %s1804_s28, 128  ;;  %p2502_p7 = scmp.lt.s32.totalorder %s1804_s28, %s1804_s28 }
  0x4a   :  { %1995 = vmatpush3.bf16.msra.mxu1 %v2262_v19  ;;  %p2498_p6 = scmp.ne.s32.totalorder %s1804_s28, %s2497_s29  ;;  %p2503_p8 = scmp.lt.s32.totalorder %s2497_s29, %s2497_s29 }
  0x4b   :  { %1996 = vmatprep.subr.bf16.mxu1 %v2266_v22 }
  0x4c   :  { %295 = vmatpush1.bf16.msra.mxu0 %v2240_v17  ;;  %p2504_p9 = por %p2503_p8, %p2502_p7 }
  0x4d   :  { %296 = vmatprep.subr.bf16.mxu0 %v2241_v18 }
  0x4e   :  { %1997 = vmatpush3.bf16.msra.mxu1 %v2266_v22  ;;  %p2505_p10 = pnand %p2504_p9, %p2498_p6 }
  0x4f   :  { %1998 = vmatprep.subr.bf16.mxu1 %v2271_v25 }
  0x50   :  { %297 = vmatpush1.bf16.msra.mxu0 %v2243_v20 }
  0x51   :  { %298 = vmatprep.subr.bf16.mxu0 %v2245_v21 }
  0x52   :  { %1999 = vmatpush3.bf16.msra.mxu1 %v2271_v25 }
  0x53   :  { %2000 = vmatprep.subr.bf16.mxu1 %v2275_v28 }
  0x54   :  { %299 = vmatpush1.bf16.msra.mxu0 %v2247_v23 }
  0x55   :  { %616 = vmatprep.subr.bf16.mxu0 %v2602_v24 }
  0x56   :  { %2001 = vmatpush3.bf16.msra.mxu1 %v2275_v28 }
  0x57   :  { %317 = vmatmul.mubr.bf16.vlgmr.msra.gmra.mxu0 %v2249_v12  ;;  %2010 = vmatprep.subr.bf16.mxu1 %v3176_v35 }
  0x58   :  { %617 = vmatpush1.bf16.msra.mxu0 %v2604_v26  ;;  %326 = vmatprep.mubr.bf16.mxu0 %v3174_v0 }
  0x59   :  { %618 = vmatprep.subr.bf16.mxu0 %v2607_v27  ;;  %2003 = vmatmul.mubr.bf16.vlgmr.msra.gmra.mxu1 %v2258_v31 }
  0x5a   :  { %2011 = vmatpush3.bf16.msra.mxu1 %v2622_v34  ;;  %2006 = vmatprep.mubr.bf16.mxu1 %v2267_v37 }
  0x5b   :  { %2012 = vmatprep.subr.bf16.mxu1 %v3176_v35 }
  0x5c   :  { %619 = vmatpush1.bf16.msra.mxu0 %v2610_v29 }
  0x5d   :  { %620 = vmatprep.subr.bf16.mxu0 %v2614_v30 }
  0x5e   :  { %2013 = vmatpush3.bf16.msra.mxu1 %v2633_v39 }
  0x5f   :  { %327 = vmatmul.mubr.bf16.gmra.mxu0 %v2258_v31  ;;  %2014 = vmatprep.subr.bf16.mxu1 %v3176_v35 }
  0x60   :  { %621 = vmatpush1.bf16.msra.mxu0 %v2617_v32  ;;  %336 = vmatprep.mubr.bf16.mxu0 %v3174_v0 }
  0x61   :  { %622 = vmatprep.subr.bf16.mxu0 %v2620_v33  ;;  %2007 = vmatmul.mubr.bf16.gmra.mxu1 %v2276_v43 }
  0x62   :  { %2015 = vmatpush3.bf16.msra.mxu1 %v2643_v42  ;;  %2026 = vmatprep.mubr.msk.bf16.mxu1 %vm2537_vm0, %v3176_v35 }
  0x63   :  { %2016 = vmatprep.subr.bf16.mxu1 %v3176_v35 }
  0x64   :  { %623 = vmatpush1.bf16.msra.mxu0 %v2626_v36 }
  0x65   :  { %624 = vmatprep.subr.bf16.mxu0 %v2630_v38 }
  0x66   :  { %2017 = vmatpush3.bf16.msra.mxu1 %v2654_v46 }
  0x67   :  { %337 = vmatmul.mubr.bf16.gmra.mxu0 %v2267_v37  ;;  %2018 = vmatprep.subr.bf16.mxu1 %v3176_v35 }
  0x68   :  { %625 = vmatpush1.bf16.msra.mxu0 %v2637_v40  ;;  %346 = vmatprep.mubr.bf16.mxu0 %v3174_v0 }
  0x69   :  { %626 = vmatprep.subr.bf16.mxu0 %v2640_v41 }
  0x6a   :  { %2019 = vmatpush3.bf16.msra.mxu1 %v2666_v49 }
  0x6b   :  { %2020 = vmatprep.subr.bf16.mxu1 %v3176_v35 }
  0x6c   :  { %627 = vmatpush1.bf16.msra.mxu0 %v2647_v44 }
  0x6d   :  { %628 = vmatprep.subr.bf16.mxu0 %v2651_v45 }
  0x6e   :  { %2021 = vmatpush3.bf16.msra.mxu1 %v2675_v51 }
  0x6f   :  { %347 = vmatmul.mubr.bf16.gmra.mxu0 %v2276_v43  ;;  %2022 = vmatprep.subr.bf16.mxu1 %v3176_v35 }
  0x70   :  { %629 = vmatpush1.bf16.msra.mxu0 %v2660_v47  ;;  %648 = vmatprep.mubr.bf16.mxu0 %v3174_v0 }
  0x71   :  { %630 = vmatprep.subr.bf16.mxu0 %v2663_v48 }
  0x72   :  { %2023 = vmatpush3.bf16.msra.mxu1 %v2681_v52 }
  0x73   :  { %2024 = vmatprep.subr.bf16.mxu1 %v3176_v35 }
  0x74   :  { %631 = vmatpush1.bf16.msra.mxu0 %v2670_v50 }
  0x75   :  { %761 = vmatprep.subr.bf16.mxu0 %v2602_v24 }
  0x76   :  { %2025 = vmatpush3.bf16.msra.mxu1 %v2688_v54 }
  0x77   :  { %649 = vmatmul.mubr.bf16.vlgmr.msra.gmra.mxu0 %v2538_v53  ;;  %2030 = vmatprep.subr.bf16.mxu1 %v3176_v35 }
  0x78   :  { %762 = vmatpush1.bf16.msra.mxu0 %v2604_v26  ;;  %793 = vmatprep.mubr.bf16.mxu0 %v3174_v0 }
  0x79   :  { %763 = vmatprep.subr.bf16.mxu0 %v2607_v27  ;;  %2027 = vmatmul.mubr.bf16.vlgmr.msra.gmra.mxu1 %v2538_v53 }
  0x7a   :  { %2031 = vmatpush3.bf16.msra.mxu1 %v2622_v34  ;;  %2046 = vmatprep.mubr.msk.bf16.mxu1 %vm2537_vm0, %v3176_v35 }
  0x7b   :  { %2032 = vmatprep.subr.bf16.mxu1 %v3176_v35 }
  0x7c   :  { %764 = vmatpush1.bf16.msra.mxu0 %v2610_v29 }
  0x7d   :  { %765 = vmatprep.subr.bf16.mxu0 %v2614_v30 }
  0x7e   :  { %2033 = vmatpush3.bf16.msra.mxu1 %v2633_v39 }
  0x7f   :  { %2034 = vmatprep.subr.bf16.mxu1 %v3176_v35 }
  0x80   :  { %766 = vmatpush1.bf16.msra.mxu0 %v2617_v32 }
  0x81   :  { %767 = vmatprep.subr.bf16.mxu0 %v2620_v33 }
  0x82   :  { %2035 = vmatpush3.bf16.msra.mxu1 %v2643_v42 }
  0x83   :  { %2036 = vmatprep.subr.bf16.mxu1 %v3176_v35 }
  0x84   :  { %768 = vmatpush1.bf16.msra.mxu0 %v2626_v36 }
  0x85   :  { %769 = vmatprep.subr.bf16.mxu0 %v2630_v38 }
  0x86   :  { %2037 = vmatpush3.bf16.msra.mxu1 %v2654_v46 }
  0x87   :  { %2038 = vmatprep.subr.bf16.mxu1 %v3176_v35 }
  0x88   :  { %770 = vmatpush1.bf16.msra.mxu0 %v2637_v40 }
  0x89   :  { %771 = vmatprep.subr.bf16.mxu0 %v2640_v41 }
  0x8a   :  { %2039 = vmatpush3.bf16.msra.mxu1 %v2666_v49 }
  0x8b   :  { %2040 = vmatprep.subr.bf16.mxu1 %v3176_v35 }
  0x8c   :  { %772 = vmatpush1.bf16.msra.mxu0 %v2647_v44 }
  0x8d   :  { %773 = vmatprep.subr.bf16.mxu0 %v2651_v45 }
  0x8e   :  { %2041 = vmatpush3.bf16.msra.mxu1 %v2675_v51 }
  0x8f   :  { %2042 = vmatprep.subr.bf16.mxu1 %v3176_v35 }
  0x90   :  { %774 = vmatpush1.bf16.msra.mxu0 %v2660_v47 }
  0x91   :  { %775 = vmatprep.subr.bf16.mxu0 %v2663_v48 }
  0x92   :  { %2043 = vmatpush3.bf16.msra.mxu1 %v2681_v52 }
  0x93   :  { %2044 = vmatprep.subr.bf16.mxu1 %v3176_v35 }
  0x94   :  { %776 = vmatpush1.bf16.msra.mxu0 %v2670_v50 }
  0x95   :  { %894 = vmatprep.subr.bf16.mxu0 %v2602_v24 }
  0x96   :  { %2045 = vmatpush3.bf16.msra.mxu1 %v2688_v54 }
  0x97   :  { %2050 = vmatprep.subr.bf16.mxu1 %v3176_v35 }
 0x117   :  { %v318_v56 = vpop.f32.mrf.mxu0 }
 0x119   :  { %v320_v57 = vpop.f32.mrf.mxu0  ;;  %v2738_v63 = vpop.f32.mrf.mxu1 }
 0x11b   :  { %v2728_v58 = vpop.f32.mrf.mxu0  ;;  %v391_v3 = vpop.f32.mrf.mxu1 }
 0x11d   :  { %v2730_v59 = vpop.f32.mrf.mxu0  ;;  %v2748_v6 = vpop.f32.mrf.mxu1 }
 0x11f   :  { %v2732_v60 = vpop.f32.mrf.mxu0  ;;  %v2754_v9 = vpop.f32.mrf.mxu1 }
 0x121   :  { %v2734_v61 = vpop.f32.mrf.mxu0  ;;  %v2758_v11 = vpop.f32.mrf.mxu1 }
 0x123   :  { %v2736_v62 = vpop.f32.mrf.mxu0  ;;  %v2764_v14 = vpop.f32.mrf.mxu1 }
 0x125   :  { %v2740_v1 = vpop.f32.mrf.mxu0  ;;  %v2766_v18 = vpop.f32.mrf.mxu1 }
 0x126   :  { %3178 = vst [vmem:[#allocation20_spill] sm:$0xff] %v2766_v18 }
 0x127   :  { %v2742_v2 = vpop.f32.mrf.mxu0  ;;  %v2768_v22 = vpop.f32.mrf.mxu1 }
 0x129   :  { %v2744_v4 = vpop.f32.mrf.mxu0 }
 0x12b   :  { %v2746_v5 = vpop.f32.mrf.mxu0 }
 0x12d   :  { %v2750_v7 = vpop.f32.mrf.mxu0 }
 0x12f   :  { %v2752_v8 = vpop.f32.mrf.mxu0 }
 0x131   :  { %v2756_v10 = vpop.f32.mrf.mxu0 }
 0x133   :  { %v2760_v12 = vpop.f32.mrf.mxu0 }
 0x135   :  { %v2762_v13 = vpop.f32.mrf.mxu0 }
 0x137   :  { %v650_v15 = vpop.f32.mrf.mxu0 }
 0x138   :  { %v697_v16 = vadd.f32 %v650_v15, %v318_v56  ;;  %v2773_v15 = vld [vmem:[%s3169_s3] ss:$0 sm:$0xff] }
 0x139   :  { %v652_v17 = vpop.f32.mrf.mxu0  ;;  %v691_v25 = vpop.f32.mrf.mxu1 }
 0x13a   :  { %v1866_v19 = vmul.f32 -1.442695, %v697_v16  ;;  %v704_v23 = vadd.f32 %v652_v17, %v320_v57 }
 0x13b   :  { %v654_v20 = vpop.f32.mrf.mxu0  ;;  %v2028_v31 = vpop.f32.mrf.mxu1 }
 0x13c   :  { %2291 = vpow2.f32 %v1866_v19  ;;  %v1867_v28 = vmul.f32 -1.442695, %v704_v23  ;;  %v717_v19 = vadd.f32 %v2773_v15, %v691_v25 }
 0x13d   :  { %v655_v21 = vpop.f32.mrf.mxu0  ;;  %v694_v37 = vpop.f32.mrf.mxu1 }
 0x13e   :  { %2293 = vpow2.f32 %v1867_v28 }
 0x13f   :  { %v2029_v43 = vpop.f32.mrf.mxu1 }
 0x140   :  { %v2779_v43 = vld [vmem:[%s3170_s4] ss:$0 sm:$0xff] }
 0x149   :  { %v2292_v53 = vpop.eup %2291 }
 0x14a   :  { %v701_v55 = vadd.f32 1.0, %v2292_v53 }
 0x14b   :  { %v2294_v56 = vpop.eup %2293 }
 0x14c   :  { %2295 = vrcp.f32 %v701_v55  ;;  %v708_v16 = vadd.f32 1.0, %v2294_v56 }
 0x14e   :  { %2297 = vrcp.f32 %v708_v16 }
 0x159   :  { %v2296_v20 = vpop.eup %2295 }
 0x15a   :  { %v718_v57 = vmul.f32 %v2296_v20, %v717_v19 }
 0x15b   :  { %v2298_v21 = vpop.eup %2297 }
 0x15c   :  { %v719_v17 = vadd.f32 %v718_v57, %v391_v3  ;;  %v721_v23 = vsub.f32 1.0, %v2298_v21  ;;  %v723_v37 = vmul.f32 0.0, %v2298_v21 }
 0x15e   :  { %2299 = vtanh.f32 %v719_v17 }
 0x16b   :  { %v2300_v28 = vpop.eup %2299 }
 0x16c   :  { %v722_v31 = vmul.f32 %v2300_v28, %v721_v23 }
 0x16e   :  { %v2781_v53 = vadd.f32 %v723_v37, %v722_v31 }
 0x170   :  { %v760_v25 = vpack.c.bf16 %v2781_v53, %v2781_v53  ;;  %v731_v55 = vmul.f32 %v2779_v43, %v2781_v53 }
 0x172   :  { %794 = vmatmul.mubr.bf16.vlgmr.msra.gmra.mxu0 %v760_v25  ;;  %2047 = vmatmul.mubr.bf16.vlgmr.msra.gmra.mxu1 %v760_v25 }
 0x173   :  { %732 = vadd.xlane.f32.xlu0 %v731_v55  ;;  %895 = vmatpush1.bf16.msra.mxu0 %v2604_v26 }
 0x174   :  { %2051 = vmatpush3.bf16.msra.mxu1 %v2622_v34  ;;  %896 = vmatprep.subr.bf16.mxu0 %v2607_v27 }
 0x175   :  { %2052 = vmatprep.subr.bf16.mxu1 %v3176_v35  ;;  %926 = vmatprep.mubr.bf16.mxu0 %v3174_v0 }
 0x176   :  { %2066 = vmatprep.mubr.msk.bf16.mxu1 %vm2537_vm0, %v3176_v35 }
 0x177   :  { %897 = vmatpush1.bf16.msra.mxu0 %v2610_v29 }
 0x178   :  { %2053 = vmatpush3.bf16.msra.mxu1 %v2633_v39  ;;  %898 = vmatprep.subr.bf16.mxu0 %v2614_v30 }
 0x179   :  { %2054 = vmatprep.subr.bf16.mxu1 %v3176_v35 }
 0x17b   :  { %899 = vmatpush1.bf16.msra.mxu0 %v2617_v32 }
 0x17c   :  { %2055 = vmatpush3.bf16.msra.mxu1 %v2643_v42  ;;  %900 = vmatprep.subr.bf16.mxu0 %v2620_v33 }
 0x17d   :  { %2056 = vmatprep.subr.bf16.mxu1 %v3176_v35 }
 0x17f   :  { %901 = vmatpush1.bf16.msra.mxu0 %v2626_v36 }
 0x180   :  { %2057 = vmatpush3.bf16.msra.mxu1 %v2654_v46  ;;  %902 = vmatprep.subr.bf16.mxu0 %v2630_v38 }
 0x181   :  { %2058 = vmatprep.subr.bf16.mxu1 %v3176_v35 }
 0x183   :  { %903 = vmatpush1.bf16.msra.mxu0 %v2637_v40 }
 0x184   :  { %2059 = vmatpush3.bf16.msra.mxu1 %v2666_v49  ;;  %904 = vmatprep.subr.bf16.mxu0 %v2640_v41 }
 0x185   :  { %2060 = vmatprep.subr.bf16.mxu1 %v3176_v35 }
 0x187   :  { %905 = vmatpush1.bf16.msra.mxu0 %v2647_v44 }
 0x188   :  { %2061 = vmatpush3.bf16.msra.mxu1 %v2675_v51  ;;  %906 = vmatprep.subr.bf16.mxu0 %v2651_v45 }
 0x189   :  { %2062 = vmatprep.subr.bf16.mxu1 %v3176_v35 }
 0x18b   :  { %907 = vmatpush1.bf16.msra.mxu0 %v2660_v47 }
 0x18c   :  { %2063 = vmatpush3.bf16.msra.mxu1 %v2681_v52  ;;  %908 = vmatprep.subr.bf16.mxu0 %v2663_v48 }
 0x18d   :  { %2064 = vmatprep.subr.bf16.mxu1 %v3176_v35 }
 0x18f   :  { %909 = vmatpush1.bf16.msra.mxu0 %v2670_v50 }
 0x190   :  { %2065 = vmatpush3.bf16.msra.mxu1 %v2688_v54  ;;  %1027 = vmatprep.subr.bf16.mxu0 %v2602_v24 }
 0x191   :  { %2070 = vmatprep.subr.bf16.mxu1 %v3176_v35 }
 0x232   :  { %v795_v3 = vpop.f32.mrf.mxu0  ;;  %v836_v56 = vpop.f32.mrf.mxu1 }
 0x233   :  { %v842_v16 = vadd.f32 %v795_v3, %v2728_v58  ;;  %v856_v18 = vadd.f32 %v2773_v15, %v836_v56 }
 0x234   :  { %v797_v19 = vpop.f32.mrf.mxu0  ;;  %v2048_v20 = vpop.f32.mrf.mxu1 }
 0x235   :  { %v1870_v57 = vmul.f32 -1.442695, %v842_v16  ;;  %v849_v31 = vadd.f32 %v797_v19, %v2730_v59 }
 0x236   :  { %v799_v17 = vpop.f32.mrf.mxu0  ;;  %v839_v21 = vpop.f32.mrf.mxu1 }
 0x237   :  { %2301 = vpow2.f32 %v1870_v57  ;;  %v1871_v37 = vmul.f32 -1.442695, %v849_v31 }
 0x238   :  { %v800_v23 = vpop.f32.mrf.mxu0  ;;  %v2049_v28 = vpop.f32.mrf.mxu1 }
 0x239   :  { %2303 = vpow2.f32 %v1871_v37 }
 0x244   :  { %v2302_v25 = vpop.eup %2301 }
 0x245   :  { %v846_v55 = vadd.f32 1.0, %v2302_v25 }
 0x246   :  { %v2304_v0 = vpop.eup %2303 }
 0x247   :  { %2305 = vrcp.f32 %v846_v55  ;;  %v853_v35 = vadd.f32 1.0, %v2304_v0 }
 0x249   :  { %2307 = vrcp.f32 %v853_v35  ;;  %v3179_v35 = vmov 0.0  }
 0x254   :  { %v2306_v58 = vpop.eup %2305 }
 0x255   :  { %v857_v3 = vmul.f32 %v2306_v58, %v856_v18 }
 0x256   :  { %v2308_v20 = vpop.eup %2307 }
 0x257   :  { %v858_v16 = vadd.f32 %v857_v3, %v2754_v9  ;;  %v860_v57 = vsub.f32 1.0, %v2308_v20  ;;  %v862_v59 = vmul.f32 %v2308_v20, %v2781_v53  ;;  %v3180_v9 = vmov 0  }
 0x259   :  { %2309 = vtanh.f32 %v858_v16 }
 0x266   :  { %v2310_v17 = vpop.eup %2309 }
 0x267   :  { %v861_v21 = vmul.f32 %v2310_v17, %v860_v57 }
 0x269   :  { %v2827_v19 = vadd.f32 %v862_v59, %v861_v21 }
 0x26b   :  { %v893_v23 = vpack.c.bf16 %v2827_v19, %v2827_v19  ;;  %v864_v0 = vmul.f32 %v2779_v43, %v2827_v19 }
 0x26d   :  { %927 = vmatmul.mubr.bf16.vlgmr.msra.gmra.mxu0 %v893_v23  ;;  %2067 = vmatmul.mubr.bf16.vlgmr.msra.gmra.mxu1 %v893_v23 }
 0x26e   :  { %865 = vadd.xlane.f32.xlu0 %v864_v0  ;;  %1028 = vmatpush1.bf16.msra.mxu0 %v2604_v26 }
 0x26f   :  { %2071 = vmatpush3.bf16.msra.mxu1 %v2622_v34  ;;  %1029 = vmatprep.subr.bf16.mxu0 %v2607_v27 }
 0x270   :  { %2072 = vmatprep.subr.bf16.mxu1 %v3179_v35  ;;  %1059 = vmatprep.mubr.bf16.mxu0 %v3180_v9 }
 0x271   :  { %2086 = vmatprep.mubr.msk.bf16.mxu1 %vm2537_vm0, %v3179_v35 }
 0x272   :  { %1030 = vmatpush1.bf16.msra.mxu0 %v2610_v29 }
 0x273   :  { %2073 = vmatpush3.bf16.msra.mxu1 %v2633_v39  ;;  %1031 = vmatprep.subr.bf16.mxu0 %v2614_v30 }
 0x274   :  { %2074 = vmatprep.subr.bf16.mxu1 %v3179_v35 }
 0x276   :  { %1032 = vmatpush1.bf16.msra.mxu0 %v2617_v32 }
 0x277   :  { %2075 = vmatpush3.bf16.msra.mxu1 %v2643_v42  ;;  %1033 = vmatprep.subr.bf16.mxu0 %v2620_v33 }
 0x278   :  { %2076 = vmatprep.subr.bf16.mxu1 %v3179_v35 }
 0x27a   :  { %1034 = vmatpush1.bf16.msra.mxu0 %v2626_v36 }
 0x27b   :  { %2077 = vmatpush3.bf16.msra.mxu1 %v2654_v46  ;;  %1035 = vmatprep.subr.bf16.mxu0 %v2630_v38 }
 0x27c   :  { %2078 = vmatprep.subr.bf16.mxu1 %v3179_v35 }
 0x27e   :  { %1036 = vmatpush1.bf16.msra.mxu0 %v2637_v40 }
 0x27f   :  { %2079 = vmatpush3.bf16.msra.mxu1 %v2666_v49  ;;  %1037 = vmatprep.subr.bf16.mxu0 %v2640_v41 }
 0x280   :  { %2080 = vmatprep.subr.bf16.mxu1 %v3179_v35 }
 0x282   :  { %1038 = vmatpush1.bf16.msra.mxu0 %v2647_v44 }
 0x283   :  { %2081 = vmatpush3.bf16.msra.mxu1 %v2675_v51  ;;  %1039 = vmatprep.subr.bf16.mxu0 %v2651_v45 }
 0x284   :  { %2082 = vmatprep.subr.bf16.mxu1 %v3179_v35 }
 0x286   :  { %1040 = vmatpush1.bf16.msra.mxu0 %v2660_v47 }
 0x287   :  { %2083 = vmatpush3.bf16.msra.mxu1 %v2681_v52  ;;  %1041 = vmatprep.subr.bf16.mxu0 %v2663_v48 }
 0x288   :  { %2084 = vmatprep.subr.bf16.mxu1 %v3179_v35 }
 0x28a   :  { %1042 = vmatpush1.bf16.msra.mxu0 %v2670_v50 }
 0x28b   :  { %2085 = vmatpush3.bf16.msra.mxu1 %v2688_v54  ;;  %1160 = vmatprep.subr.bf16.mxu0 %v2602_v24 }
 0x28c   :  { %2090 = vmatprep.subr.bf16.mxu1 %v3179_v35 }
 0x32d   :  { %v928_v18 = vpop.f32.mrf.mxu0  ;;  %v969_v56 = vpop.f32.mrf.mxu1 }
 0x32e   :  { %v975_v28 = vadd.f32 %v928_v18, %v2732_v60  ;;  %v989_v0 = vadd.f32 %v2773_v15, %v969_v56 }
 0x32f   :  { %v930_v31 = vpop.f32.mrf.mxu0  ;;  %v2068_v37 = vpop.f32.mrf.mxu1 }
 0x330   :  { %v1872_v25 = vmul.f32 -1.442695, %v975_v28  ;;  %v982_v20 = vadd.f32 %v930_v31, %v2734_v61 }
 0x331   :  { %v932_v55 = vpop.f32.mrf.mxu0  ;;  %v972_v58 = vpop.f32.mrf.mxu1 }
 0x332   :  { %2311 = vpow2.f32 %v1872_v25  ;;  %v1873_v57 = vmul.f32 -1.442695, %v982_v20 }
 0x333   :  { %v933_v3 = vpop.f32.mrf.mxu0  ;;  %v2069_v16 = vpop.f32.mrf.mxu1 }
 0x334   :  { %2313 = vpow2.f32 %v1873_v57 }
 0x33f   :  { %v2312_v17 = vpop.eup %2311 }
 0x340   :  { %v979_v21 = vadd.f32 1.0, %v2312_v17 }
 0x341   :  { %v2314_v59 = vpop.eup %2313 }
 0x342   :  { %2315 = vrcp.f32 %v979_v21  ;;  %v986_v23 = vadd.f32 1.0, %v2314_v59 }
 0x344   :  { %2317 = vrcp.f32 %v986_v23 }
 0x34f   :  { %v2316_v60 = vpop.eup %2315 }
 0x350   :  { %v990_v18 = vmul.f32 %v2316_v60, %v989_v0 }
 0x351   :  { %v2318_v37 = vpop.eup %2317 }
 0x352   :  { %v991_v28 = vadd.f32 %v2738_v63, %v990_v18  ;;  %v993_v25 = vsub.f32 1.0, %v2318_v37  ;;  %v995_v61 = vmul.f32 %v2318_v37, %v2827_v19 }
 0x354   :  { %2319 = vtanh.f32 %v991_v28 }
 0x361   :  { %v2320_v55 = vpop.eup %2319 }
 0x362   :  { %v994_v58 = vmul.f32 %v2320_v55, %v993_v25 }
 0x364   :  { %v2873_v31 = vadd.f32 %v995_v61, %v994_v58 }
 0x366   :  { %v1026_v3 = vpack.c.bf16 %v2873_v31, %v2873_v31  ;;  %v997_v56 = vmul.f32 %v2779_v43, %v2873_v31 }
 0x368   :  { %1060 = vmatmul.mubr.bf16.vlgmr.msra.gmra.mxu0 %v1026_v3  ;;  %2087 = vmatmul.mubr.bf16.vlgmr.msra.gmra.mxu1 %v1026_v3 }
 0x369   :  { %998 = vadd.xlane.f32.xlu1 %v997_v56  ;;  %1161 = vmatpush1.bf16.msra.mxu0 %v2604_v26 }
 0x36a   :  { %2091 = vmatpush3.bf16.msra.mxu1 %v2622_v34  ;;  %1162 = vmatprep.subr.bf16.mxu0 %v2607_v27 }
 0x36b   :  { %2092 = vmatprep.subr.bf16.mxu1 %v3179_v35  ;;  %1192 = vmatprep.mubr.bf16.mxu0 %v3180_v9 }
 0x36c   :  { %2106 = vmatprep.mubr.msk.bf16.mxu1 %vm2537_vm0, %v3179_v35 }
 0x36d   :  { %1163 = vmatpush1.bf16.msra.mxu0 %v2610_v29 }
 0x36e   :  { %2093 = vmatpush3.bf16.msra.mxu1 %v2633_v39  ;;  %1164 = vmatprep.subr.bf16.mxu0 %v2614_v30 }
 0x36f   :  { %2094 = vmatprep.subr.bf16.mxu1 %v3179_v35 }
 0x371   :  { %1165 = vmatpush1.bf16.msra.mxu0 %v2617_v32 }
 0x372   :  { %2095 = vmatpush3.bf16.msra.mxu1 %v2643_v42  ;;  %1166 = vmatprep.subr.bf16.mxu0 %v2620_v33 }
 0x373   :  { %2096 = vmatprep.subr.bf16.mxu1 %v3179_v35 }
 0x375   :  { %1167 = vmatpush1.bf16.msra.mxu0 %v2626_v36 }
 0x376   :  { %2097 = vmatpush3.bf16.msra.mxu1 %v2654_v46  ;;  %1168 = vmatprep.subr.bf16.mxu0 %v2630_v38 }
 0x377   :  { %2098 = vmatprep.subr.bf16.mxu1 %v3179_v35 }
 0x379   :  { %1169 = vmatpush1.bf16.msra.mxu0 %v2637_v40 }
 0x37a   :  { %2099 = vmatpush3.bf16.msra.mxu1 %v2666_v49  ;;  %1170 = vmatprep.subr.bf16.mxu0 %v2640_v41 }
 0x37b   :  { %2100 = vmatprep.subr.bf16.mxu1 %v3179_v35 }
 0x37d   :  { %1171 = vmatpush1.bf16.msra.mxu0 %v2647_v44 }
 0x37e   :  { %2101 = vmatpush3.bf16.msra.mxu1 %v2675_v51  ;;  %1172 = vmatprep.subr.bf16.mxu0 %v2651_v45 }
 0x37f   :  { %2102 = vmatprep.subr.bf16.mxu1 %v3179_v35 }
 0x381   :  { %1173 = vmatpush1.bf16.msra.mxu0 %v2660_v47 }
 0x382   :  { %2103 = vmatpush3.bf16.msra.mxu1 %v2681_v52  ;;  %1174 = vmatprep.subr.bf16.mxu0 %v2663_v48 }
 0x383   :  { %2104 = vmatprep.subr.bf16.mxu1 %v3179_v35 }
 0x385   :  { %1175 = vmatpush1.bf16.msra.mxu0 %v2670_v50 }
 0x386   :  { %2105 = vmatpush3.bf16.msra.mxu1 %v2688_v54  ;;  %1293 = vmatprep.subr.bf16.mxu0 %v2602_v24 }
 0x387   :  { %2110 = vmatprep.subr.bf16.mxu1 %v3179_v35 }
 0x428   :  { %v1061_v63 = vpop.f32.mrf.mxu0  ;;  %v1102_v16 = vpop.f32.mrf.mxu1 }
 0x429   :  { %v1108_v20 = vadd.f32 %v1061_v63, %v2736_v62  ;;  %v1122_v61 = vadd.f32 %v2773_v15, %v1102_v16 }
 0x42a   :  { %v1063_v57 = vpop.f32.mrf.mxu0  ;;  %v2088_v17 = vpop.f32.mrf.mxu1 }
 0x42b   :  { %v1874_v21 = vmul.f32 -1.442695, %v1108_v20  ;;  %v1115_v18 = vadd.f32 %v1063_v57, %v2740_v1 }
 0x42c   :  { %v1065_v59 = vpop.f32.mrf.mxu0  ;;  %v1105_v23 = vpop.f32.mrf.mxu1 }
 0x42d   :  { %2321 = vpow2.f32 %v1874_v21  ;;  %v1875_v28 = vmul.f32 -1.442695, %v1115_v18 }
 0x42e   :  { %v1066_v0 = vpop.f32.mrf.mxu0  ;;  %v2089_v60 = vpop.f32.mrf.mxu1 }
 0x42f   :  { %2323 = vpow2.f32 %v1875_v28 }
 0x43a   :  { %v2322_v37 = vpop.eup %2321 }
 0x43b   :  { %v1112_v25 = vadd.f32 1.0, %v2322_v37 }
 0x43c   :  { %v2324_v55 = vpop.eup %2323 }
 0x43d   :  { %2325 = vrcp.f32 %v1112_v25  ;;  %v1119_v58 = vadd.f32 1.0, %v2324_v55 }
 0x43f   :  { %2327 = vrcp.f32 %v1119_v58 }
 0x44a   :  { %v2326_v62 = vpop.eup %2325 }
 0x44b   :  { %v1123_v3 = vmul.f32 %v2326_v62, %v1122_v61 }
 0x44c   :  { %v2328_v63 = vpop.eup %2327 }
 0x44d   :  { %v1124_v56 = vadd.f32 %v2748_v6, %v1123_v3  ;;  %v1126_v20 = vsub.f32 1.0, %v2328_v63  ;;  %v1128_v1 = vmul.f32 %v2328_v63, %v2873_v31 }
 0x44f   :  { %2329 = vtanh.f32 %v1124_v56 }
 0x45c   :  { %v2330_v17 = vpop.eup %2329 }
 0x45d   :  { %v1127_v21 = vmul.f32 %v2330_v17, %v1126_v20 }
 0x45f   :  { %v2919_v57 = vadd.f32 %v1128_v1, %v1127_v21 }
 0x461   :  { %v1159_v59 = vpack.c.bf16 %v2919_v57, %v2919_v57  ;;  %v1130_v16 = vmul.f32 %v2779_v43, %v2919_v57 }
 0x463   :  { %1193 = vmatmul.mubr.bf16.vlgmr.msra.gmra.mxu0 %v1159_v59  ;;  %2107 = vmatmul.mubr.bf16.vlgmr.msra.gmra.mxu1 %v1159_v59 }
 0x464   :  { %1131 = vadd.xlane.f32.xlu1 %v1130_v16  ;;  %1294 = vmatpush1.bf16.msra.mxu0 %v2604_v26 }
 0x465   :  { %2111 = vmatpush3.bf16.msra.mxu1 %v2622_v34  ;;  %1295 = vmatprep.subr.bf16.mxu0 %v2607_v27 }
 0x466   :  { %2112 = vmatprep.subr.bf16.mxu1 %v3179_v35  ;;  %1325 = vmatprep.mubr.bf16.mxu0 %v3180_v9 }
 0x467   :  { %2126 = vmatprep.mubr.msk.bf16.mxu1 %vm2537_vm0, %v3179_v35 }
 0x468   :  { %1296 = vmatpush1.bf16.msra.mxu0 %v2610_v29 }
 0x469   :  { %2113 = vmatpush3.bf16.msra.mxu1 %v2633_v39  ;;  %1297 = vmatprep.subr.bf16.mxu0 %v2614_v30 }
 0x46a   :  { %2114 = vmatprep.subr.bf16.mxu1 %v3179_v35 }
 0x46c   :  { %1298 = vmatpush1.bf16.msra.mxu0 %v2617_v32 }
 0x46d   :  { %2115 = vmatpush3.bf16.msra.mxu1 %v2643_v42  ;;  %1299 = vmatprep.subr.bf16.mxu0 %v2620_v33 }
 0x46e   :  { %2116 = vmatprep.subr.bf16.mxu1 %v3179_v35 }
 0x470   :  { %1300 = vmatpush1.bf16.msra.mxu0 %v2626_v36 }
 0x471   :  { %2117 = vmatpush3.bf16.msra.mxu1 %v2654_v46  ;;  %1301 = vmatprep.subr.bf16.mxu0 %v2630_v38 }
 0x472   :  { %2118 = vmatprep.subr.bf16.mxu1 %v3179_v35 }
 0x474   :  { %1302 = vmatpush1.bf16.msra.mxu0 %v2637_v40 }
 0x475   :  { %2119 = vmatpush3.bf16.msra.mxu1 %v2666_v49  ;;  %1303 = vmatprep.subr.bf16.mxu0 %v2640_v41 }
 0x476   :  { %2120 = vmatprep.subr.bf16.mxu1 %v3179_v35 }
 0x478   :  { %1304 = vmatpush1.bf16.msra.mxu0 %v2647_v44 }
 0x479   :  { %2121 = vmatpush3.bf16.msra.mxu1 %v2675_v51  ;;  %1305 = vmatprep.subr.bf16.mxu0 %v2651_v45 }
 0x47a   :  { %2122 = vmatprep.subr.bf16.mxu1 %v3179_v35 }
 0x47c   :  { %1306 = vmatpush1.bf16.msra.mxu0 %v2660_v47 }
 0x47d   :  { %2123 = vmatpush3.bf16.msra.mxu1 %v2681_v52  ;;  %1307 = vmatprep.subr.bf16.mxu0 %v2663_v48 }
 0x47e   :  { %2124 = vmatprep.subr.bf16.mxu1 %v3179_v35 }
 0x480   :  { %1308 = vmatpush1.bf16.msra.mxu0 %v2670_v50 }
 0x481   :  { %2125 = vmatpush3.bf16.msra.mxu1 %v2688_v54  ;;  %1426 = vmatprep.subr.bf16.mxu0 %v2602_v24 }
 0x482   :  { %2130 = vmatprep.subr.bf16.mxu1 %v3179_v35 }
 0x523   :  { %v1194_v6 = vpop.f32.mrf.mxu0  ;;  %v1235_v23 = vpop.f32.mrf.mxu1 }
 0x524   :  { %v1241_v0 = vadd.f32 %v1194_v6, %v2742_v2  ;;  %v1255_v20 = vadd.f32 %v2773_v15, %v1235_v23 }
 0x525   :  { %v1196_v60 = vpop.f32.mrf.mxu0  ;;  %v2108_v18 = vpop.f32.mrf.mxu1 }
 0x526   :  { %v1876_v28 = vmul.f32 -1.442695, %v1241_v0  ;;  %v1248_v61 = vadd.f32 %v1196_v60, %v2744_v4 }
 0x527   :  { %v1198_v37 = vpop.f32.mrf.mxu0  ;;  %v1238_v25 = vpop.f32.mrf.mxu1 }
 0x528   :  { %2331 = vpow2.f32 %v1876_v28  ;;  %v1877_v62 = vmul.f32 -1.442695, %v1248_v61 }
 0x529   :  { %v1199_v55 = vpop.f32.mrf.mxu0  ;;  %v2109_v58 = vpop.f32.mrf.mxu1 }
 0x52a   :  { %2333 = vpow2.f32 %v1877_v62 }
 0x535   :  { %v2332_v3 = vpop.eup %2331 }
 0x536   :  { %v1245_v24 = vadd.f32 1.0, %v2332_v3 }
 0x537   :  { %v2334_v56 = vpop.eup %2333 }
 0x538   :  { %2335 = vrcp.f32 %v1245_v24  ;;  %v1252_v63 = vadd.f32 1.0, %v2334_v56 }
 0x53a   :  { %2337 = vrcp.f32 %v1252_v63 }
 0x545   :  { %v2336_v2 = vpop.eup %2335 }
 0x546   :  { %v1256_v17 = vmul.f32 %v2336_v2, %v1255_v20 }
 0x547   :  { %v2338_v1 = vpop.eup %2337 }
 0x548   :  { %v1257_v21 = vadd.f32 %v1256_v17, %v2764_v14  ;;  %v1259_v59 = vsub.f32 1.0, %v2338_v1  ;;  %v1261_v4 = vmul.f32 %v2338_v1, %v2919_v57  ;;  %v2408_v1 = vld [vmem:[#allocation12 + $0x94] ss:$12 sps:$4 sm:$0xff]  }
 0x54a   :  { %2339 = vtanh.f32 %v1257_v21  ;;  %v2406_v21 = vld [vmem:[#allocation12 + $0xa8] ss:$12 sps:$4 sm:$0xff]  }
 0x557   :  { %v2340_v16 = vpop.eup %2339 }
 0x558   :  { %v1260_v6 = vmul.f32 %v2340_v16, %v1259_v59  ;;  %v2409_v59 = vld [vmem:[#allocation12 + $0x90] ss:$12 sps:$4 sm:$0xff]  }
 0x559   :  { %v2410_v16 = vld [vmem:[#allocation12 + $0x7c] ss:$12 sps:$4 sm:$0xff]  }
 0x55a   :  { %v2965_v0 = vadd.f32 %v1261_v4, %v1260_v6  ;;  %v2411_v6 = vld [vmem:[#allocation12 + $0x78] ss:$12 sps:$4 sm:$0xff]  }
 0x55b   :  { %v2412_v4 = vld [vmem:[#allocation12 + $0x64] ss:$12 sps:$4 sm:$0xff]  }
 0x55c   :  { %v1292_v60 = vpack.c.bf16 %v2965_v0, %v2965_v0  ;;  %v1263_v23 = vmul.f32 %v2779_v43, %v2965_v0 }
 0x55e   :  { %1326 = vmatmul.mubr.bf16.vlgmr.msra.gmra.mxu0 %v1292_v60  ;;  %2127 = vmatmul.mubr.bf16.vlgmr.msra.gmra.mxu1 %v1292_v60  ;;  %v2414_v60 = vld [vmem:[#allocation12 + $0x4c] ss:$12 sps:$4 sm:$0xff]  }
 0x55f   :  { %1264 = vadd.xlane.f32.xlu0 %v1263_v23  ;;  %1427 = vmatpush1.bf16.msra.mxu0 %v2604_v26  ;;  %v2405_v26 = vld [vmem:[#allocation12 + $0xac] ss:$12 sps:$4 sm:$0xff]   ;;  %v2416_v23 = vld [vmem:[#allocation12 + $0x34] ss:$12 sps:$4 sm:$0xff]  }
 0x560   :  { %2131 = vmatpush3.bf16.msra.mxu1 %v2622_v34  ;;  %1428 = vmatprep.subr.bf16.mxu0 %v2607_v27 }
 0x561   :  { %2132 = vmatprep.subr.bf16.mxu1 %v3179_v35  ;;  %1458 = vmatprep.mubr.bf16.mxu0 %v3180_v9 }
 0x562   :  { %2146 = vmatprep.mubr.msk.bf16.mxu1 %vm2537_vm0, %v3179_v35 }
 0x563   :  { %1429 = vmatpush1.bf16.msra.mxu0 %v2610_v29 }
 0x564   :  { %2133 = vmatpush3.bf16.msra.mxu1 %v2633_v39  ;;  %1430 = vmatprep.subr.bf16.mxu0 %v2614_v30 }
 0x565   :  { %2134 = vmatprep.subr.bf16.mxu1 %v3179_v35 }
 0x567   :  { %1431 = vmatpush1.bf16.msra.mxu0 %v2617_v32 }
 0x568   :  { %2135 = vmatpush3.bf16.msra.mxu1 %v2643_v42  ;;  %1432 = vmatprep.subr.bf16.mxu0 %v2620_v33 }
 0x569   :  { %2136 = vmatprep.subr.bf16.mxu1 %v3179_v35 }
 0x56b   :  { %1433 = vmatpush1.bf16.msra.mxu0 %v2626_v36 }
 0x56c   :  { %2137 = vmatpush3.bf16.msra.mxu1 %v2654_v46  ;;  %1434 = vmatprep.subr.bf16.mxu0 %v2630_v38 }
 0x56d   :  { %2138 = vmatprep.subr.bf16.mxu1 %v3179_v35 }
 0x56f   :  { %1435 = vmatpush1.bf16.msra.mxu0 %v2637_v40 }
 0x570   :  { %2139 = vmatpush3.bf16.msra.mxu1 %v2666_v49  ;;  %1436 = vmatprep.subr.bf16.mxu0 %v2640_v41 }
 0x571   :  { %2140 = vmatprep.subr.bf16.mxu1 %v3179_v35 }
 0x573   :  { %1437 = vmatpush1.bf16.msra.mxu0 %v2647_v44 }
 0x574   :  { %2141 = vmatpush3.bf16.msra.mxu1 %v2675_v51  ;;  %1438 = vmatprep.subr.bf16.mxu0 %v2651_v45 }
 0x575   :  { %2142 = vmatprep.subr.bf16.mxu1 %v3179_v35 }
 0x577   :  { %1439 = vmatpush1.bf16.msra.mxu0 %v2660_v47 }
 0x578   :  { %2143 = vmatpush3.bf16.msra.mxu1 %v2681_v52  ;;  %1440 = vmatprep.subr.bf16.mxu0 %v2663_v48 }
 0x579   :  { %2144 = vmatprep.subr.bf16.mxu1 %v3179_v35 }
 0x57b   :  { %1441 = vmatpush1.bf16.msra.mxu0 %v2670_v50 }
 0x57c   :  { %2145 = vmatpush3.bf16.msra.mxu1 %v2688_v54  ;;  %1559 = vmatprep.subr.bf16.mxu0 %v2405_v26 }
 0x57d   :  { %2150 = vmatprep.subr.bf16.mxu1 %v3179_v35 }
 0x61e   :  { %v1327_v27 = vpop.f32.mrf.mxu0  ;;  %v1368_v29 = vpop.f32.mrf.mxu1 }
 0x61f   :  { %v1374_v30 = vadd.f32 %v1327_v27, %v2746_v5  ;;  %v1388_v58 = vadd.f32 %v2773_v15, %v1368_v29 }
 0x620   :  { %v1329_v32 = vpop.f32.mrf.mxu0  ;;  %v2128_v33 = vpop.f32.mrf.mxu1 }
 0x621   :  { %v1878_v34 = vmul.f32 -1.442695, %v1374_v30  ;;  %v1381_v14 = vadd.f32 %v1329_v32, %v2750_v7 }
 0x622   :  { %v1331_v36 = vpop.f32.mrf.mxu0  ;;  %v1371_v38 = vpop.f32.mrf.mxu1 }
 0x623   :  { %2341 = vpow2.f32 %v1878_v34  ;;  %v1879_v18 = vmul.f32 -1.442695, %v1381_v14  ;;  %v3043_v38 = vpop.xlane.xlu0 %732  ;;  %v3047_v14 = vpop.xlane.xlu1 %998 }
 0x624   :  { %v1332_v40 = vpop.f32.mrf.mxu0  ;;  %v2129_v41 = vpop.f32.mrf.mxu1 }
 0x625   :  { %2343 = vpow2.f32 %v1879_v18  ;;  %v449_v41 = vld [vmem:[#allocation4] sm:$0xff] }
 0x630   :  { %v2342_v28 = vpop.eup %2341 }
 0x631   :  { %v1378_v37 = vadd.f32 1.0, %v2342_v28 }
 0x632   :  { %v2344_v25 = vpop.eup %2343 }
 0x633   :  { %2345 = vrcp.f32 %v1378_v37  ;;  %v1385_v55 = vadd.f32 1.0, %v2344_v25  ;;  %v3050_v37 = vmax.f32 %v449_v41, %v3043_v38 }
 0x635   :  { %2347 = vrcp.f32 %v1385_v55 }
 0x640   :  { %v2346_v5 = vpop.eup %2345 }
 0x641   :  { %v1389_v61 = vmul.f32 %v2346_v5, %v1388_v58  ;;  %v3057_v58 = vpop.xlane.xlu1 %1131 }
 0x642   :  { %v2348_v3 = vpop.eup %2347 }
 0x643   :  { %v1390_v62 = vadd.f32 %v1389_v61, %v2768_v22  ;;  %v1392_v24 = vsub.f32 1.0, %v2348_v3  ;;  %v1394_v7 = vmul.f32 %v2348_v3, %v2965_v0  ;;  %v2407_v22 = vld [vmem:[#allocation12 + $0xb0] ss:$12 sps:$4 sm:$0xff]  }
 0x645   :  { %2349 = vtanh.f32 %v1390_v62 }
 0x652   :  { %v2350_v56 = vpop.eup %2349 }
 0x653   :  { %v1393_v63 = vmul.f32 %v2350_v56, %v1392_v24 }
 0x655   :  { %v3010_v20 = vadd.f32 %v1394_v7, %v1393_v63  ;;  %v735_v63 = vsub.f32 %v449_v41, %v3050_v37 }
 0x657   :  { %v1425_v2 = vpack.c.bf16 %v3010_v20, %v3010_v20  ;;  %v1396_v17 = vmul.f32 %v2779_v43, %v3010_v20 }
 0x659   :  { %1459 = vmatmul.mubr.bf16.vlgmr.msra.gmra.mxu0 %v1425_v2  ;;  %2147 = vmatmul.mubr.bf16.vlgmr.msra.gmra.mxu1 %v1425_v2 }
 0x65a   :  { %1397 = vadd.xlane.f32.xlu1 %v1396_v17  ;;  %1560 = vmatpush1.bf16.msra.mxu0 %v2406_v21  ;;  %v736_v17 = vmul.f32 1.442695, %v735_v63 }
 0x65b   :  { %2151 = vmatpush3.bf16.msra.mxu1 %v2407_v22  ;;  %1561 = vmatprep.subr.bf16.mxu0 %v2408_v1 }
 0x65c   :  { %2152 = vmatprep.subr.bf16.mxu1 %v3179_v35  ;;  %1591 = vmatprep.mubr.bf16.mxu0 %v3180_v9  ;;  %v2413_v9 = vld [vmem:[#allocation12 + $0x60] ss:$12 sps:$4 sm:$0xff]  }
 0x65d   :  { %2166 = vmatprep.mubr.msk.bf16.mxu1 %vm2537_vm0, %v3179_v35 }
 0x65e   :  { %1562 = vmatpush1.bf16.msra.mxu0 %v2409_v59 }
 0x65f   :  { %2153 = vmatpush3.bf16.msra.mxu1 %v2633_v39  ;;  %1563 = vmatprep.subr.bf16.mxu0 %v2410_v16  ;;  %v2415_v39 = vld [vmem:[#allocation12 + $0x48] ss:$12 sps:$4 sm:$0xff]  }
 0x660   :  { %2154 = vmatprep.subr.bf16.mxu1 %v3179_v35 }
 0x662   :  { %1564 = vmatpush1.bf16.msra.mxu0 %v2411_v6 }
 0x663   :  { %2155 = vmatpush3.bf16.msra.mxu1 %v2643_v42  ;;  %1565 = vmatprep.subr.bf16.mxu0 %v2412_v4 }
 0x664   :  { %2156 = vmatprep.subr.bf16.mxu1 %v3179_v35 }
 0x666   :  { %1566 = vmatpush1.bf16.msra.mxu0 %v2413_v9 }
 0x667   :  { %2157 = vmatpush3.bf16.msra.mxu1 %v2654_v46  ;;  %1567 = vmatprep.subr.bf16.mxu0 %v2414_v60 }
 0x668   :  { %2158 = vmatprep.subr.bf16.mxu1 %v3179_v35 }
 0x66a   :  { %1568 = vmatpush1.bf16.msra.mxu0 %v2415_v39 }
 0x66b   :  { %2159 = vmatpush3.bf16.msra.mxu1 %v2666_v49  ;;  %1569 = vmatprep.subr.bf16.mxu0 %v2416_v23 }
 0x66c   :  { %2160 = vmatprep.subr.bf16.mxu1 %v3179_v35 }
 0x66e   :  { %1570 = vmatpush1.bf16.msra.mxu0 %v2647_v44 }
 0x66f   :  { %2161 = vmatpush3.bf16.msra.mxu1 %v2675_v51  ;;  %1571 = vmatprep.subr.bf16.mxu0 %v2651_v45 }
 0x670   :  { %2162 = vmatprep.subr.bf16.mxu1 %v3179_v35 }
 0x672   :  { %1572 = vmatpush1.bf16.msra.mxu0 %v2660_v47 }
 0x673   :  { %2163 = vmatpush3.bf16.msra.mxu1 %v2681_v52  ;;  %1573 = vmatprep.subr.bf16.mxu0 %v2663_v48 }
 0x674   :  { %2164 = vmatprep.subr.bf16.mxu1 %v3179_v35 }
 0x676   :  { %1574 = vmatpush1.bf16.msra.mxu0 %v2670_v50 }
 0x677   :  { %2165 = vmatpush3.bf16.msra.mxu1 %v2688_v54  ;;  %2170 = vmatprep.subr.mxu0 %v3179_v35 }
 0x6e3   :  { %v1398_v2 = vpop.xlane.xlu1 %1397 }
 0x719   :  { %v1460_v42 = vpop.f32.mrf.mxu0  ;;  %v1501_v44 = vpop.f32.mrf.mxu1 }
 0x71a   :  { %v1507_v45 = vadd.f32 %v1460_v42, %v2752_v8  ;;  %v1521_v33 = vadd.f32 %v2773_v15, %v1501_v44 }
 0x71b   :  { %v1462_v46 = vpop.f32.mrf.mxu0  ;;  %v2148_v49 = vpop.f32.mrf.mxu1 }
 0x71c   :  { %v1880_v51 = vmul.f32 -1.442695, %v1507_v45  ;;  %v1514_v27 = vadd.f32 %v1462_v46, %v2756_v10  ;;  %v3045_v10 = vpop.xlane.xlu0 %865 }
 0x71d   :  { %v1464_v47 = vpop.f32.mrf.mxu0  ;;  %v1504_v26 = vpop.f32.mrf.mxu1 }
 0x71e   :  { %2351 = vpow2.f32 %v1880_v51  ;;  %v1881_v29 = vmul.f32 -1.442695, %v1514_v27 }
 0x71f   :  { %v1465_v52 = vpop.f32.mrf.mxu0  ;;  %v2149_v48 = vpop.f32.mrf.mxu1 }
 0x720   :  { %2353 = vpow2.f32 %v1881_v29  ;;  %v1265_v62 = vpop.xlane.xlu0 %1264 }
 0x72b   :  { %v2352_v50 = vpop.eup %2351 }
 0x72c   :  { %v1511_v54 = vadd.f32 1.0, %v2352_v50 }
 0x72d   :  { %v2354_v30 = vpop.eup %2353 }
 0x72e   :  { %2355 = vrcp.f32 %v1511_v54  ;;  %v1518_v32 = vadd.f32 1.0, %v2354_v30 }
 0x730   :  { %2357 = vrcp.f32 %v1518_v32 }
 0x73b   :  { %v2356_v8 = vpop.eup %2355 }
 0x73c   :  { %v1522_v34 = vmul.f32 %v2356_v8, %v1521_v33 }
 0x73d   :  { %v2358_v40 = vpop.eup %2357 }
 0x73e   :  { %v1523_v36 = vadd.f32 %v2758_v11, %v1522_v34  ;;  %v1525_v18 = vsub.f32 1.0, %v2358_v40  ;;  %v1527_v55 = vmul.f32 %v2358_v40, %v3010_v20  ;;  %v3055_v11 = vmax.f32 %v3050_v37, %v3045_v10  ;;  %v3181_v40 = vld [vmem:[#allocation20_spill] sm:$0xff] }
 0x740   :  { %2359 = vtanh.f32 %v1523_v36  ;;  %v3063_v61 = vmax.f32 %v3055_v11, %v3047_v14  ;;  %v868_v63 = vsub.f32 %v3050_v37, %v3055_v11 }
 0x741   :  { %2361 = vpow2.f32 %v736_v17  ;;  %v871_v17 = vsub.f32 %v3045_v10, %v3055_v11 }
 0x742   :  { %v3071_v56 = vmax.f32 %v3063_v61, %v3057_v58 }
 0x744   :  { %v3075_v7 = vmax.f32 %v3071_v56, %v1265_v62  ;;  %v1137_v10 = vsub.f32 %v3057_v58, %v3071_v56 }
 0x746   :  { %v1270_v21 = vsub.f32 %v1265_v62, %v3075_v7  ;;  %v3081_v22 = vmax.f32 %v3075_v7, %v1398_v2  ;;  %v738_v62 = vsub.f32 %v3043_v38, %v3050_v37  ;;  %v1001_v38 = vsub.f32 %v3055_v11, %v3063_v61 }
 0x747   :  { %v1134_v37 = vsub.f32 %v3063_v61, %v3071_v56  ;;  %v1138_v11 = vmul.f32 1.442695, %v1137_v10  ;;  %v1705_v10 = vld [vmem:[#allocation13 + $0x10] sm:$0xff] }
 0x748   :  { %v1271_v1 = vmul.f32 1.442695, %v1270_v21  ;;  %v1403_v59 = vsub.f32 %v1398_v2, %v3081_v22  ;;  %v869_v2 = vmul.f32 1.442695, %v868_v63  ;;  %v872_v21 = vmul.f32 1.442695, %v871_v17 }
 0x74a   :  { %2363 = vpow2.f32 %v1271_v1  ;;  %v1404_v16 = vmul.f32 1.442695, %v1403_v59  ;;  %v1002_v1 = vmul.f32 1.442695, %v1001_v38  ;;  %v1711_v38 = vld [vmem:[#allocation13 + $0x40] sm:$0xff] }
 0x74c   :  { %2365 = vpow2.f32 %v1404_v16 }
 0x74d   :  { %v2360_v28 = vpop.eup %2359 }
 0x74e   :  { %v1526_v25 = vmul.f32 %v2360_v28, %v1525_v18  ;;  %v3084_v6 = vpop.eup %2361 }
 0x750   :  { %v3059_v5 = vadd.f32 %v1527_v55, %v1526_v25 }
 0x752   :  { %v1558_v3 = vpack.c.bf16 %v3059_v5, %v3059_v5  ;;  %v1529_v24 = vmul.f32 %v2779_v43, %v3059_v5 }
 0x754   :  { %1592 = vmatmul.mubr.bf16.vlgmr.msra.gmra.mxu0 %v1558_v3  ;;  %2167 = vmatmul.mubr.bf16.vlgmr.msra.gmra.mxu1 %v1558_v3 }
 0x755   :  { %1530 = vadd.xlane.f32.xlu0 %v1529_v24  ;;  %2202 = vmatprep.mubr.msk.f32.mxu0 %vm2537_vm0, %v3179_v35  ;;  %v739_v24 = vmul.f32 1.442695, %v738_v62 }
 0x757   :  { %v3087_v4 = vpop.eup %2363 }
 0x759   :  { %v3090_v9 = vpop.eup %2365 }
 0x76b   :  { %745 = vperm.xlu0 %2221, %v3084_v6  }
 0x76f   :  { %1283 = vperm.xlu0 %2221, %v3087_v4  }
 0x773   :  { %1416 = vperm.xlu0 %2221, %v3090_v9  }
 0x7de   :  { %v1531_v60 = vpop.xlane.xlu0 %1530 }
 0x7df   :  { %v3094_v39 = vmax.f32 %v3081_v22, %v1531_v60 }
 0x7e1   :  { %v1536_v23 = vsub.f32 %v1531_v60, %v3094_v39  ;;  %v1135_v60 = vmul.f32 1.442695, %v1134_v37  ;;  %v1533_v58 = vsub.f32 %v3081_v22, %v3094_v39 }
 0x7e3   :  { %v1537_v42 = vmul.f32 1.442695, %v1536_v23 }
 0x7e5   :  { %2367 = vpow2.f32 %v1537_v42  ;;  %v1267_v42 = vsub.f32 %v3071_v56, %v3075_v7 }
 0x7f2   :  { %v3097_v44 = vpop.eup %2367 }
 0x7f3   :  { %1549 = vperm.xlu0 %2221, %v3097_v44  }
 0x814   :  { %v1593_v45 = vpop.f32.mrf.mxu0  ;;  %v1634_v46 = vpop.f32.mrf.mxu1 }
 0x815   :  { %v1640_v49 = vadd.f32 %v1593_v45, %v2760_v12  ;;  %v1654_v34 = vadd.f32 %v2773_v15, %v1634_v46  ;;  %v1268_v45 = vmul.f32 1.442695, %v1267_v42 }
 0x816   :  { %v1595_v51 = vpop.f32.mrf.mxu0  ;;  %v2168_v47 = vpop.f32.mrf.mxu1 }
 0x817   :  { %v1882_v26 = vmul.f32 -1.442695, %v1640_v49  ;;  %v1647_v50 = vadd.f32 %v1595_v51, %v2762_v13  ;;  %v1534_v47 = vmul.f32 1.442695, %v1533_v58 }
 0x818   :  { %v1597_v52 = vpop.f32.mrf.mxu0  ;;  %v1637_v48 = vpop.f32.mrf.mxu1 }
 0x819   :  { %2369 = vpow2.f32 %v1882_v26  ;;  %v1883_v54 = vmul.f32 -1.442695, %v1647_v50  ;;  %v1715_v50 = vld [vmem:[#allocation13 + $0x60] sm:$0xff] }
 0x81a   :  { %v1598_v27 = vpop.f32.mrf.mxu0  ;;  %v2169_v29 = vpop.f32.mrf.mxu1 }
 0x81b   :  { %2371 = vpow2.f32 %v1883_v54  ;;  %v1717_v27 = vld [vmem:[#allocation13 + $0x70] sm:$0xff]  ;;  %v1714_v54 = vld [vmem:[#allocation13 + $0x58] sm:$0xff] }
 0x826   :  { %v2370_v30 = vpop.eup %2369 }
 0x827   :  { %v1644_v32 = vadd.f32 1.0, %v2370_v30  ;;  %v1713_v30 = vld [vmem:[#allocation13 + $0x50] sm:$0xff] }
 0x828   :  { %v2372_v33 = vpop.eup %2371 }
 0x829   :  { %2373 = vrcp.f32 %v1644_v32  ;;  %v1651_v8 = vadd.f32 1.0, %v2372_v33  ;;  %v450_v32 = vld [vmem:[#allocation5] sm:$0xff] }
 0x82a   :  { %v741_v33 = vmul.f32 %v3084_v6, %v450_v32 }
 0x82b   :  { %2375 = vrcp.f32 %v1651_v8 }
 0x836   :  { %v2374_v12 = vpop.eup %2373 }
 0x837   :  { %v1655_v36 = vmul.f32 %v2374_v12, %v1654_v34 }
 0x838   :  { %v2376_v18 = vpop.eup %2375 }
 0x839   :  { %v1656_v41 = vadd.f32 %v3181_v40, %v1655_v36  ;;  %v1658_v28 = vsub.f32 1.0, %v2376_v18  ;;  %v1660_v13 = vmul.f32 %v2376_v18, %v3059_v5 }
 0x83b   :  { %2377 = vtanh.f32 %v1656_v41 }
 0x83c   :  { %2379 = vpow2.f32 %v739_v24 }
 0x83d   :  { %2381 = vpow2.f32 %v869_v2 }
 0x83e   :  { %2383 = vpow2.f32 %v872_v21  ;;  %v1712_v21 = vld [vmem:[#allocation13 + $0x48] sm:$0xff] }
 0x83f   :  { %2385 = vpow2.f32 %v1002_v1 }
 0x848   :  { %v2378_v25 = vpop.eup %2377 }
 0x849   :  { %v1659_v55 = vmul.f32 %v2378_v25, %v1658_v28  ;;  %v2380_v16 = vpop.eup %2379 }
 0x84a   :  { %v2382_v23 = vpop.eup %2381  ;;  %v742_v8 = vadd.f32 %v2380_v16, %v741_v33 }
 0x84b   :  { %v3107_v3 = vadd.f32 %v1660_v13, %v1659_v55 }
 0x84c   :  { %v874_v34 = vmul.f32 %v2382_v23, %v742_v8 }
 0x84d   :  { %v1662_v15 = vmul.f32 %v2779_v43, %v3107_v3  ;;  %v1004_v43 = vsub.f32 %v3047_v14, %v3063_v61  ;;  %v2384_v14 = vpop.eup %2383  ;;  %v1400_v61 = vsub.f32 %v3075_v7, %v3081_v22  ;;  %v1718_v7 = vld [vmem:[#allocation13 + $0x78] sm:$0xff]  ;;  %v1716_v22 = vld [vmem:[#allocation13 + $0x68] sm:$0xff] }
 0x84e   :  { %v2386_v46 = vpop.eup %2385  ;;  %2171 = vmatpush3.msra.mxu0 %v1718_v7  ;;  %v875_v12 = vadd.f32 %v2384_v14, %v874_v34 }
 0x84f   :  { %1663 = vadd.xlane.f32.xlu1 %v1662_v15  ;;  %v1005_v59 = vmul.f32 1.442695, %v1004_v43  ;;  %v1401_v49 = vmul.f32 1.442695, %v1400_v61  ;;  %2172 = vmatprep.subr.mxu0 %v3179_v35 }
 0x850   :  { %2173 = vmatpush3.msra.mxu0 %v1717_v27  ;;  %v1007_v36 = vmul.f32 %v2386_v46, %v875_v12 }
 0x851   :  { %2387 = vpow2.f32 %v1005_v59  ;;  %2174 = vmatprep.subr.mxu0 %v3179_v35 }
 0x852   :  { %2389 = vpow2.f32 %v1135_v60  ;;  %2175 = vmatpush3.msra.mxu0 %v1716_v22  ;;  %v1706_v60 = vld [vmem:[#allocation13 + $0x18] sm:$0xff] }
 0x853   :  { %2391 = vpow2.f32 %v1138_v11  ;;  %2176 = vmatprep.subr.mxu0 %v3179_v35  ;;  %v1703_v11 = vld [vmem:[#allocation13] sm:$0xff] }
 0x854   :  { %2393 = vpow2.f32 %v1268_v45  ;;  %2177 = vmatpush3.msra.mxu0 %v1715_v50 }
 0x855   :  { %2395 = vpow2.f32 %v1401_v49  ;;  %2178 = vmatprep.subr.mxu0 %v3179_v35  ;;  %v746_v49 = vpop.permute.xlu0 %745 }
 0x856   :  { %2397 = vpow2.f32 %v1534_v47  ;;  %2179 = vmatpush3.msra.mxu0 %v1714_v54 }
 0x857   :  { %2180 = vmatprep.subr.mxu0 %v3179_v35 }
 0x858   :  { %2181 = vmatpush3.msra.mxu0 %v1713_v30 }
 0x859   :  { %2182 = vmatprep.subr.mxu0 %v3179_v35  ;;  %v1284_v33 = vpop.permute.xlu0 %1283 }
 0x85a   :  { %2183 = vmatpush3.msra.mxu0 %v1712_v21  ;;  %v1286_v8 = vmul.f32 %v1284_v33, %v2965_v0 }
 0x85b   :  { %2184 = vmatprep.subr.mxu0 %v3179_v35 }
 0x85c   :  { %2185 = vmatpush3.msra.mxu0 %v1711_v38 }
 0x85d   :  { %2186 = vmatprep.subr.mxu0 %v3179_v35 }
 0x85e   :  { %v2388_v51 = vpop.eup %2387 }
 0x85f   :  { %v2390_v26 = vpop.eup %2389  ;;  %v1008_v40 = vadd.f32 %v2388_v51, %v1007_v36 }
 0x860   :  { %751 = vperm.xlu1 %2222, %v2380_v16   ;;  %v2392_v56 = vpop.eup %2391 }
 0x861   :  { %v2394_v52 = vpop.eup %2393  ;;  %v1140_v41 = vmul.f32 %v2390_v26, %v1008_v40 }
 0x862   :  { %v2396_v48 = vpop.eup %2395 }
 0x863   :  { %v2398_v29 = vpop.eup %2397  ;;  %v1141_v28 = vadd.f32 %v2392_v56, %v1140_v41 }
 0x864   :  { %878 = vperm.xlu1 %2222, %v2382_v23   ;;  %v1704_v23 = vld [vmem:[#allocation13 + $0x8] sm:$0xff] }
 0x865   :  { %v1273_v55 = vmul.f32 %v2394_v52, %v1141_v28 }
 0x867   :  { %v1274_v6 = vadd.f32 %v3087_v4, %v1273_v55  ;;  %v1709_v4 = vld [vmem:[#allocation13 + $0x30] sm:$0xff] }
 0x868   :  { %884 = vperm.xlu1 %2222, %v2384_v14  }
 0x869   :  { %v1406_v63 = vmul.f32 %v2396_v48, %v1274_v6 }
 0x86b   :  { %v1407_v2 = vadd.f32 %v3090_v9, %v1406_v63  ;;  %v1708_v9 = vld [vmem:[#allocation13 + $0x28] sm:$0xff] }
 0x86c   :  { %1011 = vperm.xlu1 %2222, %v2386_v46  }
 0x86d   :  { %v1539_v17 = vmul.f32 %v2398_v29, %v1407_v2 }
 0x86f   :  { %v1540_v1 = vadd.f32 %v3097_v44, %v1539_v17  ;;  %v1707_v44 = vld [vmem:[#allocation13 + $0x20] sm:$0xff] }
 0x870   :  { %1017 = vperm.xlu1 %2222, %v2388_v51   ;;  %v748_v51 = vmul.f32 0.0, %v746_v49 }
 0x874   :  { %1144 = vperm.xlu1 %2222, %v2390_v26  }
 0x878   :  { %1150 = vperm.xlu1 %2222, %v2392_v56  }
 0x87c   :  { %1277 = vperm.xlu1 %2222, %v2394_v52  }
 0x880   :  { %1410 = vperm.xlu1 %2222, %v2396_v48  }
 0x884   :  { %1543 = vperm.xlu1 %2222, %v2398_v29  }
 0x8d8   :  { %v1664_v18 = vpop.xlane.xlu1 %1663 }
 0x8d9   :  { %v1665_v25 = vmax.f32 %v3094_v39, %v1664_v18 }
 0x8db   :  { %v1666_v13 = vsub.f32 %v3094_v39, %v1665_v25  ;;  %v1669_v62 = vsub.f32 %v1664_v18, %v1665_v25  ;;  %1689 = vst.msk [vmem:[#allocation4] sm:$0xff] %vm88_vm1, %v1665_v25  ;;  %v1710_v39 = vld [vmem:[#allocation13 + $0x38] sm:$0xff] }
 0x8dc   :  { %2187 = vmatpush3.msra.mxu0 %v1710_v39  ;;  %v752_v14 = vpop.permute.xlu1 %751 }
 0x8dd   :  { %v1667_v15 = vmul.f32 1.442695, %v1666_v13  ;;  %v1670_v24 = vmul.f32 1.442695, %v1669_v62  ;;  %2188 = vmatprep.subr.mxu0 %v3179_v35  ;;  %v754_v58 = vmul.f32 %v752_v14, %v2781_v53 }
 0x8de   :  { %2189 = vmatpush3.msra.mxu0 %v1709_v4 }
 0x8df   :  { %2399 = vpow2.f32 %v1667_v15  ;;  %2190 = vmatprep.subr.mxu0 %v3179_v35  ;;  %v755_v26 = vadd.f32 %v754_v58, %v748_v51 }
 0x8e0   :  { %2401 = vpow2.f32 %v1670_v24  ;;  %2191 = vmatpush3.msra.mxu0 %v1708_v9  ;;  %v879_v45 = vpop.permute.xlu1 %878 }
 0x8e1   :  { %2192 = vmatprep.subr.mxu0 %v3179_v35  ;;  %v881_v52 = vmul.f32 %v879_v45, %v755_v26 }
 0x8e2   :  { %2193 = vmatpush3.msra.mxu0 %v1707_v44 }
 0x8e3   :  { %2194 = vmatprep.subr.mxu0 %v3179_v35 }
 0x8e4   :  { %2195 = vmatpush3.msra.mxu0 %v1706_v60  ;;  %v885_v61 = vpop.permute.xlu1 %884 }
 0x8e5   :  { %2196 = vmatprep.subr.mxu0 %v3179_v35  ;;  %v887_v56 = vmul.f32 %v885_v61, %v2827_v19  ;;  %v1417_v19 = vpop.permute.xlu0 %1416 }
 0x8e6   :  { %2197 = vmatpush3.msra.mxu0 %v1705_v10  ;;  %v1419_v40 = vmul.f32 %v1417_v19, %v3010_v20  ;;  %v1884_v20 = vld [vmem:[%s3172_s6] ss:$0 sm:$0xff] }
 0x8e7   :  { %2198 = vmatprep.subr.mxu0 %v3179_v35  ;;  %v888_v7 = vadd.f32 %v887_v56, %v881_v52 }
 0x8e8   :  { %2199 = vmatpush3.msra.mxu0 %v1704_v23  ;;  %v1012_v46 = vpop.permute.xlu1 %1011 }
 0x8e9   :  { %2200 = vmatprep.subr.mxu0 %v3179_v35  ;;  %v1014_v27 = vmul.f32 %v1012_v46, %v888_v7  ;;  %v1550_v18 = vpop.permute.xlu0 %1549 }
 0x8ea   :  { %2201 = vmatpush3.msra.mxu0 %v1703_v11  ;;  %v1552_v25 = vmul.f32 %v1550_v18, %v3059_v5 }
 0x8ec   :  { %v2400_v43 = vpop.eup %2399  ;;  %v1018_v47 = vpop.permute.xlu1 %1017 }
 0x8ed   :  { %v2402_v59 = vpop.eup %2401  ;;  %v1672_v37 = vmul.f32 %v2400_v43, %v1540_v1  ;;  %1676 = vperm.xlu1 %2222, %v2400_v43   ;;  %v1020_v35 = vmul.f32 %v1018_v47, %v2873_v31 }
 0x8ee   :  { %1682 = vperm.xlu0 %2221, %v2402_v59  }
 0x8ef   :  { %v1673_v16 = vadd.f32 %v2402_v59, %v1672_v37  ;;  %v1021_v22 = vadd.f32 %v1020_v35, %v1014_v27 }
 0x8f0   :  { %v1145_v48 = vpop.permute.xlu1 %1144 }
 0x8f1   :  { %1690 = vst.msk [vmem:[#allocation5] sm:$0xff] %vm88_vm1, %v1673_v16  ;;  %2403 = vrcp.f32 %v1673_v16  ;;  %v1147_v54 = vmul.f32 %v1145_v48, %v1021_v22 }
 0x8f4   :  { %v1151_v29 = vpop.permute.xlu1 %1150 }
 0x8f5   :  { %v1153_v50 = vmul.f32 %v1151_v29, %v2919_v57 }
 0x8f7   :  { %v1154_v30 = vadd.f32 %v1153_v50, %v1147_v54 }
 0x8f8   :  { %v1278_v32 = vpop.permute.xlu1 %1277 }
 0x8f9   :  { %v1280_v53 = vmul.f32 %v1278_v32, %v1154_v30 }
 0x8fb   :  { %v1287_v34 = vadd.f32 %v1286_v8, %v1280_v53 }
 0x8fc   :  { %v1411_v12 = vpop.permute.xlu1 %1410 }
 0x8fd   :  { %v1413_v36 = vmul.f32 %v1411_v12, %v1287_v34 }
 0x8fe   :  { %v2404_v42 = vpop.eup %2403 }
 0x8ff   :  { %1699 = vperm.xlu1 %2222, %v2404_v42   ;;  %v1420_v41 = vadd.f32 %v1419_v40, %v1413_v36 }
 0x900   :  { %v1544_v31 = vpop.permute.xlu1 %1543 }
 0x901   :  { %v1546_v28 = vmul.f32 %v1544_v31, %v1420_v41 }
 0x903   :  { %v1553_v13 = vadd.f32 %v1552_v25, %v1546_v28 }
 0x968   :  { %v1677_v57 = vpop.permute.xlu1 %1676 }
 0x969   :  { %v1683_v55 = vpop.permute.xlu0 %1682  ;;  %v1679_v62 = vmul.f32 %v1677_v57, %v1553_v13 }
 0x96a   :  { %v1685_v15 = vmul.f32 %v1683_v55, %v3107_v3 }
 0x96c   :  { %v1686_v24 = vadd.f32 %v1685_v15, %v1679_v62 }
 0x97a   :  { %v1700_v0 = vpop.permute.xlu1 %1699 }
 0x97b   :  { %v1702_v6 = vmul.f32 %v1700_v0, %v1686_v24 }
 0x97d   :  { %2203 = vmatmul.mubr.f32.vlgmr.msra.gmra.mxu0 %v1702_v6 }
 0xa3d   :  { %v1792_v63 = vpop.f32.mrf.mxu0 }
 0xa3e   :  { %v1793_v2 = vadd.f32 %v1884_v20, %v1792_v63 }
 0xa3f   :  { %v2204_v5 = vpop.f32.mrf.mxu0 }
 0xa40   :  { %1796 = vst [vmem:[#allocation15] sm:$0xff] %v1793_v2 }
 0xa41   :  { %2508 = shalt.err (!%p2505_p10)
}
 0xa42   :  { %1806 = dma.vmem_to_hbm [thread:$0]  %s1804_s28, 128, %s3173_s7, [#allocation9]  }
 0xa43   :  { %2523 = dma.done.wait [#allocation9], 128  }
 0xa44   :  { %2524 = vsyncadd [#allocation9], 4294967168 }
 0xa45   :  { %1810 = vsyncpa [#allocation8], 1 }
 0xa46   :  { %1811 = vsyncpa [#allocation11], 1 }
 0xa47   :  { %1812 = vsyncpa [#allocation14], 1 }
 0xa48   :  { %1813 = vsyncpa [#allocation9], 1 }

// kernel: tpu_custom_call.1
= control target key start
LH: loop header
LB: loop body
LE: loop exit
PB: predicated region body
PF: predicated region fallthrough
CT: control target
= control target key end

     0   :  { %12 = vsyncpa [#allocation8], 0  ;;  %s3166_s0 = inlined_call_operand.hbm [shape: bf16[8,8,128], index: 0, kind: input, shape index: {}]   ;;  %s3167_s1 = inlined_call_operand.hbm [shape: bf16[128,384], index: 1, kind: input, shape index: {}]   ;;  %s3168_s2 = inlined_call_operand.hbm [shape: bf16[128,384], index: 2, kind: input, shape index: {}]   ;;  %s3169_s3 = inlined_call_operand.vmem [shape: f32[1,128], index: 3, kind: input, shape index: {}]   ;;  %s3170_s4 = inlined_call_operand.vmem [shape: f32[1,128], index: 4, kind: input, shape index: {}]   ;;  %s3171_s5 = inlined_call_operand.hbm [shape: f32[128,128], index: 5, kind: input, shape index: {}]   ;;  %s3172_s6 = inlined_call_operand.vmem [shape: f32[1,128], index: 6, kind: input, shape index: {}]   ;;  %s3173_s7 = inlined_call_operand.hbm [shape: f32[8,128], index: 7, kind: output, shape index: {}]  }
   0x1   :  { %13 = vsyncpa [#allocation11], 0 }
   0x2   :  { %14 = vsyncpa [#allocation14], 0 }
   0x3   :  { %15 = vsyncpa [#allocation9], 0  ;;  %s2525_s24 = smov [#allocation10]  }
   0x4   :  { %s33_s25 = sshll.u32 %s2525_s24, 4  ;;  %s34_s25 = int_to_ptr.vmem [resolvable:$true] %s33_s25 }
   0x5   :  { %s2425_s26 = scalar_lea.vmem %s34_s25, 3072  ;;  %p2430_p1 = scmp.lt.s32.totalorder %s34_s25, %s34_s25 }
   0x6   :  { %p2426_p0 = scmp.ne.s32.totalorder %s34_s25, %s2425_s26  ;;  %p2431_p2 = scmp.lt.s32.totalorder %s2425_s26, %s2425_s26 }
   0x8   :  { %p2432_p3 = por %p2431_p2, %p2430_p1 }
   0xa   :  { %p2433_p4 = pnand %p2432_p3, %p2426_p0 }
   0xc   :  { %2436 = shalt.err (!%p2433_p4)
}
   0xd   :  { %s2526_s27 = smov 192   ;;  %s2527_s28 = smov 12  }
   0xe   :  { %39 = dma.hbm_to_vmem [thread:$0]  %s3167_s1, 3072, %s34_s25, [#allocation11], %s2526_s27, %s2526_s27, %s2527_s28  }
   0xf   :  { %s2528_s8 = smov [#allocation7]  }
  0x10   :  { %s21_s9 = sshll.u32 %s2528_s8, 4  ;;  %s22_s9 = int_to_ptr.vmem [resolvable:$true] %s21_s9 }
  0x11   :  { %s2445_s10 = scalar_lea.vmem %s22_s9, 512  ;;  %p2450_p6 = scmp.lt.s32.totalorder %s22_s9, %s22_s9 }
  0x12   :  { %p2446_p5 = scmp.ne.s32.totalorder %s22_s9, %s2445_s10  ;;  %p2451_p7 = scmp.lt.s32.totalorder %s2445_s10, %s2445_s10 }
  0x14   :  { %p2452_p8 = por %p2451_p7, %p2450_p6 }
  0x16   :  { %p2453_p9 = pnand %p2452_p8, %p2446_p5 }
  0x18   :  { %2456 = shalt.err (!%p2453_p9)
}
  0x19   :  { %s2529_s11 = smov 64   ;;  %s2530_s12 = smov 4  }
  0x1a   :  { %27 = dma.hbm_to_vmem [thread:$0]  %s3166_s0, 512, %s22_s9, [#allocation8], %s2529_s11, %s2529_s11, %s2530_s12  }
  0x1b   :  { %s2531_s15 = smov [#allocation12]   ;;  %s2532_s17 = smov [#allocation13]  }
  0x1c   :  { %s45_s16 = sshll.u32 %s2531_s15, 4  ;;  %s61_s1 = sshll.u32 %s2532_s17, 4  ;;  %s46_s16 = int_to_ptr.vmem [resolvable:$true] %s45_s16  ;;  %s62_s1 = int_to_ptr.vmem [resolvable:$true] %s61_s1 }
  0x1d   :  { %s2465_s18 = scalar_lea.vmem %s46_s16, 3072  ;;  %p2470_p11 = scmp.lt.s32.totalorder %s46_s16, %s46_s16 }
  0x1e   :  { %p2466_p10 = scmp.ne.s32.totalorder %s46_s16, %s2465_s18  ;;  %p2471_p12 = scmp.lt.s32.totalorder %s2465_s18, %s2465_s18 }
  0x20   :  { %p2472_p13 = por %p2471_p12, %p2470_p11 }
  0x22   :  { %p2473_p0 = pnand %p2472_p13, %p2466_p10 }
  0x24   :  { %2476 = shalt.err (!%p2473_p0)
}
  0x25   :  { %51 = dma.hbm_to_vmem [thread:$0]  %s3168_s2, 3072, %s46_s16, [#allocation11], %s2526_s27, %s2526_s27, %s2527_s28  }
  0x26   :  { %s2485_s0 = scalar_lea.vmem %s62_s1, 2048  ;;  %p2490_p2 = scmp.lt.s32.totalorder %s62_s1, %s62_s1 }
  0x27   :  { %p2486_p1 = scmp.ne.s32.totalorder %s62_s1, %s2485_s0  ;;  %p2491_p3 = scmp.lt.s32.totalorder %s2485_s0, %s2485_s0 }
  0x29   :  { %p2492_p4 = por %p2491_p3, %p2490_p2 }
  0x2b   :  { %p2493_p5 = pnand %p2492_p4, %p2486_p1 }
  0x2d   :  { %2496 = shalt.err (!%p2493_p5)
}
  0x2e   :  { %s2533_s21 = smov 128   ;;  %s2534_s22 = smov 8  }
  0x2f   :  { %67 = dma.hbm_to_vmem [thread:$0]  %s3171_s5, 2048, %s62_s1, [#allocation14], %s2533_s21, %s2533_s21, %s2534_s22  }
  0x30   :  { %2517 = dma.done.wait [#allocation8], 512  }
  0x31   :  { %2518 = vsyncadd [#allocation8], 4294966784 }
  0x32   :  { %2519 = dma.done.wait [#allocation11], 6144  }
  0x33   :  { %2520 = vsyncadd [#allocation11], 4294961152 }
  0x34   :  { %2521 = dma.done.wait [#allocation14], 2048  }
  0x35   :  { %2522 = vsyncadd [#allocation14], 4294965248  ;;  %v3174_v0 = vmov 0   ;;  %v2223_v1 = vld [vmem:[#allocation10 + $0xac] ss:$12 sps:$4 sm:$0xff]   ;;  %v2249_v12 = vld [vmem:[#allocation7] sm:$0xff]  }
  0x36   :  { %316 = vmatprep.mubr.bf16.mxu0 %v3174_v0  ;;  %2221 = vset.pattern.permute.xlu0 %v3174_v0  ;;  %v2225_v2 = vld [vmem:[#allocation10 + $0xa8] ss:$12 sps:$4 sm:$0xff]   ;;  %v2228_v4 = vld [vmem:[#allocation10 + $0x90] ss:$12 sps:$4 sm:$0xff]   ;;  %v2231_v6 = vld [vmem:[#allocation10 + $0x78] ss:$12 sps:$4 sm:$0xff]  }
  0x37   :  { %2222 = vset.pattern.permute.xlu1 %v3174_v0  ;;  %284 = vmatprep.subr.bf16.mxu0 %v2223_v1  ;;  %v2226_v3 = vld [vmem:[#allocation10 + $0x94] ss:$12 sps:$4 sm:$0xff]   ;;  %v2229_v5 = vld [vmem:[#allocation10 + $0x7c] ss:$12 sps:$4 sm:$0xff]   ;;  %v2232_v7 = vld [vmem:[#allocation10 + $0x64] ss:$12 sps:$4 sm:$0xff]  }
  0x38   :  { %285 = vmatpush1.bf16.msra.mxu0 %v2225_v2  ;;  %v2244_v8 = vld [vmem:[#allocation10 + $0xb0] ss:$12 sps:$4 sm:$0xff]   ;;  %v2234_v9 = vld [vmem:[#allocation10 + $0x60] ss:$12 sps:$4 sm:$0xff]   ;;  %v2248_v11 = vld [vmem:[#allocation10 + $0x98] ss:$12 sps:$4 sm:$0xff]   ;;  %2002 = vmatprep.mubr.bf16.mxu1 %v2249_v12 }
  0x39   :  { %286 = vmatprep.subr.bf16.mxu0 %v2226_v3  ;;  %v2235_v10 = vld [vmem:[#allocation10 + $0x4c] ss:$12 sps:$4 sm:$0xff]   ;;  %1986 = vmatprep.subr.bf16.mxu1 %v2244_v8  ;;  %v2237_v13 = vld [vmem:[#allocation10 + $0x48] ss:$12 sps:$4 sm:$0xff]   ;;  %v2240_v17 = vld [vmem:[#allocation10 + $0x30] ss:$12 sps:$4 sm:$0xff]  }
  0x3a   :  { %1987 = vmatpush3.bf16.msra.mxu1 %v2244_v8  ;;  %v2253_v14 = vld [vmem:[#allocation10 + $0x80] ss:$12 sps:$4 sm:$0xff]   ;;  %v2257_v16 = vld [vmem:[#allocation10 + $0x68] ss:$12 sps:$4 sm:$0xff]   ;;  %v2262_v19 = vld [vmem:[#allocation10 + $0x50] ss:$12 sps:$4 sm:$0xff]  }
  0x3b   :  { %1988 = vmatprep.subr.bf16.mxu1 %v2248_v11  ;;  %v2238_v15 = vld [vmem:[#allocation10 + $0x34] ss:$12 sps:$4 sm:$0xff]   ;;  %v2241_v18 = vld [vmem:[#allocation10 + $0x1c] ss:$12 sps:$4 sm:$0xff]   ;;  %v2243_v20 = vld [vmem:[#allocation10 + $0x18] ss:$12 sps:$4 sm:$0xff]  }
  0x3c   :  { %287 = vmatpush1.bf16.msra.mxu0 %v2228_v4  ;;  %v2245_v21 = vld [vmem:[#allocation10 + $0x4] ss:$12 sps:$4 sm:$0xff]   ;;  %v2247_v23 = vld [vmem:[#allocation10] ss:$12 sps:$4 sm:$0xff]   ;;  %v2604_v26 = vld [vmem:[#allocation12 + $0xa8] ss:$12 sps:$4 sm:$0xff]  }
  0x3d   :  { %288 = vmatprep.subr.bf16.mxu0 %v2229_v5  ;;  %v2266_v22 = vld [vmem:[#allocation10 + $0x38] ss:$12 sps:$4 sm:$0xff]   ;;  %v2271_v25 = vld [vmem:[#allocation10 + $0x20] ss:$12 sps:$4 sm:$0xff]   ;;  %v2275_v28 = vld [vmem:[#allocation10 + $0x8] ss:$12 sps:$4 sm:$0xff]  }
  0x3e   :  { %1989 = vmatpush3.bf16.msra.mxu1 %v2248_v11  ;;  %v2602_v24 = vld [vmem:[#allocation12 + $0xac] ss:$12 sps:$4 sm:$0xff]   ;;  %v2607_v27 = vld [vmem:[#allocation12 + $0x94] ss:$12 sps:$4 sm:$0xff]   ;;  %v2610_v29 = vld [vmem:[#allocation12 + $0x90] ss:$12 sps:$4 sm:$0xff]  }
  0x3f   :  { %1990 = vmatprep.subr.bf16.mxu1 %v2253_v14  ;;  %v2614_v30 = vld [vmem:[#allocation12 + $0x7c] ss:$12 sps:$4 sm:$0xff]   ;;  %v2617_v32 = vld [vmem:[#allocation12 + $0x78] ss:$12 sps:$4 sm:$0xff]   ;;  %v3176_v35 = vmov 0.0   ;;  %v2267_v37 = vld [vmem:[#allocation7 + $0x10] sm:$0xff]  }
  0x40   :  { %289 = vmatpush1.bf16.msra.mxu0 %v2231_v6  ;;  %v2258_v31 = vld [vmem:[#allocation7 + $0x8] sm:$0xff]   ;;  %v2620_v33 = vld [vmem:[#allocation12 + $0x64] ss:$12 sps:$4 sm:$0xff]   ;;  %v2640_v41 = vld [vmem:[#allocation12 + $0x34] ss:$12 sps:$4 sm:$0xff]   ;;  %vm2537_vm0 = vmmov 0  }
  0x41   :  { %290 = vmatprep.subr.bf16.mxu0 %v2232_v7  ;;  %v2622_v34 = vld [vmem:[#allocation12 + $0xb0] ss:$12 sps:$4 sm:$0xff]   ;;  %v2626_v36 = vld [vmem:[#allocation12 + $0x60] ss:$12 sps:$4 sm:$0xff]   ;;  %v2633_v39 = vld [vmem:[#allocation12 + $0x98] ss:$12 sps:$4 sm:$0xff]  }
  0x42   :  { %1991 = vmatpush3.bf16.msra.mxu1 %v2253_v14  ;;  %v2630_v38 = vld [vmem:[#allocation12 + $0x4c] ss:$12 sps:$4 sm:$0xff]   ;;  %v2637_v40 = vld [vmem:[#allocation12 + $0x48] ss:$12 sps:$4 sm:$0xff]   ;;  %v2647_v44 = vld [vmem:[#allocation12 + $0x30] ss:$12 sps:$4 sm:$0xff]  }
  0x43   :  { %1992 = vmatprep.subr.bf16.mxu1 %v2257_v16  ;;  %v2643_v42 = vld [vmem:[#allocation12 + $0x80] ss:$12 sps:$4 sm:$0xff]   ;;  %v2276_v43 = vld [vmem:[#allocation7 + $0x18] sm:$0xff]   ;;  %v2654_v46 = vld [vmem:[#allocation12 + $0x68] ss:$12 sps:$4 sm:$0xff]   ;;  %v2538_v53 = vmov 0.0|0.0  }
  0x44   :  { %291 = vmatpush1.bf16.msra.mxu0 %v2234_v9  ;;  %v2651_v45 = vld [vmem:[#allocation12 + $0x1c] ss:$12 sps:$4 sm:$0xff]   ;;  %v2660_v47 = vld [vmem:[#allocation12 + $0x18] ss:$12 sps:$4 sm:$0xff]   ;;  %v2670_v50 = vld [vmem:[#allocation12] ss:$12 sps:$4 sm:$0xff]  }
  0x45   :  { %292 = vmatprep.subr.bf16.mxu0 %v2235_v10  ;;  %v2663_v48 = vld [vmem:[#allocation12 + $0x4] ss:$12 sps:$4 sm:$0xff]   ;;  %v2681_v52 = vld [vmem:[#allocation12 + $0x20] ss:$12 sps:$4 sm:$0xff]   ;;  %v2688_v54 = vld [vmem:[#allocation12 + $0x8] ss:$12 sps:$4 sm:$0xff]  }
  0x46   :  { %1993 = vmatpush3.bf16.msra.mxu1 %v2257_v16  ;;  %v2666_v49 = vld [vmem:[#allocation12 + $0x50] ss:$12 sps:$4 sm:$0xff]   ;;  %v2675_v51 = vld [vmem:[#allocation12 + $0x38] ss:$12 sps:$4 sm:$0xff]   ;;  %vm88_vm1 = vcmask 7168   ;;  %v2539_v55 = vmov -inf  }
  0x47   :  { %1994 = vmatprep.subr.bf16.mxu1 %v2262_v19  ;;  %89 = vst.msk [vmem:[#allocation4] sm:$0xff] %vm88_vm1, %v2539_v55  ;;  %90 = vst.msk [vmem:[#allocation5] sm:$0xff] %vm88_vm1, %v3176_v35  ;;  %s2540_s27 = smov [#allocation15]  }
  0x48   :  { %293 = vmatpush1.bf16.msra.mxu0 %v2237_v13  ;;  %s1803_s28 = sshll.u32 %s2540_s27, 4  ;;  %s1804_s28 = int_to_ptr.vmem [resolvable:$true] %s1803_s28 }
  0x49   :  { %294 = vmatprep.subr.bf16.mxu0 %v2238_v15  ;;  %s2497_s29 = scalar_lea.vmem %s1804_s28, 128  ;;  %p2502_p7 = scmp.lt.s32.totalorder %s1804_s28, %s1804_s28 }
  0x4a   :  { %1995 = vmatpush3.bf16.msra.mxu1 %v2262_v19  ;;  %p2498_p6 = scmp.ne.s32.totalorder %s1804_s28, %s2497_s29  ;;  %p2503_p8 = scmp.lt.s32.totalorder %s2497_s29, %s2497_s29 }
  0x4b   :  { %1996 = vmatprep.subr.bf16.mxu1 %v2266_v22 }
  0x4c   :  { %295 = vmatpush1.bf16.msra.mxu0 %v2240_v17  ;;  %p2504_p9 = por %p2503_p8, %p2502_p7 }
  0x4d   :  { %296 = vmatprep.subr.bf16.mxu0 %v2241_v18 }
  0x4e   :  { %1997 = vmatpush3.bf16.msra.mxu1 %v2266_v22  ;;  %p2505_p10 = pnand %p2504_p9, %p2498_p6 }
  0x4f   :  { %1998 = vmatprep.subr.bf16.mxu1 %v2271_v25 }
  0x50   :  { %297 = vmatpush1.bf16.msra.mxu0 %v2243_v20 }
  0x51   :  { %298 = vmatprep.subr.bf16.mxu0 %v2245_v21 }
  0x52   :  { %1999 = vmatpush3.bf16.msra.mxu1 %v2271_v25 }
  0x53   :  { %2000 = vmatprep.subr.bf16.mxu1 %v2275_v28 }
  0x54   :  { %299 = vmatpush1.bf16.msra.mxu0 %v2247_v23 }
  0x55   :  { %616 = vmatprep.subr.bf16.mxu0 %v2602_v24 }
  0x56   :  { %2001 = vmatpush3.bf16.msra.mxu1 %v2275_v28 }
  0x57   :  { %317 = vmatmul.mubr.bf16.vlgmr.msra.gmra.mxu0 %v2249_v12  ;;  %2010 = vmatprep.subr.bf16.mxu1 %v3176_v35 }
  0x58   :  { %617 = vmatpush1.bf16.msra.mxu0 %v2604_v26  ;;  %326 = vmatprep.mubr.bf16.mxu0 %v3174_v0 }
  0x59   :  { %618 = vmatprep.subr.bf16.mxu0 %v2607_v27  ;;  %2003 = vmatmul.mubr.bf16.vlgmr.msra.gmra.mxu1 %v2258_v31 }
  0x5a   :  { %2011 = vmatpush3.bf16.msra.mxu1 %v2622_v34  ;;  %2006 = vmatprep.mubr.bf16.mxu1 %v2267_v37 }
  0x5b   :  { %2012 = vmatprep.subr.bf16.mxu1 %v3176_v35 }
  0x5c   :  { %619 = vmatpush1.bf16.msra.mxu0 %v2610_v29 }
  0x5d   :  { %620 = vmatprep.subr.bf16.mxu0 %v2614_v30 }
  0x5e   :  { %2013 = vmatpush3.bf16.msra.mxu1 %v2633_v39 }
  0x5f   :  { %327 = vmatmul.mubr.bf16.gmra.mxu0 %v2258_v31  ;;  %2014 = vmatprep.subr.bf16.mxu1 %v3176_v35 }
  0x60   :  { %621 = vmatpush1.bf16.msra.mxu0 %v2617_v32  ;;  %336 = vmatprep.mubr.bf16.mxu0 %v3174_v0 }
  0x61   :  { %622 = vmatprep.subr.bf16.mxu0 %v2620_v33  ;;  %2007 = vmatmul.mubr.bf16.gmra.mxu1 %v2276_v43 }
  0x62   :  { %2015 = vmatpush3.bf16.msra.mxu1 %v2643_v42  ;;  %2026 = vmatprep.mubr.msk.bf16.mxu1 %vm2537_vm0, %v3176_v35 }
  0x63   :  { %2016 = vmatprep.subr.bf16.mxu1 %v3176_v35 }
  0x64   :  { %623 = vmatpush1.bf16.msra.mxu0 %v2626_v36 }
  0x65   :  { %624 = vmatprep.subr.bf16.mxu0 %v2630_v38 }
  0x66   :  { %2017 = vmatpush3.bf16.msra.mxu1 %v2654_v46 }
  0x67   :  { %337 = vmatmul.mubr.bf16.gmra.mxu0 %v2267_v37  ;;  %2018 = vmatprep.subr.bf16.mxu1 %v3176_v35 }
  0x68   :  { %625 = vmatpush1.bf16.msra.mxu0 %v2637_v40  ;;  %346 = vmatprep.mubr.bf16.mxu0 %v3174_v0 }
  0x69   :  { %626 = vmatprep.subr.bf16.mxu0 %v2640_v41 }
  0x6a   :  { %2019 = vmatpush3.bf16.msra.mxu1 %v2666_v49 }
  0x6b   :  { %2020 = vmatprep.subr.bf16.mxu1 %v3176_v35 }
  0x6c   :  { %627 = vmatpush1.bf16.msra.mxu0 %v2647_v44 }
  0x6d   :  { %628 = vmatprep.subr.bf16.mxu0 %v2651_v45 }
  0x6e   :  { %2021 = vmatpush3.bf16.msra.mxu1 %v2675_v51 }
  0x6f   :  { %347 = vmatmul.mubr.bf16.gmra.mxu0 %v2276_v43  ;;  %2022 = vmatprep.subr.bf16.mxu1 %v3176_v35 }
  0x70   :  { %629 = vmatpush1.bf16.msra.mxu0 %v2660_v47  ;;  %648 = vmatprep.mubr.bf16.mxu0 %v3174_v0 }
  0x71   :  { %630 = vmatprep.subr.bf16.mxu0 %v2663_v48 }
  0x72   :  { %2023 = vmatpush3.bf16.msra.mxu1 %v2681_v52 }
  0x73   :  { %2024 = vmatprep.subr.bf16.mxu1 %v3176_v35 }
  0x74   :  { %631 = vmatpush1.bf16.msra.mxu0 %v2670_v50 }
  0x75   :  { %761 = vmatprep.subr.bf16.mxu0 %v2602_v24 }
  0x76   :  { %2025 = vmatpush3.bf16.msra.mxu1 %v2688_v54 }
  0x77   :  { %649 = vmatmul.mubr.bf16.vlgmr.msra.gmra.mxu0 %v2538_v53  ;;  %2030 = vmatprep.subr.bf16.mxu1 %v3176_v35 }
  0x78   :  { %762 = vmatpush1.bf16.msra.mxu0 %v2604_v26  ;;  %793 = vmatprep.mubr.bf16.mxu0 %v3174_v0 }
  0x79   :  { %763 = vmatprep.subr.bf16.mxu0 %v2607_v27  ;;  %2027 = vmatmul.mubr.bf16.vlgmr.msra.gmra.mxu1 %v2538_v53 }
  0x7a   :  { %2031 = vmatpush3.bf16.msra.mxu1 %v2622_v34  ;;  %2046 = vmatprep.mubr.msk.bf16.mxu1 %vm2537_vm0, %v3176_v35 }
  0x7b   :  { %2032 = vmatprep.subr.bf16.mxu1 %v3176_v35 }
  0x7c   :  { %764 = vmatpush1.bf16.msra.mxu0 %v2610_v29 }
  0x7d   :  { %765 = vmatprep.subr.bf16.mxu0 %v2614_v30 }
  0x7e   :  { %2033 = vmatpush3.bf16.msra.mxu1 %v2633_v39 }
  0x7f   :  { %2034 = vmatprep.subr.bf16.mxu1 %v3176_v35 }
  0x80   :  { %766 = vmatpush1.bf16.msra.mxu0 %v2617_v32 }
  0x81   :  { %767 = vmatprep.subr.bf16.mxu0 %v2620_v33 }
  0x82   :  { %2035 = vmatpush3.bf16.msra.mxu1 %v2643_v42 }
  0x83   :  { %2036 = vmatprep.subr.bf16.mxu1 %v3176_v35 }
  0x84   :  { %768 = vmatpush1.bf16.msra.mxu0 %v2626_v36 }
  0x85   :  { %769 = vmatprep.subr.bf16.mxu0 %v2630_v38 }
  0x86   :  { %2037 = vmatpush3.bf16.msra.mxu1 %v2654_v46 }
  0x87   :  { %2038 = vmatprep.subr.bf16.mxu1 %v3176_v35 }
  0x88   :  { %770 = vmatpush1.bf16.msra.mxu0 %v2637_v40 }
  0x89   :  { %771 = vmatprep.subr.bf16.mxu0 %v2640_v41 }
  0x8a   :  { %2039 = vmatpush3.bf16.msra.mxu1 %v2666_v49 }
  0x8b   :  { %2040 = vmatprep.subr.bf16.mxu1 %v3176_v35 }
  0x8c   :  { %772 = vmatpush1.bf16.msra.mxu0 %v2647_v44 }
  0x8d   :  { %773 = vmatprep.subr.bf16.mxu0 %v2651_v45 }
  0x8e   :  { %2041 = vmatpush3.bf16.msra.mxu1 %v2675_v51 }
  0x8f   :  { %2042 = vmatprep.subr.bf16.mxu1 %v3176_v35 }
  0x90   :  { %774 = vmatpush1.bf16.msra.mxu0 %v2660_v47 }
  0x91   :  { %775 = vmatprep.subr.bf16.mxu0 %v2663_v48 }
  0x92   :  { %2043 = vmatpush3.bf16.msra.mxu1 %v2681_v52 }
  0x93   :  { %2044 = vmatprep.subr.bf16.mxu1 %v3176_v35 }
  0x94   :  { %776 = vmatpush1.bf16.msra.mxu0 %v2670_v50 }
  0x95   :  { %894 = vmatprep.subr.bf16.mxu0 %v2602_v24 }
  0x96   :  { %2045 = vmatpush3.bf16.msra.mxu1 %v2688_v54 }
  0x97   :  { %2050 = vmatprep.subr.bf16.mxu1 %v3176_v35 }
 0x117   :  { %v318_v56 = vpop.f32.mrf.mxu0 }
 0x119   :  { %v320_v57 = vpop.f32.mrf.mxu0  ;;  %v2738_v63 = vpop.f32.mrf.mxu1 }
 0x11b   :  { %v2728_v58 = vpop.f32.mrf.mxu0  ;;  %v391_v3 = vpop.f32.mrf.mxu1 }
 0x11d   :  { %v2730_v59 = vpop.f32.mrf.mxu0  ;;  %v2748_v6 = vpop.f32.mrf.mxu1 }
 0x11f   :  { %v2732_v60 = vpop.f32.mrf.mxu0  ;;  %v2754_v9 = vpop.f32.mrf.mxu1 }
 0x121   :  { %v2734_v61 = vpop.f32.mrf.mxu0  ;;  %v2758_v11 = vpop.f32.mrf.mxu1 }
 0x123   :  { %v2736_v62 = vpop.f32.mrf.mxu0  ;;  %v2764_v14 = vpop.f32.mrf.mxu1 }
 0x125   :  { %v2740_v1 = vpop.f32.mrf.mxu0  ;;  %v2766_v18 = vpop.f32.mrf.mxu1 }
 0x126   :  { %3178 = vst [vmem:[#allocation20_spill] sm:$0xff] %v2766_v18 }
 0x127   :  { %v2742_v2 = vpop.f32.mrf.mxu0  ;;  %v2768_v22 = vpop.f32.mrf.mxu1 }
 0x129   :  { %v2744_v4 = vpop.f32.mrf.mxu0 }
 0x12b   :  { %v2746_v5 = vpop.f32.mrf.mxu0 }
 0x12d   :  { %v2750_v7 = vpop.f32.mrf.mxu0 }
 0x12f   :  { %v2752_v8 = vpop.f32.mrf.mxu0 }
 0x131   :  { %v2756_v10 = vpop.f32.mrf.mxu0 }
 0x133   :  { %v2760_v12 = vpop.f32.mrf.mxu0 }
 0x135   :  { %v2762_v13 = vpop.f32.mrf.mxu0 }
 0x137   :  { %v650_v15 = vpop.f32.mrf.mxu0 }
 0x138   :  { %v697_v16 = vadd.f32 %v650_v15, %v318_v56  ;;  %v2773_v15 = vld [vmem:[%s3169_s3] ss:$0 sm:$0xff] }
 0x139   :  { %v652_v17 = vpop.f32.mrf.mxu0  ;;  %v691_v25 = vpop.f32.mrf.mxu1 }
 0x13a   :  { %v1866_v19 = vmul.f32 -1.442695, %v697_v16  ;;  %v704_v23 = vadd.f32 %v652_v17, %v320_v57 }
 0x13b   :  { %v654_v20 = vpop.f32.mrf.mxu0  ;;  %v2028_v31 = vpop.f32.mrf.mxu1 }
 0x13c   :  { %2291 = vpow2.f32 %v1866_v19  ;;  %v1867_v28 = vmul.f32 -1.442695, %v704_v23  ;;  %v717_v19 = vadd.f32 %v2773_v15, %v691_v25 }
 0x13d   :  { %v655_v21 = vpop.f32.mrf.mxu0  ;;  %v694_v37 = vpop.f32.mrf.mxu1 }
 0x13e   :  { %2293 = vpow2.f32 %v1867_v28 }
 0x13f   :  { %v2029_v43 = vpop.f32.mrf.mxu1 }
 0x140   :  { %v2779_v43 = vld [vmem:[%s3170_s4] ss:$0 sm:$0xff] }
 0x149   :  { %v2292_v53 = vpop.eup %2291 }
 0x14a   :  { %v701_v55 = vadd.f32 1.0, %v2292_v53 }
 0x14b   :  { %v2294_v56 = vpop.eup %2293 }
 0x14c   :  { %2295 = vrcp.f32 %v701_v55  ;;  %v708_v16 = vadd.f32 1.0, %v2294_v56 }
 0x14e   :  { %2297 = vrcp.f32 %v708_v16 }
 0x159   :  { %v2296_v20 = vpop.eup %2295 }
 0x15a   :  { %v718_v57 = vmul.f32 %v2296_v20, %v717_v19 }
 0x15b   :  { %v2298_v21 = vpop.eup %2297 }
 0x15c   :  { %v719_v17 = vadd.f32 %v718_v57, %v391_v3  ;;  %v721_v23 = vsub.f32 1.0, %v2298_v21  ;;  %v723_v37 = vmul.f32 0.0, %v2298_v21 }
 0x15e   :  { %2299 = vtanh.f32 %v719_v17 }
 0x16b   :  { %v2300_v28 = vpop.eup %2299 }
 0x16c   :  { %v722_v31 = vmul.f32 %v2300_v28, %v721_v23 }
 0x16e   :  { %v2781_v53 = vadd.f32 %v723_v37, %v722_v31 }
 0x170   :  { %v760_v25 = vpack.c.bf16 %v2781_v53, %v2781_v53  ;;  %v731_v55 = vmul.f32 %v2779_v43, %v2781_v53 }
 0x172   :  { %794 = vmatmul.mubr.bf16.vlgmr.msra.gmra.mxu0 %v760_v25  ;;  %2047 = vmatmul.mubr.bf16.vlgmr.msra.gmra.mxu1 %v760_v25 }
 0x173   :  { %732 = vadd.xlane.f32.xlu0 %v731_v55  ;;  %895 = vmatpush1.bf16.msra.mxu0 %v2604_v26 }
 0x174   :  { %2051 = vmatpush3.bf16.msra.mxu1 %v2622_v34  ;;  %896 = vmatprep.subr.bf16.mxu0 %v2607_v27 }
 0x175   :  { %2052 = vmatprep.subr.bf16.mxu1 %v3176_v35  ;;  %926 = vmatprep.mubr.bf16.mxu0 %v3174_v0 }
 0x176   :  { %2066 = vmatprep.mubr.msk.bf16.mxu1 %vm2537_vm0, %v3176_v35 }
 0x177   :  { %897 = vmatpush1.bf16.msra.mxu0 %v2610_v29 }
 0x178   :  { %2053 = vmatpush3.bf16.msra.mxu1 %v2633_v39  ;;  %898 = vmatprep.subr.bf16.mxu0 %v2614_v30 }
 0x179   :  { %2054 = vmatprep.subr.bf16.mxu1 %v3176_v35 }
 0x17b   :  { %899 = vmatpush1.bf16.msra.mxu0 %v2617_v32 }
 0x17c   :  { %2055 = vmatpush3.bf16.msra.mxu1 %v2643_v42  ;;  %900 = vmatprep.subr.bf16.mxu0 %v2620_v33 }
 0x17d   :  { %2056 = vmatprep.subr.bf16.mxu1 %v3176_v35 }
 0x17f   :  { %901 = vmatpush1.bf16.msra.mxu0 %v2626_v36 }
 0x180   :  { %2057 = vmatpush3.bf16.msra.mxu1 %v2654_v46  ;;  %902 = vmatprep.subr.bf16.mxu0 %v2630_v38 }
 0x181   :  { %2058 = vmatprep.subr.bf16.mxu1 %v3176_v35 }
 0x183   :  { %903 = vmatpush1.bf16.msra.mxu0 %v2637_v40 }
 0x184   :  { %2059 = vmatpush3.bf16.msra.mxu1 %v2666_v49  ;;  %904 = vmatprep.subr.bf16.mxu0 %v2640_v41 }
 0x185   :  { %2060 = vmatprep.subr.bf16.mxu1 %v3176_v35 }
 0x187   :  { %905 = vmatpush1.bf16.msra.mxu0 %v2647_v44 }
 0x188   :  { %2061 = vmatpush3.bf16.msra.mxu1 %v2675_v51  ;;  %906 = vmatprep.subr.bf16.mxu0 %v2651_v45 }
 0x189   :  { %2062 = vmatprep.subr.bf16.mxu1 %v3176_v35 }
 0x18b   :  { %907 = vmatpush1.bf16.msra.mxu0 %v2660_v47 }
 0x18c   :  { %2063 = vmatpush3.bf16.msra.mxu1 %v2681_v52  ;;  %908 = vmatprep.subr.bf16.mxu0 %v2663_v48 }
 0x18d   :  { %2064 = vmatprep.subr.bf16.mxu1 %v3176_v35 }
 0x18f   :  { %909 = vmatpush1.bf16.msra.mxu0 %v2670_v50 }
 0x190   :  { %2065 = vmatpush3.bf16.msra.mxu1 %v2688_v54  ;;  %1027 = vmatprep.subr.bf16.mxu0 %v2602_v24 }
 0x191   :  { %2070 = vmatprep.subr.bf16.mxu1 %v3176_v35 }
 0x232   :  { %v795_v3 = vpop.f32.mrf.mxu0  ;;  %v836_v56 = vpop.f32.mrf.mxu1 }
 0x233   :  { %v842_v16 = vadd.f32 %v795_v3, %v2728_v58  ;;  %v856_v18 = vadd.f32 %v2773_v15, %v836_v56 }
 0x234   :  { %v797_v19 = vpop.f32.mrf.mxu0  ;;  %v2048_v20 = vpop.f32.mrf.mxu1 }
 0x235   :  { %v1870_v57 = vmul.f32 -1.442695, %v842_v16  ;;  %v849_v31 = vadd.f32 %v797_v19, %v2730_v59 }
 0x236   :  { %v799_v17 = vpop.f32.mrf.mxu0  ;;  %v839_v21 = vpop.f32.mrf.mxu1 }
 0x237   :  { %2301 = vpow2.f32 %v1870_v57  ;;  %v1871_v37 = vmul.f32 -1.442695, %v849_v31 }
 0x238   :  { %v800_v23 = vpop.f32.mrf.mxu0  ;;  %v2049_v28 = vpop.f32.mrf.mxu1 }
 0x239   :  { %2303 = vpow2.f32 %v1871_v37 }
 0x244   :  { %v2302_v25 = vpop.eup %2301 }
 0x245   :  { %v846_v55 = vadd.f32 1.0, %v2302_v25 }
 0x246   :  { %v2304_v0 = vpop.eup %2303 }
 0x247   :  { %2305 = vrcp.f32 %v846_v55  ;;  %v853_v35 = vadd.f32 1.0, %v2304_v0 }
 0x249   :  { %2307 = vrcp.f32 %v853_v35  ;;  %v3179_v35 = vmov 0.0  }
 0x254   :  { %v2306_v58 = vpop.eup %2305 }
 0x255   :  { %v857_v3 = vmul.f32 %v2306_v58, %v856_v18 }
 0x256   :  { %v2308_v20 = vpop.eup %2307 }
 0x257   :  { %v858_v16 = vadd.f32 %v857_v3, %v2754_v9  ;;  %v860_v57 = vsub.f32 1.0, %v2308_v20  ;;  %v862_v59 = vmul.f32 %v2308_v20, %v2781_v53  ;;  %v3180_v9 = vmov 0  }
 0x259   :  { %2309 = vtanh.f32 %v858_v16 }
 0x266   :  { %v2310_v17 = vpop.eup %2309 }
 0x267   :  { %v861_v21 = vmul.f32 %v2310_v17, %v860_v57 }
 0x269   :  { %v2827_v19 = vadd.f32 %v862_v59, %v861_v21 }
 0x26b   :  { %v893_v23 = vpack.c.bf16 %v2827_v19, %v2827_v19  ;;  %v864_v0 = vmul.f32 %v2779_v43, %v2827_v19 }
 0x26d   :  { %927 = vmatmul.mubr.bf16.vlgmr.msra.gmra.mxu0 %v893_v23  ;;  %2067 = vmatmul.mubr.bf16.vlgmr.msra.gmra.mxu1 %v893_v23 }
 0x26e   :  { %865 = vadd.xlane.f32.xlu0 %v864_v0  ;;  %1028 = vmatpush1.bf16.msra.mxu0 %v2604_v26 }
 0x26f   :  { %2071 = vmatpush3.bf16.msra.mxu1 %v2622_v34  ;;  %1029 = vmatprep.subr.bf16.mxu0 %v2607_v27 }
 0x270   :  { %2072 = vmatprep.subr.bf16.mxu1 %v3179_v35  ;;  %1059 = vmatprep.mubr.bf16.mxu0 %v3180_v9 }
 0x271   :  { %2086 = vmatprep.mubr.msk.bf16.mxu1 %vm2537_vm0, %v3179_v35 }
 0x272   :  { %1030 = vmatpush1.bf16.msra.mxu0 %v2610_v29 }
 0x273   :  { %2073 = vmatpush3.bf16.msra.mxu1 %v2633_v39  ;;  %1031 = vmatprep.subr.bf16.mxu0 %v2614_v30 }
 0x274   :  { %2074 = vmatprep.subr.bf16.mxu1 %v3179_v35 }
 0x276   :  { %1032 = vmatpush1.bf16.msra.mxu0 %v2617_v32 }
 0x277   :  { %2075 = vmatpush3.bf16.msra.mxu1 %v2643_v42  ;;  %1033 = vmatprep.subr.bf16.mxu0 %v2620_v33 }
 0x278   :  { %2076 = vmatprep.subr.bf16.mxu1 %v3179_v35 }
 0x27a   :  { %1034 = vmatpush1.bf16.msra.mxu0 %v2626_v36 }
 0x27b   :  { %2077 = vmatpush3.bf16.msra.mxu1 %v2654_v46  ;;  %1035 = vmatprep.subr.bf16.mxu0 %v2630_v38 }
 0x27c   :  { %2078 = vmatprep.subr.bf16.mxu1 %v3179_v35 }
 0x27e   :  { %1036 = vmatpush1.bf16.msra.mxu0 %v2637_v40 }
 0x27f   :  { %2079 = vmatpush3.bf16.msra.mxu1 %v2666_v49  ;;  %1037 = vmatprep.subr.bf16.mxu0 %v2640_v41 }
 0x280   :  { %2080 = vmatprep.subr.bf16.mxu1 %v3179_v35 }
 0x282   :  { %1038 = vmatpush1.bf16.msra.mxu0 %v2647_v44 }
 0x283   :  { %2081 = vmatpush3.bf16.msra.mxu1 %v2675_v51  ;;  %1039 = vmatprep.subr.bf16.mxu0 %v2651_v45 }
 0x284   :  { %2082 = vmatprep.subr.bf16.mxu1 %v3179_v35 }
 0x286   :  { %1040 = vmatpush1.bf16.msra.mxu0 %v2660_v47 }
 0x287   :  { %2083 = vmatpush3.bf16.msra.mxu1 %v2681_v52  ;;  %1041 = vmatprep.subr.bf16.mxu0 %v2663_v48 }
 0x288   :  { %2084 = vmatprep.subr.bf16.mxu1 %v3179_v35 }
 0x28a   :  { %1042 = vmatpush1.bf16.msra.mxu0 %v2670_v50 }
 0x28b   :  { %2085 = vmatpush3.bf16.msra.mxu1 %v2688_v54  ;;  %1160 = vmatprep.subr.bf16.mxu0 %v2602_v24 }
 0x28c   :  { %2090 = vmatprep.subr.bf16.mxu1 %v3179_v35 }
 0x32d   :  { %v928_v18 = vpop.f32.mrf.mxu0  ;;  %v969_v56 = vpop.f32.mrf.mxu1 }
 0x32e   :  { %v975_v28 = vadd.f32 %v928_v18, %v2732_v60  ;;  %v989_v0 = vadd.f32 %v2773_v15, %v969_v56 }
 0x32f   :  { %v930_v31 = vpop.f32.mrf.mxu0  ;;  %v2068_v37 = vpop.f32.mrf.mxu1 }
 0x330   :  { %v1872_v25 = vmul.f32 -1.442695, %v975_v28  ;;  %v982_v20 = vadd.f32 %v930_v31, %v2734_v61 }
 0x331   :  { %v932_v55 = vpop.f32.mrf.mxu0  ;;  %v972_v58 = vpop.f32.mrf.mxu1 }
 0x332   :  { %2311 = vpow2.f32 %v1872_v25  ;;  %v1873_v57 = vmul.f32 -1.442695, %v982_v20 }
 0x333   :  { %v933_v3 = vpop.f32.mrf.mxu0  ;;  %v2069_v16 = vpop.f32.mrf.mxu1 }
 0x334   :  { %2313 = vpow2.f32 %v1873_v57 }
 0x33f   :  { %v2312_v17 = vpop.eup %2311 }
 0x340   :  { %v979_v21 = vadd.f32 1.0, %v2312_v17 }
 0x341   :  { %v2314_v59 = vpop.eup %2313 }
 0x342   :  { %2315 = vrcp.f32 %v979_v21  ;;  %v986_v23 = vadd.f32 1.0, %v2314_v59 }
 0x344   :  { %2317 = vrcp.f32 %v986_v23 }
 0x34f   :  { %v2316_v60 = vpop.eup %2315 }
 0x350   :  { %v990_v18 = vmul.f32 %v2316_v60, %v989_v0 }
 0x351   :  { %v2318_v37 = vpop.eup %2317 }
 0x352   :  { %v991_v28 = vadd.f32 %v2738_v63, %v990_v18  ;;  %v993_v25 = vsub.f32 1.0, %v2318_v37  ;;  %v995_v61 = vmul.f32 %v2318_v37, %v2827_v19 }
 0x354   :  { %2319 = vtanh.f32 %v991_v28 }
 0x361   :  { %v2320_v55 = vpop.eup %2319 }
 0x362   :  { %v994_v58 = vmul.f32 %v2320_v55, %v993_v25 }
 0x364   :  { %v2873_v31 = vadd.f32 %v995_v61, %v994_v58 }
 0x366   :  { %v1026_v3 = vpack.c.bf16 %v2873_v31, %v2873_v31  ;;  %v997_v56 = vmul.f32 %v2779_v43, %v2873_v31 }
 0x368   :  { %1060 = vmatmul.mubr.bf16.vlgmr.msra.gmra.mxu0 %v1026_v3  ;;  %2087 = vmatmul.mubr.bf16.vlgmr.msra.gmra.mxu1 %v1026_v3 }
 0x369   :  { %998 = vadd.xlane.f32.xlu1 %v997_v56  ;;  %1161 = vmatpush1.bf16.msra.mxu0 %v2604_v26 }
 0x36a   :  { %2091 = vmatpush3.bf16.msra.mxu1 %v2622_v34  ;;  %1162 = vmatprep.subr.bf16.mxu0 %v2607_v27 }
 0x36b   :  { %2092 = vmatprep.subr.bf16.mxu1 %v3179_v35  ;;  %1192 = vmatprep.mubr.bf16.mxu0 %v3180_v9 }
 0x36c   :  { %2106 = vmatprep.mubr.msk.bf16.mxu1 %vm2537_vm0, %v3179_v35 }
 0x36d   :  { %1163 = vmatpush1.bf16.msra.mxu0 %v2610_v29 }
 0x36e   :  { %2093 = vmatpush3.bf16.msra.mxu1 %v2633_v39  ;;  %1164 = vmatprep.subr.bf16.mxu0 %v2614_v30 }
 0x36f   :  { %2094 = vmatprep.subr.bf16.mxu1 %v3179_v35 }
 0x371   :  { %1165 = vmatpush1.bf16.msra.mxu0 %v2617_v32 }
 0x372   :  { %2095 = vmatpush3.bf16.msra.mxu1 %v2643_v42  ;;  %1166 = vmatprep.subr.bf16.mxu0 %v2620_v33 }
 0x373   :  { %2096 = vmatprep.subr.bf16.mxu1 %v3179_v35 }
 0x375   :  { %1167 = vmatpush1.bf16.msra.mxu0 %v2626_v36 }
 0x376   :  { %2097 = vmatpush3.bf16.msra.mxu1 %v2654_v46  ;;  %1168 = vmatprep.subr.bf16.mxu0 %v2630_v38 }
 0x377   :  { %2098 = vmatprep.subr.bf16.mxu1 %v3179_v35 }
 0x379   :  { %1169 = vmatpush1.bf16.msra.mxu0 %v2637_v40 }
 0x37a   :  { %2099 = vmatpush3.bf16.msra.mxu1 %v2666_v49  ;;  %1170 = vmatprep.subr.bf16.mxu0 %v2640_v41 }
 0x37b   :  { %2100 = vmatprep.subr.bf16.mxu1 %v3179_v35 }
 0x37d   :  { %1171 = vmatpush1.bf16.msra.mxu0 %v2647_v44 }
 0x37e   :  { %2101 = vmatpush3.bf16.msra.mxu1 %v2675_v51  ;;  %1172 = vmatprep.subr.bf16.mxu0 %v2651_v45 }
 0x37f   :  { %2102 = vmatprep.subr.bf16.mxu1 %v3179_v35 }
 0x381   :  { %1173 = vmatpush1.bf16.msra.mxu0 %v2660_v47 }
 0x382   :  { %2103 = vmatpush3.bf16.msra.mxu1 %v2681_v52  ;;  %1174 = vmatprep.subr.bf16.mxu0 %v2663_v48 }
 0x383   :  { %2104 = vmatprep.subr.bf16.mxu1 %v3179_v35 }
 0x385   :  { %1175 = vmatpush1.bf16.msra.mxu0 %v2670_v50 }
 0x386   :  { %2105 = vmatpush3.bf16.msra.mxu1 %v2688_v54  ;;  %1293 = vmatprep.subr.bf16.mxu0 %v2602_v24 }
 0x387   :  { %2110 = vmatprep.subr.bf16.mxu1 %v3179_v35 }
 0x428   :  { %v1061_v63 = vpop.f32.mrf.mxu0  ;;  %v1102_v16 = vpop.f32.mrf.mxu1 }
 0x429   :  { %v1108_v20 = vadd.f32 %v1061_v63, %v2736_v62  ;;  %v1122_v61 = vadd.f32 %v2773_v15, %v1102_v16 }
 0x42a   :  { %v1063_v57 = vpop.f32.mrf.mxu0  ;;  %v2088_v17 = vpop.f32.mrf.mxu1 }
 0x42b   :  { %v1874_v21 = vmul.f32 -1.442695, %v1108_v20  ;;  %v1115_v18 = vadd.f32 %v1063_v57, %v2740_v1 }
 0x42c   :  { %v1065_v59 = vpop.f32.mrf.mxu0  ;;  %v1105_v23 = vpop.f32.mrf.mxu1 }
 0x42d   :  { %2321 = vpow2.f32 %v1874_v21  ;;  %v1875_v28 = vmul.f32 -1.442695, %v1115_v18 }
 0x42e   :  { %v1066_v0 = vpop.f32.mrf.mxu0  ;;  %v2089_v60 = vpop.f32.mrf.mxu1 }
 0x42f   :  { %2323 = vpow2.f32 %v1875_v28 }
 0x43a   :  { %v2322_v37 = vpop.eup %2321 }
 0x43b   :  { %v1112_v25 = vadd.f32 1.0, %v2322_v37 }
 0x43c   :  { %v2324_v55 = vpop.eup %2323 }
 0x43d   :  { %2325 = vrcp.f32 %v1112_v25  ;;  %v1119_v58 = vadd.f32 1.0, %v2324_v55 }
 0x43f   :  { %2327 = vrcp.f32 %v1119_v58 }
 0x44a   :  { %v2326_v62 = vpop.eup %2325 }
 0x44b   :  { %v1123_v3 = vmul.f32 %v2326_v62, %v1122_v61 }
 0x44c   :  { %v2328_v63 = vpop.eup %2327 }
 0x44d   :  { %v1124_v56 = vadd.f32 %v2748_v6, %v1123_v3  ;;  %v1126_v20 = vsub.f32 1.0, %v2328_v63  ;;  %v1128_v1 = vmul.f32 %v2328_v63, %v2873_v31 }
 0x44f   :  { %2329 = vtanh.f32 %v1124_v56 }
 0x45c   :  { %v2330_v17 = vpop.eup %2329 }
 0x45d   :  { %v1127_v21 = vmul.f32 %v2330_v17, %v1126_v20 }
 0x45f   :  { %v2919_v57 = vadd.f32 %v1128_v1, %v1127_v21 }
 0x461   :  { %v1159_v59 = vpack.c.bf16 %v2919_v57, %v2919_v57  ;;  %v1130_v16 = vmul.f32 %v2779_v43, %v2919_v57 }
 0x463   :  { %1193 = vmatmul.mubr.bf16.vlgmr.msra.gmra.mxu0 %v1159_v59  ;;  %2107 = vmatmul.mubr.bf16.vlgmr.msra.gmra.mxu1 %v1159_v59 }
 0x464   :  { %1131 = vadd.xlane.f32.xlu1 %v1130_v16  ;;  %1294 = vmatpush1.bf16.msra.mxu0 %v2604_v26 }
 0x465   :  { %2111 = vmatpush3.bf16.msra.mxu1 %v2622_v34  ;;  %1295 = vmatprep.subr.bf16.mxu0 %v2607_v27 }
 0x466   :  { %2112 = vmatprep.subr.bf16.mxu1 %v3179_v35  ;;  %1325 = vmatprep.mubr.bf16.mxu0 %v3180_v9 }
 0x467   :  { %2126 = vmatprep.mubr.msk.bf16.mxu1 %vm2537_vm0, %v3179_v35 }
 0x468   :  { %1296 = vmatpush1.bf16.msra.mxu0 %v2610_v29 }
 0x469   :  { %2113 = vmatpush3.bf16.msra.mxu1 %v2633_v39  ;;  %1297 = vmatprep.subr.bf16.mxu0 %v2614_v30 }
 0x46a   :  { %2114 = vmatprep.subr.bf16.mxu1 %v3179_v35 }
 0x46c   :  { %1298 = vmatpush1.bf16.msra.mxu0 %v2617_v32 }
 0x46d   :  { %2115 = vmatpush3.bf16.msra.mxu1 %v2643_v42  ;;  %1299 = vmatprep.subr.bf16.mxu0 %v2620_v33 }
 0x46e   :  { %2116 = vmatprep.subr.bf16.mxu1 %v3179_v35 }
 0x470   :  { %1300 = vmatpush1.bf16.msra.mxu0 %v2626_v36 }
 0x471   :  { %2117 = vmatpush3.bf16.msra.mxu1 %v2654_v46  ;;  %1301 = vmatprep.subr.bf16.mxu0 %v2630_v38 }
 0x472   :  { %2118 = vmatprep.subr.bf16.mxu1 %v3179_v35 }
 0x474   :  { %1302 = vmatpush1.bf16.msra.mxu0 %v2637_v40 }
 0x475   :  { %2119 = vmatpush3.bf16.msra.mxu1 %v2666_v49  ;;  %1303 = vmatprep.subr.bf16.mxu0 %v2640_v41 }
 0x476   :  { %2120 = vmatprep.subr.bf16.mxu1 %v3179_v35 }
 0x478   :  { %1304 = vmatpush1.bf16.msra.mxu0 %v2647_v44 }
 0x479   :  { %2121 = vmatpush3.bf16.msra.mxu1 %v2675_v51  ;;  %1305 = vmatprep.subr.bf16.mxu0 %v2651_v45 }
 0x47a   :  { %2122 = vmatprep.subr.bf16.mxu1 %v3179_v35 }
 0x47c   :  { %1306 = vmatpush1.bf16.msra.mxu0 %v2660_v47 }
 0x47d   :  { %2123 = vmatpush3.bf16.msra.mxu1 %v2681_v52  ;;  %1307 = vmatprep.subr.bf16.mxu0 %v2663_v48 }
 0x47e   :  { %2124 = vmatprep.subr.bf16.mxu1 %v3179_v35 }
 0x480   :  { %1308 = vmatpush1.bf16.msra.mxu0 %v2670_v50 }
 0x481   :  { %2125 = vmatpush3.bf16.msra.mxu1 %v2688_v54  ;;  %1426 = vmatprep.subr.bf16.mxu0 %v2602_v24 }
 0x482   :  { %2130 = vmatprep.subr.bf16.mxu1 %v3179_v35 }
 0x523   :  { %v1194_v6 = vpop.f32.mrf.mxu0  ;;  %v1235_v23 = vpop.f32.mrf.mxu1 }
 0x524   :  { %v1241_v0 = vadd.f32 %v1194_v6, %v2742_v2  ;;  %v1255_v20 = vadd.f32 %v2773_v15, %v1235_v23 }
 0x525   :  { %v1196_v60 = vpop.f32.mrf.mxu0  ;;  %v2108_v18 = vpop.f32.mrf.mxu1 }
 0x526   :  { %v1876_v28 = vmul.f32 -1.442695, %v1241_v0  ;;  %v1248_v61 = vadd.f32 %v1196_v60, %v2744_v4 }
 0x527   :  { %v1198_v37 = vpop.f32.mrf.mxu0  ;;  %v1238_v25 = vpop.f32.mrf.mxu1 }
 0x528   :  { %2331 = vpow2.f32 %v1876_v28  ;;  %v1877_v62 = vmul.f32 -1.442695, %v1248_v61 }
 0x529   :  { %v1199_v55 = vpop.f32.mrf.mxu0  ;;  %v2109_v58 = vpop.f32.mrf.mxu1 }
 0x52a   :  { %2333 = vpow2.f32 %v1877_v62 }
 0x535   :  { %v2332_v3 = vpop.eup %2331 }
 0x536   :  { %v1245_v24 = vadd.f32 1.0, %v2332_v3 }
 0x537   :  { %v2334_v56 = vpop.eup %2333 }
 0x538   :  { %2335 = vrcp.f32 %v1245_v24  ;;  %v1252_v63 = vadd.f32 1.0, %v2334_v56 }
 0x53a   :  { %2337 = vrcp.f32 %v1252_v63 }
 0x545   :  { %v2336_v2 = vpop.eup %2335 }
 0x546   :  { %v1256_v17 = vmul.f32 %v2336_v2, %v1255_v20 }
 0x547   :  { %v2338_v1 = vpop.eup %2337 }
 0x548   :  { %v1257_v21 = vadd.f32 %v1256_v17, %v2764_v14  ;;  %v1259_v59 = vsub.f32 1.0, %v2338_v1  ;;  %v1261_v4 = vmul.f32 %v2338_v1, %v2919_v57  ;;  %v2408_v1 = vld [vmem:[#allocation12 + $0x94] ss:$12 sps:$4 sm:$0xff]  }
 0x54a   :  { %2339 = vtanh.f32 %v1257_v21  ;;  %v2406_v21 = vld [vmem:[#allocation12 + $0xa8] ss:$12 sps:$4 sm:$0xff]  }
 0x557   :  { %v2340_v16 = vpop.eup %2339 }
 0x558   :  { %v1260_v6 = vmul.f32 %v2340_v16, %v1259_v59  ;;  %v2409_v59 = vld [vmem:[#allocation12 + $0x90] ss:$12 sps:$4 sm:$0xff]  }
 0x559   :  { %v2410_v16 = vld [vmem:[#allocation12 + $0x7c] ss:$12 sps:$4 sm:$0xff]  }
 0x55a   :  { %v2965_v0 = vadd.f32 %v1261_v4, %v1260_v6  ;;  %v2411_v6 = vld [vmem:[#allocation12 + $0x78] ss:$12 sps:$4 sm:$0xff]  }
 0x55b   :  { %v2412_v4 = vld [vmem:[#allocation12 + $0x64] ss:$12 sps:$4 sm:$0xff]  }
 0x55c   :  { %v1292_v60 = vpack.c.bf16 %v2965_v0, %v2965_v0  ;;  %v1263_v23 = vmul.f32 %v2779_v43, %v2965_v0 }
 0x55e   :  { %1326 = vmatmul.mubr.bf16.vlgmr.msra.gmra.mxu0 %v1292_v60  ;;  %2127 = vmatmul.mubr.bf16.vlgmr.msra.gmra.mxu1 %v1292_v60  ;;  %v2414_v60 = vld [vmem:[#allocation12 + $0x4c] ss:$12 sps:$4 sm:$0xff]  }
 0x55f   :  { %1264 = vadd.xlane.f32.xlu0 %v1263_v23  ;;  %1427 = vmatpush1.bf16.msra.mxu0 %v2604_v26  ;;  %v2405_v26 = vld [vmem:[#allocation12 + $0xac] ss:$12 sps:$4 sm:$0xff]   ;;  %v2416_v23 = vld [vmem:[#allocation12 + $0x34] ss:$12 sps:$4 sm:$0xff]  }
 0x560   :  { %2131 = vmatpush3.bf16.msra.mxu1 %v2622_v34  ;;  %1428 = vmatprep.subr.bf16.mxu0 %v2607_v27 }
 0x561   :  { %2132 = vmatprep.subr.bf16.mxu1 %v3179_v35  ;;  %1458 = vmatprep.mubr.bf16.mxu0 %v3180_v9 }
 0x562   :  { %2146 = vmatprep.mubr.msk.bf16.mxu1 %vm2537_vm0, %v3179_v35 }
 0x563   :  { %1429 = vmatpush1.bf16.msra.mxu0 %v2610_v29 }
 0x564   :  { %2133 = vmatpush3.bf16.msra.mxu1 %v2633_v39  ;;  %1430 = vmatprep.subr.bf16.mxu0 %v2614_v30 }
 0x565   :  { %2134 = vmatprep.subr.bf16.mxu1 %v3179_v35 }
 0x567   :  { %1431 = vmatpush1.bf16.msra.mxu0 %v2617_v32 }
 0x568   :  { %2135 = vmatpush3.bf16.msra.mxu1 %v2643_v42  ;;  %1432 = vmatprep.subr.bf16.mxu0 %v2620_v33 }
 0x569   :  { %2136 = vmatprep.subr.bf16.mxu1 %v3179_v35 }
 0x56b   :  { %1433 = vmatpush1.bf16.msra.mxu0 %v2626_v36 }
 0x56c   :  { %2137 = vmatpush3.bf16.msra.mxu1 %v2654_v46  ;;  %1434 = vmatprep.subr.bf16.mxu0 %v2630_v38 }
 0x56d   :  { %2138 = vmatprep.subr.bf16.mxu1 %v3179_v35 }
 0x56f   :  { %1435 = vmatpush1.bf16.msra.mxu0 %v2637_v40 }
 0x570   :  { %2139 = vmatpush3.bf16.msra.mxu1 %v2666_v49  ;;  %1436 = vmatprep.subr.bf16.mxu0 %v2640_v41 }
 0x571   :  { %2140 = vmatprep.subr.bf16.mxu1 %v3179_v35 }
 0x573   :  { %1437 = vmatpush1.bf16.msra.mxu0 %v2647_v44 }
 0x574   :  { %2141 = vmatpush3.bf16.msra.mxu1 %v2675_v51  ;;  %1438 = vmatprep.subr.bf16.mxu0 %v2651_v45 }
 0x575   :  { %2142 = vmatprep.subr.bf16.mxu1 %v3179_v35 }
 0x577   :  { %1439 = vmatpush1.bf16.msra.mxu0 %v2660_v47 }
 0x578   :  { %2143 = vmatpush3.bf16.msra.mxu1 %v2681_v52  ;;  %1440 = vmatprep.subr.bf16.mxu0 %v2663_v48 }
 0x579   :  { %2144 = vmatprep.subr.bf16.mxu1 %v3179_v35 }
 0x57b   :  { %1441 = vmatpush1.bf16.msra.mxu0 %v2670_v50 }
 0x57c   :  { %2145 = vmatpush3.bf16.msra.mxu1 %v2688_v54  ;;  %1559 = vmatprep.subr.bf16.mxu0 %v2405_v26 }
 0x57d   :  { %2150 = vmatprep.subr.bf16.mxu1 %v3179_v35 }
 0x61e   :  { %v1327_v27 = vpop.f32.mrf.mxu0  ;;  %v1368_v29 = vpop.f32.mrf.mxu1 }
 0x61f   :  { %v1374_v30 = vadd.f32 %v1327_v27, %v2746_v5  ;;  %v1388_v58 = vadd.f32 %v2773_v15, %v1368_v29 }
 0x620   :  { %v1329_v32 = vpop.f32.mrf.mxu0  ;;  %v2128_v33 = vpop.f32.mrf.mxu1 }
 0x621   :  { %v1878_v34 = vmul.f32 -1.442695, %v1374_v30  ;;  %v1381_v14 = vadd.f32 %v1329_v32, %v2750_v7 }
 0x622   :  { %v1331_v36 = vpop.f32.mrf.mxu0  ;;  %v1371_v38 = vpop.f32.mrf.mxu1 }
 0x623   :  { %2341 = vpow2.f32 %v1878_v34  ;;  %v1879_v18 = vmul.f32 -1.442695, %v1381_v14  ;;  %v3043_v38 = vpop.xlane.xlu0 %732  ;;  %v3047_v14 = vpop.xlane.xlu1 %998 }
 0x624   :  { %v1332_v40 = vpop.f32.mrf.mxu0  ;;  %v2129_v41 = vpop.f32.mrf.mxu1 }
 0x625   :  { %2343 = vpow2.f32 %v1879_v18  ;;  %v449_v41 = vld [vmem:[#allocation4] sm:$0xff] }
 0x630   :  { %v2342_v28 = vpop.eup %2341 }
 0x631   :  { %v1378_v37 = vadd.f32 1.0, %v2342_v28 }
 0x632   :  { %v2344_v25 = vpop.eup %2343 }
 0x633   :  { %2345 = vrcp.f32 %v1378_v37  ;;  %v1385_v55 = vadd.f32 1.0, %v2344_v25  ;;  %v3050_v37 = vmax.f32 %v449_v41, %v3043_v38 }
 0x635   :  { %2347 = vrcp.f32 %v1385_v55 }
 0x640   :  { %v2346_v5 = vpop.eup %2345 }
 0x641   :  { %v1389_v61 = vmul.f32 %v2346_v5, %v1388_v58  ;;  %v3057_v58 = vpop.xlane.xlu1 %1131 }
 0x642   :  { %v2348_v3 = vpop.eup %2347 }
 0x643   :  { %v1390_v62 = vadd.f32 %v1389_v61, %v2768_v22  ;;  %v1392_v24 = vsub.f32 1.0, %v2348_v3  ;;  %v1394_v7 = vmul.f32 %v2348_v3, %v2965_v0  ;;  %v2407_v22 = vld [vmem:[#allocation12 + $0xb0] ss:$12 sps:$4 sm:$0xff]  }
 0x645   :  { %2349 = vtanh.f32 %v1390_v62 }
 0x652   :  { %v2350_v56 = vpop.eup %2349 }
 0x653   :  { %v1393_v63 = vmul.f32 %v2350_v56, %v1392_v24 }
 0x655   :  { %v3010_v20 = vadd.f32 %v1394_v7, %v1393_v63  ;;  %v735_v63 = vsub.f32 %v449_v41, %v3050_v37 }
 0x657   :  { %v1425_v2 = vpack.c.bf16 %v3010_v20, %v3010_v20  ;;  %v1396_v17 = vmul.f32 %v2779_v43, %v3010_v20 }
 0x659   :  { %1459 = vmatmul.mubr.bf16.vlgmr.msra.gmra.mxu0 %v1425_v2  ;;  %2147 = vmatmul.mubr.bf16.vlgmr.msra.gmra.mxu1 %v1425_v2 }
 0x65a   :  { %1397 = vadd.xlane.f32.xlu1 %v1396_v17  ;;  %1560 = vmatpush1.bf16.msra.mxu0 %v2406_v21  ;;  %v736_v17 = vmul.f32 1.442695, %v735_v63 }
 0x65b   :  { %2151 = vmatpush3.bf16.msra.mxu1 %v2407_v22  ;;  %1561 = vmatprep.subr.bf16.mxu0 %v2408_v1 }
 0x65c   :  { %2152 = vmatprep.subr.bf16.mxu1 %v3179_v35  ;;  %1591 = vmatprep.mubr.bf16.mxu0 %v3180_v9  ;;  %v2413_v9 = vld [vmem:[#allocation12 + $0x60] ss:$12 sps:$4 sm:$0xff]  }
 0x65d   :  { %2166 = vmatprep.mubr.msk.bf16.mxu1 %vm2537_vm0, %v3179_v35 }
 0x65e   :  { %1562 = vmatpush1.bf16.msra.mxu0 %v2409_v59 }
 0x65f   :  { %2153 = vmatpush3.bf16.msra.mxu1 %v2633_v39  ;;  %1563 = vmatprep.subr.bf16.mxu0 %v2410_v16  ;;  %v2415_v39 = vld [vmem:[#allocation12 + $0x48] ss:$12 sps:$4 sm:$0xff]  }
 0x660   :  { %2154 = vmatprep.subr.bf16.mxu1 %v3179_v35 }
 0x662   :  { %1564 = vmatpush1.bf16.msra.mxu0 %v2411_v6 }
 0x663   :  { %2155 = vmatpush3.bf16.msra.mxu1 %v2643_v42  ;;  %1565 = vmatprep.subr.bf16.mxu0 %v2412_v4 }
 0x664   :  { %2156 = vmatprep.subr.bf16.mxu1 %v3179_v35 }
 0x666   :  { %1566 = vmatpush1.bf16.msra.mxu0 %v2413_v9 }
 0x667   :  { %2157 = vmatpush3.bf16.msra.mxu1 %v2654_v46  ;;  %1567 = vmatprep.subr.bf16.mxu0 %v2414_v60 }
 0x668   :  { %2158 = vmatprep.subr.bf16.mxu1 %v3179_v35 }
 0x66a   :  { %1568 = vmatpush1.bf16.msra.mxu0 %v2415_v39 }
 0x66b   :  { %2159 = vmatpush3.bf16.msra.mxu1 %v2666_v49  ;;  %1569 = vmatprep.subr.bf16.mxu0 %v2416_v23 }
 0x66c   :  { %2160 = vmatprep.subr.bf16.mxu1 %v3179_v35 }
 0x66e   :  { %1570 = vmatpush1.bf16.msra.mxu0 %v2647_v44 }
 0x66f   :  { %2161 = vmatpush3.bf16.msra.mxu1 %v2675_v51  ;;  %1571 = vmatprep.subr.bf16.mxu0 %v2651_v45 }
 0x670   :  { %2162 = vmatprep.subr.bf16.mxu1 %v3179_v35 }
 0x672   :  { %1572 = vmatpush1.bf16.msra.mxu0 %v2660_v47 }
 0x673   :  { %2163 = vmatpush3.bf16.msra.mxu1 %v2681_v52  ;;  %1573 = vmatprep.subr.bf16.mxu0 %v2663_v48 }
 0x674   :  { %2164 = vmatprep.subr.bf16.mxu1 %v3179_v35 }
 0x676   :  { %1574 = vmatpush1.bf16.msra.mxu0 %v2670_v50 }
 0x677   :  { %2165 = vmatpush3.bf16.msra.mxu1 %v2688_v54  ;;  %2170 = vmatprep.subr.mxu0 %v3179_v35 }
 0x6e3   :  { %v1398_v2 = vpop.xlane.xlu1 %1397 }
 0x719   :  { %v1460_v42 = vpop.f32.mrf.mxu0  ;;  %v1501_v44 = vpop.f32.mrf.mxu1 }
 0x71a   :  { %v1507_v45 = vadd.f32 %v1460_v42, %v2752_v8  ;;  %v1521_v33 = vadd.f32 %v2773_v15, %v1501_v44 }
 0x71b   :  { %v1462_v46 = vpop.f32.mrf.mxu0  ;;  %v2148_v49 = vpop.f32.mrf.mxu1 }
 0x71c   :  { %v1880_v51 = vmul.f32 -1.442695, %v1507_v45  ;;  %v1514_v27 = vadd.f32 %v1462_v46, %v2756_v10  ;;  %v3045_v10 = vpop.xlane.xlu0 %865 }
 0x71d   :  { %v1464_v47 = vpop.f32.mrf.mxu0  ;;  %v1504_v26 = vpop.f32.mrf.mxu1 }
 0x71e   :  { %2351 = vpow2.f32 %v1880_v51  ;;  %v1881_v29 = vmul.f32 -1.442695, %v1514_v27 }
 0x71f   :  { %v1465_v52 = vpop.f32.mrf.mxu0  ;;  %v2149_v48 = vpop.f32.mrf.mxu1 }
 0x720   :  { %2353 = vpow2.f32 %v1881_v29  ;;  %v1265_v62 = vpop.xlane.xlu0 %1264 }
 0x72b   :  { %v2352_v50 = vpop.eup %2351 }
 0x72c   :  { %v1511_v54 = vadd.f32 1.0, %v2352_v50 }
 0x72d   :  { %v2354_v30 = vpop.eup %2353 }
 0x72e   :  { %2355 = vrcp.f32 %v1511_v54  ;;  %v1518_v32 = vadd.f32 1.0, %v2354_v30 }
 0x730   :  { %2357 = vrcp.f32 %v1518_v32 }
 0x73b   :  { %v2356_v8 = vpop.eup %2355 }
 0x73c   :  { %v1522_v34 = vmul.f32 %v2356_v8, %v1521_v33 }
 0x73d   :  { %v2358_v40 = vpop.eup %2357 }
 0x73e   :  { %v1523_v36 = vadd.f32 %v2758_v11, %v1522_v34  ;;  %v1525_v18 = vsub.f32 1.0, %v2358_v40  ;;  %v1527_v55 = vmul.f32 %v2358_v40, %v3010_v20  ;;  %v3055_v11 = vmax.f32 %v3050_v37, %v3045_v10  ;;  %v3181_v40 = vld [vmem:[#allocation20_spill] sm:$0xff] }
 0x740   :  { %2359 = vtanh.f32 %v1523_v36  ;;  %v3063_v61 = vmax.f32 %v3055_v11, %v3047_v14  ;;  %v868_v63 = vsub.f32 %v3050_v37, %v3055_v11 }
 0x741   :  { %2361 = vpow2.f32 %v736_v17  ;;  %v871_v17 = vsub.f32 %v3045_v10, %v3055_v11 }
 0x742   :  { %v3071_v56 = vmax.f32 %v3063_v61, %v3057_v58 }
 0x744   :  { %v3075_v7 = vmax.f32 %v3071_v56, %v1265_v62  ;;  %v1137_v10 = vsub.f32 %v3057_v58, %v3071_v56 }
 0x746   :  { %v1270_v21 = vsub.f32 %v1265_v62, %v3075_v7  ;;  %v3081_v22 = vmax.f32 %v3075_v7, %v1398_v2  ;;  %v738_v62 = vsub.f32 %v3043_v38, %v3050_v37  ;;  %v1001_v38 = vsub.f32 %v3055_v11, %v3063_v61 }
 0x747   :  { %v1134_v37 = vsub.f32 %v3063_v61, %v3071_v56  ;;  %v1138_v11 = vmul.f32 1.442695, %v1137_v10  ;;  %v1705_v10 = vld [vmem:[#allocation13 + $0x10] sm:$0xff] }
 0x748   :  { %v1271_v1 = vmul.f32 1.442695, %v1270_v21  ;;  %v1403_v59 = vsub.f32 %v1398_v2, %v3081_v22  ;;  %v869_v2 = vmul.f32 1.442695, %v868_v63  ;;  %v872_v21 = vmul.f32 1.442695, %v871_v17 }
 0x74a   :  { %2363 = vpow2.f32 %v1271_v1  ;;  %v1404_v16 = vmul.f32 1.442695, %v1403_v59  ;;  %v1002_v1 = vmul.f32 1.442695, %v1001_v38  ;;  %v1711_v38 = vld [vmem:[#allocation13 + $0x40] sm:$0xff] }
 0x74c   :  { %2365 = vpow2.f32 %v1404_v16 }
 0x74d   :  { %v2360_v28 = vpop.eup %2359 }
 0x74e   :  { %v1526_v25 = vmul.f32 %v2360_v28, %v1525_v18  ;;  %v3084_v6 = vpop.eup %2361 }
 0x750   :  { %v3059_v5 = vadd.f32 %v1527_v55, %v1526_v25 }
 0x752   :  { %v1558_v3 = vpack.c.bf16 %v3059_v5, %v3059_v5  ;;  %v1529_v24 = vmul.f32 %v2779_v43, %v3059_v5 }
 0x754   :  { %1592 = vmatmul.mubr.bf16.vlgmr.msra.gmra.mxu0 %v1558_v3  ;;  %2167 = vmatmul.mubr.bf16.vlgmr.msra.gmra.mxu1 %v1558_v3 }
 0x755   :  { %1530 = vadd.xlane.f32.xlu0 %v1529_v24  ;;  %2202 = vmatprep.mubr.msk.f32.mxu0 %vm2537_vm0, %v3179_v35  ;;  %v739_v24 = vmul.f32 1.442695, %v738_v62 }
 0x757   :  { %v3087_v4 = vpop.eup %2363 }
 0x759   :  { %v3090_v9 = vpop.eup %2365 }
 0x76b   :  { %745 = vperm.xlu0 %2221, %v3084_v6  }
 0x76f   :  { %1283 = vperm.xlu0 %2221, %v3087_v4  }
 0x773   :  { %1416 = vperm.xlu0 %2221, %v3090_v9  }
 0x7de   :  { %v1531_v60 = vpop.xlane.xlu0 %1530 }
 0x7df   :  { %v3094_v39 = vmax.f32 %v3081_v22, %v1531_v60 }
 0x7e1   :  { %v1536_v23 = vsub.f32 %v1531_v60, %v3094_v39  ;;  %v1135_v60 = vmul.f32 1.442695, %v1134_v37  ;;  %v1533_v58 = vsub.f32 %v3081_v22, %v3094_v39 }
 0x7e3   :  { %v1537_v42 = vmul.f32 1.442695, %v1536_v23 }
 0x7e5   :  { %2367 = vpow2.f32 %v1537_v42  ;;  %v1267_v42 = vsub.f32 %v3071_v56, %v3075_v7 }
 0x7f2   :  { %v3097_v44 = vpop.eup %2367 }
 0x7f3   :  { %1549 = vperm.xlu0 %2221, %v3097_v44  }
 0x814   :  { %v1593_v45 = vpop.f32.mrf.mxu0  ;;  %v1634_v46 = vpop.f32.mrf.mxu1 }
 0x815   :  { %v1640_v49 = vadd.f32 %v1593_v45, %v2760_v12  ;;  %v1654_v34 = vadd.f32 %v2773_v15, %v1634_v46  ;;  %v1268_v45 = vmul.f32 1.442695, %v1267_v42 }
 0x816   :  { %v1595_v51 = vpop.f32.mrf.mxu0  ;;  %v2168_v47 = vpop.f32.mrf.mxu1 }
 0x817   :  { %v1882_v26 = vmul.f32 -1.442695, %v1640_v49  ;;  %v1647_v50 = vadd.f32 %v1595_v51, %v2762_v13  ;;  %v1534_v47 = vmul.f32 1.442695, %v1533_v58 }
 0x818   :  { %v1597_v52 = vpop.f32.mrf.mxu0  ;;  %v1637_v48 = vpop.f32.mrf.mxu1 }
 0x819   :  { %2369 = vpow2.f32 %v1882_v26  ;;  %v1883_v54 = vmul.f32 -1.442695, %v1647_v50  ;;  %v1715_v50 = vld [vmem:[#allocation13 + $0x60] sm:$0xff] }
 0x81a   :  { %v1598_v27 = vpop.f32.mrf.mxu0  ;;  %v2169_v29 = vpop.f32.mrf.mxu1 }
 0x81b   :  { %2371 = vpow2.f32 %v1883_v54  ;;  %v1717_v27 = vld [vmem:[#allocation13 + $0x70] sm:$0xff]  ;;  %v1714_v54 = vld [vmem:[#allocation13 + $0x58] sm:$0xff] }
 0x826   :  { %v2370_v30 = vpop.eup %2369 }
 0x827   :  { %v1644_v32 = vadd.f32 1.0, %v2370_v30  ;;  %v1713_v30 = vld [vmem:[#allocation13 + $0x50] sm:$0xff] }
 0x828   :  { %v2372_v33 = vpop.eup %2371 }
 0x829   :  { %2373 = vrcp.f32 %v1644_v32  ;;  %v1651_v8 = vadd.f32 1.0, %v2372_v33  ;;  %v450_v32 = vld [vmem:[#allocation5] sm:$0xff] }
 0x82a   :  { %v741_v33 = vmul.f32 %v3084_v6, %v450_v32 }
 0x82b   :  { %2375 = vrcp.f32 %v1651_v8 }
 0x836   :  { %v2374_v12 = vpop.eup %2373 }
 0x837   :  { %v1655_v36 = vmul.f32 %v2374_v12, %v1654_v34 }
 0x838   :  { %v2376_v18 = vpop.eup %2375 }
 0x839   :  { %v1656_v41 = vadd.f32 %v3181_v40, %v1655_v36  ;;  %v1658_v28 = vsub.f32 1.0, %v2376_v18  ;;  %v1660_v13 = vmul.f32 %v2376_v18, %v3059_v5 }
 0x83b   :  { %2377 = vtanh.f32 %v1656_v41 }
 0x83c   :  { %2379 = vpow2.f32 %v739_v24 }
 0x83d   :  { %2381 = vpow2.f32 %v869_v2 }
 0x83e   :  { %2383 = vpow2.f32 %v872_v21  ;;  %v1712_v21 = vld [vmem:[#allocation13 + $0x48] sm:$0xff] }
 0x83f   :  { %2385 = vpow2.f32 %v1002_v1 }
 0x848   :  { %v2378_v25 = vpop.eup %2377 }
 0x849   :  { %v1659_v55 = vmul.f32 %v2378_v25, %v1658_v28  ;;  %v2380_v16 = vpop.eup %2379 }
 0x84a   :  { %v2382_v23 = vpop.eup %2381  ;;  %v742_v8 = vadd.f32 %v2380_v16, %v741_v33 }
 0x84b   :  { %v3107_v3 = vadd.f32 %v1660_v13, %v1659_v55 }
 0x84c   :  { %v874_v34 = vmul.f32 %v2382_v23, %v742_v8 }
 0x84d   :  { %v1662_v15 = vmul.f32 %v2779_v43, %v3107_v3  ;;  %v1004_v43 = vsub.f32 %v3047_v14, %v3063_v61  ;;  %v2384_v14 = vpop.eup %2383  ;;  %v1400_v61 = vsub.f32 %v3075_v7, %v3081_v22  ;;  %v1718_v7 = vld [vmem:[#allocation13 + $0x78] sm:$0xff]  ;;  %v1716_v22 = vld [vmem:[#allocation13 + $0x68] sm:$0xff] }
 0x84e   :  { %v2386_v46 = vpop.eup %2385  ;;  %2171 = vmatpush3.msra.mxu0 %v1718_v7  ;;  %v875_v12 = vadd.f32 %v2384_v14, %v874_v34 }
 0x84f   :  { %1663 = vadd.xlane.f32.xlu1 %v1662_v15  ;;  %v1005_v59 = vmul.f32 1.442695, %v1004_v43  ;;  %v1401_v49 = vmul.f32 1.442695, %v1400_v61  ;;  %2172 = vmatprep.subr.mxu0 %v3179_v35 }
 0x850   :  { %2173 = vmatpush3.msra.mxu0 %v1717_v27  ;;  %v1007_v36 = vmul.f32 %v2386_v46, %v875_v12 }
 0x851   :  { %2387 = vpow2.f32 %v1005_v59  ;;  %2174 = vmatprep.subr.mxu0 %v3179_v35 }
 0x852   :  { %2389 = vpow2.f32 %v1135_v60  ;;  %2175 = vmatpush3.msra.mxu0 %v1716_v22  ;;  %v1706_v60 = vld [vmem:[#allocation13 + $0x18] sm:$0xff] }
 0x853   :  { %2391 = vpow2.f32 %v1138_v11  ;;  %2176 = vmatprep.subr.mxu0 %v3179_v35  ;;  %v1703_v11 = vld [vmem:[#allocation13] sm:$0xff] }
 0x854   :  { %2393 = vpow2.f32 %v1268_v45  ;;  %2177 = vmatpush3.msra.mxu0 %v1715_v50 }
 0x855   :  { %2395 = vpow2.f32 %v1401_v49  ;;  %2178 = vmatprep.subr.mxu0 %v3179_v35  ;;  %v746_v49 = vpop.permute.xlu0 %745 }
 0x856   :  { %2397 = vpow2.f32 %v1534_v47  ;;  %2179 = vmatpush3.msra.mxu0 %v1714_v54 }
 0x857   :  { %2180 = vmatprep.subr.mxu0 %v3179_v35 }
 0x858   :  { %2181 = vmatpush3.msra.mxu0 %v1713_v30 }
 0x859   :  { %2182 = vmatprep.subr.mxu0 %v3179_v35  ;;  %v1284_v33 = vpop.permute.xlu0 %1283 }
 0x85a   :  { %2183 = vmatpush3.msra.mxu0 %v1712_v21  ;;  %v1286_v8 = vmul.f32 %v1284_v33, %v2965_v0 }
 0x85b   :  { %2184 = vmatprep.subr.mxu0 %v3179_v35 }
 0x85c   :  { %2185 = vmatpush3.msra.mxu0 %v1711_v38 }
 0x85d   :  { %2186 = vmatprep.subr.mxu0 %v3179_v35 }
 0x85e   :  { %v2388_v51 = vpop.eup %2387 }
 0x85f   :  { %v2390_v26 = vpop.eup %2389  ;;  %v1008_v40 = vadd.f32 %v2388_v51, %v1007_v36 }
 0x860   :  { %751 = vperm.xlu1 %2222, %v2380_v16   ;;  %v2392_v56 = vpop.eup %2391 }
 0x861   :  { %v2394_v52 = vpop.eup %2393  ;;  %v1140_v41 = vmul.f32 %v2390_v26, %v1008_v40 }
 0x862   :  { %v2396_v48 = vpop.eup %2395 }
 0x863   :  { %v2398_v29 = vpop.eup %2397  ;;  %v1141_v28 = vadd.f32 %v2392_v56, %v1140_v41 }
 0x864   :  { %878 = vperm.xlu1 %2222, %v2382_v23   ;;  %v1704_v23 = vld [vmem:[#allocation13 + $0x8] sm:$0xff] }
 0x865   :  { %v1273_v55 = vmul.f32 %v2394_v52, %v1141_v28 }
 0x867   :  { %v1274_v6 = vadd.f32 %v3087_v4, %v1273_v55  ;;  %v1709_v4 = vld [vmem:[#allocation13 + $0x30] sm:$0xff] }
 0x868   :  { %884 = vperm.xlu1 %2222, %v2384_v14  }
 0x869   :  { %v1406_v63 = vmul.f32 %v2396_v48, %v1274_v6 }
 0x86b   :  { %v1407_v2 = vadd.f32 %v3090_v9, %v1406_v63  ;;  %v1708_v9 = vld [vmem:[#allocation13 + $0x28] sm:$0xff] }
 0x86c   :  { %1011 = vperm.xlu1 %2222, %v2386_v46  }
 0x86d   :  { %v1539_v17 = vmul.f32 %v2398_v29, %v1407_v2 }
 0x86f   :  { %v1540_v1 = vadd.f32 %v3097_v44, %v1539_v17  ;;  %v1707_v44 = vld [vmem:[#allocation13 + $0x20] sm:$0xff] }
 0x870   :  { %1017 = vperm.xlu1 %2222, %v2388_v51   ;;  %v748_v51 = vmul.f32 0.0, %v746_v49 }
 0x874   :  { %1144 = vperm.xlu1 %2222, %v2390_v26  }
 0x878   :  { %1150 = vperm.xlu1 %2222, %v2392_v56  }
 0x87c   :  { %1277 = vperm.xlu1 %2222, %v2394_v52  }
 0x880   :  { %1410 = vperm.xlu1 %2222, %v2396_v48  }
 0x884   :  { %1543 = vperm.xlu1 %2222, %v2398_v29  }
 0x8d8   :  { %v1664_v18 = vpop.xlane.xlu1 %1663 }
 0x8d9   :  { %v1665_v25 = vmax.f32 %v3094_v39, %v1664_v18 }
 0x8db   :  { %v1666_v13 = vsub.f32 %v3094_v39, %v1665_v25  ;;  %v1669_v62 = vsub.f32 %v1664_v18, %v1665_v25  ;;  %1689 = vst.msk [vmem:[#allocation4] sm:$0xff] %vm88_vm1, %v1665_v25  ;;  %v1710_v39 = vld [vmem:[#allocation13 + $0x38] sm:$0xff] }
 0x8dc   :  { %2187 = vmatpush3.msra.mxu0 %v1710_v39  ;;  %v752_v14 = vpop.permute.xlu1 %751 }
 0x8dd   :  { %v1667_v15 = vmul.f32 1.442695, %v1666_v13  ;;  %v1670_v24 = vmul.f32 1.442695, %v1669_v62  ;;  %2188 = vmatprep.subr.mxu0 %v3179_v35  ;;  %v754_v58 = vmul.f32 %v752_v14, %v2781_v53 }
 0x8de   :  { %2189 = vmatpush3.msra.mxu0 %v1709_v4 }
 0x8df   :  { %2399 = vpow2.f32 %v1667_v15  ;;  %2190 = vmatprep.subr.mxu0 %v3179_v35  ;;  %v755_v26 = vadd.f32 %v754_v58, %v748_v51 }
 0x8e0   :  { %2401 = vpow2.f32 %v1670_v24  ;;  %2191 = vmatpush3.msra.mxu0 %v1708_v9  ;;  %v879_v45 = vpop.permute.xlu1 %878 }
 0x8e1   :  { %2192 = vmatprep.subr.mxu0 %v3179_v35  ;;  %v881_v52 = vmul.f32 %v879_v45, %v755_v26 }
 0x8e2   :  { %2193 = vmatpush3.msra.mxu0 %v1707_v44 }
 0x8e3   :  { %2194 = vmatprep.subr.mxu0 %v3179_v35 }
 0x8e4   :  { %2195 = vmatpush3.msra.mxu0 %v1706_v60  ;;  %v885_v61 = vpop.permute.xlu1 %884 }
 0x8e5   :  { %2196 = vmatprep.subr.mxu0 %v3179_v35  ;;  %v887_v56 = vmul.f32 %v885_v61, %v2827_v19  ;;  %v1417_v19 = vpop.permute.xlu0 %1416 }
 0x8e6   :  { %2197 = vmatpush3.msra.mxu0 %v1705_v10  ;;  %v1419_v40 = vmul.f32 %v1417_v19, %v3010_v20  ;;  %v1884_v20 = vld [vmem:[%s3172_s6] ss:$0 sm:$0xff] }
 0x8e7   :  { %2198 = vmatprep.subr.mxu0 %v3179_v35  ;;  %v888_v7 = vadd.f32 %v887_v56, %v881_v52 }
 0x8e8   :  { %2199 = vmatpush3.msra.mxu0 %v1704_v23  ;;  %v1012_v46 = vpop.permute.xlu1 %1011 }
 0x8e9   :  { %2200 = vmatprep.subr.mxu0 %v3179_v35  ;;  %v1014_v27 = vmul.f32 %v1012_v46, %v888_v7  ;;  %v1550_v18 = vpop.permute.xlu0 %1549 }
 0x8ea   :  { %2201 = vmatpush3.msra.mxu0 %v1703_v11  ;;  %v1552_v25 = vmul.f32 %v1550_v18, %v3059_v5 }
 0x8ec   :  { %v2400_v43 = vpop.eup %2399  ;;  %v1018_v47 = vpop.permute.xlu1 %1017 }
 0x8ed   :  { %v2402_v59 = vpop.eup %2401  ;;  %v1672_v37 = vmul.f32 %v2400_v43, %v1540_v1  ;;  %1676 = vperm.xlu1 %2222, %v2400_v43   ;;  %v1020_v35 = vmul.f32 %v1018_v47, %v2873_v31 }
 0x8ee   :  { %1682 = vperm.xlu0 %2221, %v2402_v59  }
 0x8ef   :  { %v1673_v16 = vadd.f32 %v2402_v59, %v1672_v37  ;;  %v1021_v22 = vadd.f32 %v1020_v35, %v1014_v27 }
 0x8f0   :  { %v1145_v48 = vpop.permute.xlu1 %1144 }
 0x8f1   :  { %1690 = vst.msk [vmem:[#allocation5] sm:$0xff] %vm88_vm1, %v1673_v16  ;;  %2403 = vrcp.f32 %v1673_v16  ;;  %v1147_v54 = vmul.f32 %v1145_v48, %v1021_v22 }
 0x8f4   :  { %v1151_v29 = vpop.permute.xlu1 %1150 }
 0x8f5   :  { %v1153_v50 = vmul.f32 %v1151_v29, %v2919_v57 }
 0x8f7   :  { %v1154_v30 = vadd.f32 %v1153_v50, %v1147_v54 }
 0x8f8   :  { %v1278_v32 = vpop.permute.xlu1 %1277 }
 0x8f9   :  { %v1280_v53 = vmul.f32 %v1278_v32, %v1154_v30 }
 0x8fb   :  { %v1287_v34 = vadd.f32 %v1286_v8, %v1280_v53 }
 0x8fc   :  { %v1411_v12 = vpop.permute.xlu1 %1410 }
 0x8fd   :  { %v1413_v36 = vmul.f32 %v1411_v12, %v1287_v34 }
 0x8fe   :  { %v2404_v42 = vpop.eup %2403 }
 0x8ff   :  { %1699 = vperm.xlu1 %2222, %v2404_v42   ;;  %v1420_v41 = vadd.f32 %v1419_v40, %v1413_v36 }
 0x900   :  { %v1544_v31 = vpop.permute.xlu1 %1543 }
 0x901   :  { %v1546_v28 = vmul.f32 %v1544_v31, %v1420_v41 }
 0x903   :  { %v1553_v13 = vadd.f32 %v1552_v25, %v1546_v28 }
 0x968   :  { %v1677_v57 = vpop.permute.xlu1 %1676 }
 0x969   :  { %v1683_v55 = vpop.permute.xlu0 %1682  ;;  %v1679_v62 = vmul.f32 %v1677_v57, %v1553_v13 }
 0x96a   :  { %v1685_v15 = vmul.f32 %v1683_v55, %v3107_v3 }
 0x96c   :  { %v1686_v24 = vadd.f32 %v1685_v15, %v1679_v62 }
 0x97a   :  { %v1700_v0 = vpop.permute.xlu1 %1699 }
 0x97b   :  { %v1702_v6 = vmul.f32 %v1700_v0, %v1686_v24 }
 0x97d   :  { %2203 = vmatmul.mubr.f32.vlgmr.msra.gmra.mxu0 %v1702_v6 }
 0xa3d   :  { %v1792_v63 = vpop.f32.mrf.mxu0 }
 0xa3e   :  { %v1793_v2 = vadd.f32 %v1884_v20, %v1792_v63 }
 0xa3f   :  { %v2204_v5 = vpop.f32.mrf.mxu0 }
 0xa40   :  { %1796 = vst [vmem:[#allocation15] sm:$0xff] %v1793_v2 }
 0xa41   :  { %2508 = shalt.err (!%p2505_p10)
}
 0xa42   :  { %1806 = dma.vmem_to_hbm [thread:$0]  %s1804_s28, 128, %s3173_s7, [#allocation9]  }
 0xa43   :  { %2523 = dma.done.wait [#allocation9], 128  }
 0xa44   :  { %2524 = vsyncadd [#allocation9], 4294967168 }
 0xa45   :  { %1810 = vsyncpa [#allocation8], 1 }
 0xa46   :  { %1811 = vsyncpa [#allocation11], 1 }
 0xa47   :  { %1812 = vsyncpa [#allocation14], 1 }
 0xa48   :  { %1813 = vsyncpa [#allocation9], 1 }

</bundles_post_ra>
